<compile_context>
chip_gen: v7x
topology: tpu7x:2x2x1
jax: 0.10.0
libtpu: 0.0.40
codegen_flags: <defaults>
</compile_context>

<pallas_src>
import jax
import jax.numpy as jnp
from jax import lax
from jax.experimental import pallas as pl
from jax.experimental.pallas import tpu as pltpu

EPS = 1e-5
_VMEM_LIMIT_CACHE = [None]


# ---------------------------------------------------------------------------
# kernels
# ---------------------------------------------------------------------------
def _write_stats(stats_ref, h_f32):
    """Write (1, 2, C) block: row0 = per-channel sum, row1 = sum of squares."""
    s = jnp.sum(h_f32, axis=0, keepdims=True)
    sq = jnp.sum(h_f32 * h_f32, axis=0, keepdims=True)
    stats_ref[...] = jnp.concatenate([s, sq], axis=0).reshape(1, 2, h_f32.shape[-1])


def _conv1x1_stats_kernel(x_ref, w_ref, h_ref, stats_ref):
    # x_ref: (TM, Cin_p) f32 -> cast to bf16 for the MXU (only one copy of x in HBM).
    h = jnp.dot(x_ref[...].astype(jnp.bfloat16), w_ref[...],
                preferred_element_type=jnp.float32)
    h_ref[...] = h.astype(h_ref.dtype)          # bf16 intermediate to HBM
    _write_stats(stats_ref, h)                   # stats from f32 accumulation


def _bn_relu_conv1x1_stats_kernel(x_ref, scale_ref, shift_ref, w_ref,
                                  h_ref, stats_ref):
    # x_ref: (TM, C) bf16 intermediate; BN math in f32, matmul operands bf16.
    a = jnp.maximum(x_ref[...].astype(jnp.float32) * scale_ref[...]
                    + shift_ref[...], 0.0)
    h = jnp.dot(a.astype(jnp.bfloat16), w_ref[...],
                preferred_element_type=jnp.float32)
    h_ref[...] = h.astype(h_ref.dtype)
    _write_stats(stats_ref, h)


def _bn_relu_conv3x3_stats_kernel(xc_ref, xt_ref, xb_ref, scale_ref, shift_ref,
                                  w2_ref, h2_ref, stats_ref, pad_ref):
    # xc_ref: (1, TH, W, C) bf16 center rows of h1
    # xt_ref/xb_ref: (1, 1, W, C) bf16 halo rows (clamped at the image border)
    # w2_ref: (9*C, C) bf16 (ky, kx, cin)-flattened weight
    # h2_ref: (1, TH, W, C) bf16 out; stats_ref: (1, 2, C) f32
    # pad_ref: (TH+2, W+2, C) bf16 zero-padded activation scratch
    _, TH, W, C = xc_ref.shape
    h_idx = pl.program_id(1)
    is_top = h_idx == 0
    is_bot = h_idx == pl.num_programs(1) - 1

    scale = scale_ref[...]
    shift = shift_ref[...]

    def bn_relu(v2d):  # (rows, C) bf16 -> f32
        return jnp.maximum(v2d.astype(jnp.float32) * scale + shift, 0.0)

    # Left / right halo columns must be zero. The scratch is per-core and
    # uninitialized, so re-zero just these two thin strips every step
    # (2*(TH+2)*C elements, instead of the whole padded buffer).
    zcol = jnp.zeros((TH + 2, 1, C), jnp.bfloat16)
    pad_ref[:, 0:1, :] = zcol
    pad_ref[:, W + 1:W + 2, :] = zcol

    # Interior rows: BN + ReLU, stored as bf16 (matches the MXU operand dtype).
    center = bn_relu(xc_ref[...].reshape(TH * W, C))
    pad_ref[1:TH + 1, 1:W + 1, :] = center.astype(jnp.bfloat16).reshape(TH, W, C)

    # Halo rows from the neighbouring row tiles; zero at the image border.
    top = bn_relu(xt_ref[...].reshape(W, C))
    top = jnp.where(is_top, 0.0, top)
    pad_ref[0:1, 1:W + 1, :] = top.astype(jnp.bfloat16).reshape(1, W, C)

    bot = bn_relu(xb_ref[...].reshape(W, C))
    bot = jnp.where(is_bot, 0.0, bot)
    pad_ref[TH + 1:TH + 2, 1:W + 1, :] = bot.astype(jnp.bfloat16).reshape(1, W, C)

    # 3x3 conv = 9 accumulating (TH*W, C) x (C, C) matmuls (no im2col buffer).
    acc = jnp.zeros((TH * W, C), jnp.float32)
    for ky in range(3):
        for kx in range(3):
            t = ky * 3 + kx
            tap = pad_ref[ky:ky + TH, kx:kx + W, :].reshape(TH * W, C)
            acc = acc + jnp.dot(tap, w2_ref[t * C:(t + 1) * C, :],
                                preferred_element_type=jnp.float32)

    h2_ref[...] = acc.reshape(1, TH, W, C).astype(h2_ref.dtype)
    _write_stats(stats_ref, acc)


def _bn_add_relu_kernel(h_ref, scale_ref, shift_ref, idn_ref, o_ref):
    o_ref[...] = jnp.maximum(
        h_ref[...].astype(jnp.float32) * scale_ref[...] + shift_ref[...]
        + idn_ref[...], 0.0)


# ---------------------------------------------------------------------------
# wrapper helpers
# ---------------------------------------------------------------------------
def _ceil_to(v, m):
    return ((v + m - 1) // m) * m


def _pick_row_tile(m, max_rows=1024):
    """Largest divisor of m that is a multiple of 8 and <= max_rows."""
    best = None
    for t in range(8, min(m, max_rows) + 1, 8):
        if m % t == 0:
            best = t
    if best is None:
        # TODO(synk): pad M to a multiple of 8 instead of one whole block.
        best = m
    return best


def _pick_h_tile(h, max_rows=8):
    """Largest divisor of h that is <= max_rows (row tiles for the 3x3 conv)."""
    best = 1
    for t in range(1, min(h, max_rows) + 1):
        if h % t == 0:
            best = t
    return best


def _pad_gb(g, b, cp):
    # gamma is padded with 0 so padded lanes are forced to zero after BN.
    pad = cp - g.shape[-1]
    gp = jnp.pad(g, ((0, 0), (0, pad)))
    bp = jnp.pad(b, ((0, 0), (0, pad)))
    return gp, bp


def _bn_scale_shift(stats, gamma, beta, count):
    # stats: (tiles, 2, C) with row0 = sum, row1 = sum of squares.
    tot = jnp.sum(stats, axis=0)                            # (2, C)
    mean = tot[0] / count
    var = jnp.maximum(tot[1] / count - mean * mean, 0.0)    # one-pass, clamped
    scale = gamma[0] * lax.rsqrt(var + EPS)
    shift = beta[0] - mean * scale
    return scale.reshape(1, -1), shift.reshape(1, -1)


def _vmem_limit_bytes():
    if _VMEM_LIMIT_CACHE[0] is None:
        cap = 64 * 1024 * 1024
        try:
            info = pltpu.get_tpu_info()
            cap = int(getattr(info, "vmem_capacity_bytes", cap))
        except Exception:
            pass
        _VMEM_LIMIT_CACHE[0] = max(32 * 1024 * 1024,
                                   min(cap * 3 // 4, 100 * 1024 * 1024))
    return _VMEM_LIMIT_CACHE[0]


def _cparams(num_axes):
    return pltpu.CompilerParams(dimension_semantics=("parallel",) * num_axes,
                                vmem_limit_bytes=_vmem_limit_bytes())


def _ce(flops, nbytes):
    return pl.CostEstimate(flops=int(flops), transcendentals=0,
                           bytes_accessed=int(nbytes))


# ---------------------------------------------------------------------------
# forward
# ---------------------------------------------------------------------------
@jax.jit
def bottleneck_forward(x_nchw, params):
    """x_nchw: [N, Cin, H, W] float32. Returns [N, Cout, H, W] float32."""
    w1, g1, b1, w2, g2, b2, w3, g3, b3 = params
    N, Cin, H, W = x_nchw.shape
    Cw = w1.shape[1]
    Cout = w3.shape[1]
    assert Cin == Cout, "downsample=None requires in_channel == out_channel*expansion"

    Cin_p = _ceil_to(Cin, 128)
    Cw_p = _ceil_to(Cw, 128)
    Cout_p = _ceil_to(Cout, 128)
    M = N * H * W
    TM = _pick_row_tile(M)
    nt = M // TM
    TH = _pick_h_tile(H)
    HT = H // TH

    # TODO(synk): accept/produce NHWC at the model boundary so this transpose
    # is fused once into the surrounding graph instead of per block.
    x_nhwc = jnp.transpose(x_nchw, (0, 2, 3, 1))
    x2d = jnp.pad(x_nhwc.reshape(M, Cin), ((0, 0), (0, Cin_p - Cin)))  # f32, only copy

    # weights: pad channels to 128 multiples (lane dense), cast to bf16
    w1p = jnp.pad(w1, ((0, Cin_p - Cin), (0, Cw_p - Cw))).astype(jnp.bfloat16)
    w2p = jnp.pad(w2, ((0, 0), (0, 0), (0, Cw_p - Cw), (0, Cw_p - Cw)))
    w2p = w2p.reshape(9 * Cw_p, Cw_p).astype(jnp.bfloat16)             # (ky,kx,cin) rows
    w3p = jnp.pad(w3, ((0, Cw_p - Cw), (0, Cout_p - Cout))).astype(jnp.bfloat16)
    g1p, b1p = _pad_gb(g1, b1, Cw_p)
    g2p, b2p = _pad_gb(g2, b2, Cw_p)
    g3p, b3p = _pad_gb(g3, b3, Cout_p)

    # ---- stage 1: conv1 (1x1) + bn1 partial stats -------------------------
    h1, st1 = pl.pallas_call(
        _conv1x1_stats_kernel,
        out_shape=(jax.ShapeDtypeStruct((M, Cw_p), jnp.bfloat16),
                   jax.ShapeDtypeStruct((nt, 2, Cw_p), jnp.float32)),
        grid=(nt,),
        in_specs=[pl.BlockSpec((TM, Cin_p), lambda i: (i, 0)),
                  pl.BlockSpec((Cin_p, Cw_p), lambda i: (0, 0))],
        out_specs=(pl.BlockSpec((TM, Cw_p), lambda i: (i, 0)),
                   pl.BlockSpec((1, 2, Cw_p), lambda i: (i, 0, 0))),
        compiler_params=_cparams(1),
        cost_estimate=_ce(2 * M * Cin_p * Cw_p + 3 * M * Cw_p,
                          M * Cin_p * 4 + Cin_p * Cw_p * 2 + M * Cw_p * 2
                          + nt * 2 * Cw_p * 4),
    )(x2d, w1p)
    s1, t1 = _bn_scale_shift(st1, g1p, b1p, M)

    # ---- stage 2: bn1 + relu + conv2 (3x3, H-tiled, halo rows) + bn2 stats -
    h1_nhwc = h1.reshape(N, H, W, Cw_p)
    h2, st2 = pl.pallas_call(
        _bn_relu_conv3x3_stats_kernel,
        out_shape=(jax.ShapeDtypeStruct((N, H, W, Cw_p), jnp.bfloat16),
                   jax.ShapeDtypeStruct((N * HT, 2, Cw_p), jnp.float32)),
        grid=(N, HT),
        in_specs=[
            pl.BlockSpec((1, TH, W, Cw_p), lambda n, h: (n, h, 0, 0)),
            pl.BlockSpec((1, 1, W, Cw_p),
                         lambda n, h: (n, jnp.maximum(h * TH - 1, 0), 0, 0)),
            pl.BlockSpec((1, 1, W, Cw_p),
                         lambda n, h: (n, jnp.minimum(h * TH + TH, H - 1), 0, 0)),
            pl.BlockSpec((1, Cw_p), lambda n, h: (0, 0)),
            pl.BlockSpec((1, Cw_p), lambda n, h: (0, 0)),
            pl.BlockSpec((9 * Cw_p, Cw_p), lambda n, h: (0, 0)),
        ],
        out_specs=(pl.BlockSpec((1, TH, W, Cw_p), lambda n, h: (n, h, 0, 0)),
                   pl.BlockSpec((1, 2, Cw_p), lambda n, h: (n * HT + h, 0, 0))),
        scratch_shapes=[pltpu.VMEM((TH + 2, W + 2, Cw_p), jnp.bfloat16)],
        compiler_params=_cparams(2),
        cost_estimate=_ce(2 * M * 9 * Cw_p * Cw_p + 8 * M * Cw_p,
                          M * Cw_p * 2 * 2 + 2 * N * HT * W * Cw_p * 2
                          + 9 * Cw_p * Cw_p * 2 + N * HT * 2 * Cw_p * 4),
    )(h1_nhwc, h1_nhwc, h1_nhwc, s1, t1, w2p)
    s2, t2 = _bn_scale_shift(st2, g2p, b2p, M)

    # ---- stage 3: bn2 + relu + conv3 (1x1) + bn3 partial stats ------------
    h3, st3 = pl.pallas_call(
        _bn_relu_conv1x1_stats_kernel,
        out_shape=(jax.ShapeDtypeStruct((M, Cout_p), jnp.bfloat16),
                   jax.ShapeDtypeStruct((nt, 2, Cout_p), jnp.float32)),
        grid=(nt,),
        in_specs=[pl.BlockSpec((TM, Cw_p), lambda i: (i, 0)),
                  pl.BlockSpec((1, Cw_p), lambda i: (0, 0)),
                  pl.BlockSpec((1, Cw_p), lambda i: (0, 0)),
                  pl.BlockSpec((Cw_p, Cout_p), lambda i: (0, 0))],
        out_specs=(pl.BlockSpec((TM, Cout_p), lambda i: (i, 0)),
                   pl.BlockSpec((1, 2, Cout_p), lambda i: (i, 0, 0))),
        compiler_params=_cparams(1),
        cost_estimate=_ce(2 * M * Cw_p * Cout_p + 6 * M * Cw_p,
                          M * Cw_p * 2 + Cw_p * Cout_p * 2 + M * Cout_p * 2
                          + nt * 2 * Cout_p * 4),
    )(h2.reshape(M, Cw_p), s2, t2, w3p)
    s3, t3 = _bn_scale_shift(st3, g3p, b3p, M)

    # ---- stage 4: bn3 + identity residual + relu --------------------------
    out2d = pl.pallas_call(
        _bn_add_relu_kernel,
        out_shape=jax.ShapeDtypeStruct((M, Cout_p), jnp.float32),
        grid=(nt,),
        in_specs=[pl.BlockSpec((TM, Cout_p), lambda i: (i, 0)),
                  pl.BlockSpec((1, Cout_p), lambda i: (0, 0)),
                  pl.BlockSpec((1, Cout_p), lambda i: (0, 0)),
                  pl.BlockSpec((TM, Cout_p), lambda i: (i, 0))],
        out_specs=pl.BlockSpec((TM, Cout_p), lambda i: (i, 0)),
        compiler_params=_cparams(1),
        cost_estimate=_ce(4 * M * Cout_p, M * Cout_p * (2 + 4 + 4)),
    )(h3, s3, t3, x2d)

    out = out2d[:, :Cout].reshape(N, H, W, Cout)
    return jnp.transpose(out, (0, 3, 1, 2))


# ---------------------------------------------------------------------------
# references
# ---------------------------------------------------------------------------
def _ref_bn(h, g, b):
    mean = jnp.mean(h, axis=(0, 1, 2), keepdims=True)
    var = jnp.mean(jnp.square(h - mean), axis=(0, 1, 2), keepdims=True)
    return ((h - mean) * lax.rsqrt(var + EPS) * g.reshape(1, 1, 1, -1)
            + b.reshape(1, 1, 1, -1))


def ref_forward_f32(x_nchw, params):
    """Pure-f32 reference of the module's forward pass."""
    w1, g1, b1, w2, g2, b2, w3, g3, b3 = params
    x = jnp.transpose(x_nchw, (0, 2, 3, 1))
    h = jnp.einsum('nhwc,cd->nhwd', x, w1)
    h = jax.nn.relu(_ref_bn(h, g1, b1))
    h = lax.conv_general_dilated(h, w2, (1, 1), 'SAME',
                                 dimension_numbers=('NHWC', 'HWIO', 'NHWC'))
    h = jax.nn.relu(_ref_bn(h, g2, b2))
    h = jnp.einsum('nhwc,cd->nhwd', h, w3)
    h = _ref_bn(h, g3, b3)
    return jnp.transpose(jax.nn.relu(h + x), (0, 3, 1, 2))


def ref_forward_matched(x_nchw, params):
    """Same math with the kernel's numerics mirrored: bf16 MXU operands,
    f32 accumulation, bf16 inter-stage intermediates, one-pass batch stats
    computed from the f32 conv outputs before the bf16 rounding."""
    w1, g1, b1, w2, g2, b2, w3, g3, b3 = params
    bf, f32 = jnp.bfloat16, jnp.float32
    x = jnp.transpose(x_nchw, (0, 2, 3, 1)).astype(f32)

    def bn_scale_shift(h, g, b):
        m = h.reshape(-1, h.shape[-1])
        n = m.shape[0]
        mean = jnp.sum(m, axis=0) / n
        var = jnp.maximum(jnp.sum(m * m, axis=0) / n - mean * mean, 0.0)
        scale = g.reshape(-1) * lax.rsqrt(var + EPS)
        shift = b.reshape(-1) - mean * scale
        return scale, shift

    h1 = jnp.einsum('nhwc,cd->nhwd', x.astype(bf), w1.astype(bf),
                    preferred_element_type=f32)
    s1, t1 = bn_scale_shift(h1, g1, b1)
    a1 = jax.nn.relu(h1.astype(bf).astype(f32) * s1 + t1)
    h2 = lax.conv_general_dilated(a1.astype(bf), w2.astype(bf), (1, 1), 'SAME',
                                  dimension_numbers=('NHWC', 'HWIO', 'NHWC'),
                                  preferred_element_type=f32)
    s2, t2 = bn_scale_shift(h2, g2, b2)
    a2 = jax.nn.relu(h2.astype(bf).astype(f32) * s2 + t2)
    h3 = jnp.einsum('nhwc,cd->nhwd', a2.astype(bf), w3.astype(bf),
                    preferred_element_type=f32)
    s3, t3 = bn_scale_shift(h3, g3, b3)
    out = jax.nn.relu(h3.astype(bf).astype(f32) * s3 + t3 + x)
    return jnp.transpose(out, (0, 3, 1, 2))


# ---------------------------------------------------------------------------
# parameter init (mirrors the PyTorch module's weight shapes)
# ---------------------------------------------------------------------------
def init_params(key, in_channel, out_channel, groups=1, width_per_group=64):
    expansion = 4
    width = int(out_channel * (width_per_group / 64.0)) * groups
    cout = out_channel * expansion
    ks = jax.random.split(key, 9)
    w1 = 0.1 * jax.random.normal(ks[0], (in_channel, width), jnp.float32)      # 1x1
    w2 = 0.1 * jax.random.normal(ks[1], (3, 3, width, width), jnp.float32)     # HWIO
    w3 = 0.1 * jax.random.normal(ks[2], (width, cout), jnp.float32)            # 1x1
    g1 = jax.random.uniform(ks[3], (1, width), jnp.float32, 0.5, 1.5)
    b1 = 0.1 * jax.random.normal(ks[4], (1, width), jnp.float32)
    g2 = jax.random.uniform(ks[5], (1, width), jnp.float32, 0.5, 1.5)
    b2 = 0.1 * jax.random.normal(ks[6], (1, width), jnp.float32)
    g3 = jax.random.uniform(ks[7], (1, cout), jnp.float32, 0.5, 1.5)
    b3 = 0.1 * jax.random.normal(ks[8], (1, cout), jnp.float32)
    return (w1, g1, b1, w2, g2, b2, w3, g3, b3)


if __name__ == "__main__":
    # downsample=None requires in_channel == out_channel * expansion, stride=1.
    N, out_channel, H, W = 2, 4, 16, 16
    in_channel = out_channel * 4  # 16

    key = jax.random.PRNGKey(0)
    kx, kp = jax.random.split(key)
    x = jax.random.normal(kx, (N, in_channel, H, W), jnp.float32)
    params = init_params(kp, in_channel, out_channel)

    y = jax.block_until_ready(bottleneck_forward(x, params))
    y_ref = jax.block_until_ready(ref_forward_matched(x, params))
    y_f32 = jax.block_until_ready(ref_forward_f32(x, params))

    assert y.shape == (N, in_channel, H, W)
    assert bool(jnp.all(jnp.isfinite(y)))
    # check vs the numerics-matched reference (bf16 operands/intermediates, f32 acc)
    assert float(jnp.max(jnp.abs(y - y_ref))) < 1e-2, "mismatch vs matched reference"
    # coarse semantic sanity check vs pure-f32 math (bound covers bf16 rounding)
    assert float(jnp.max(jnp.abs(y - y_f32))) < 0.3, "mismatch vs f32 reference"

    print("KERNEL_OK")
</pallas_src>

<mosaic_0001>
module attributes {stable_mosaic.version = 11 : i64} {
  func.func @_conv1x1_stats_kernel(%arg0: i32, %arg1: memref<512x128xf32, #tpu.memory_space<vmem>>, %arg2: memref<128x128xbf16, #tpu.memory_space<vmem>>, %arg3: memref<512x128xbf16, #tpu.memory_space<vmem>>, %arg4: memref<1x2x128xf32, #tpu.memory_space<vmem>>) attributes {dimension_semantics = [#tpu.dimension_semantics<parallel>], iteration_bounds = array<i64: 1>, scalar_prefetch = 0 : i64, scratch_operands = 0 : i64, tpu.core_type = #tpu.core_type<tc>, window_params = [{transform_indices = @transform_0, window_bounds = array<i64: 512, 128>}, {pipeline_mode = #tpu.pipeline_mode<synchronous>, transform_indices = @transform_1, window_bounds = array<i64: 128, 128>}, {transform_indices = @transform_2, window_bounds = array<i64: 512, 128>}, {transform_indices = @transform_3, window_bounds = array<i64: 1, 2, 128>}]} {
    %c0 = arith.constant 0 : index
    %c0_0 = arith.constant 0 : index
    %0 = vector.load %arg1[%c0, %c0_0] : memref<512x128xf32, #tpu.memory_space<vmem>>, vector<512x128xf32>
    %1 = arith.truncf %0 : vector<512x128xf32> to vector<512x128xbf16>
    %c0_1 = arith.constant 0 : index
    %c0_2 = arith.constant 0 : index
    %2 = vector.load %arg2[%c0_1, %c0_2] : memref<128x128xbf16, #tpu.memory_space<vmem>>, vector<128x128xbf16>
    %cst = arith.constant dense<0.000000e+00> : vector<512x128xf32>
    %3 = tpu.matmul %1, %2, %cst {dimension_numbers = #tpu.dot_dimension_numbers<[1], [0], [0], [1], [0, 0, 1, 1], [], []>} : vector<512x128xbf16>, vector<128x128xbf16>, vector<512x128xf32> -> vector<512x128xf32>
    %4 = arith.truncf %3 : vector<512x128xf32> to vector<512x128xbf16>
    %c0_3 = arith.constant 0 : index
    %c0_4 = arith.constant 0 : index
    %5 = vector.load %arg3[%c0_3, %c0_4] : memref<512x128xbf16, #tpu.memory_space<vmem>>, vector<512x128xbf16>
    tpu.vector_store %arg3[%c0_3, %c0_4], %4 {strides = array<i32>} : memref<512x128xbf16, #tpu.memory_space<vmem>>, vector<512x128xbf16>,
    %cst_5 = arith.constant dense<0.000000e+00> : vector<128xf32>
    %6 = vector.multi_reduction <add>, %3, %cst_5 [0] : vector<512x128xf32> to vector<128xf32>
    %7 = vector.shape_cast %6 : vector<128xf32> to vector<1x128xf32>
    %8 = arith.mulf %3, %3 : vector<512x128xf32>
    %cst_6 = arith.constant dense<0.000000e+00> : vector<128xf32>
    %9 = vector.multi_reduction <add>, %8, %cst_6 [0] : vector<512x128xf32> to vector<128xf32>
    %10 = vector.shape_cast %9 : vector<128xf32> to vector<1x128xf32>
    %11 = tpu.concatenate %7, %10 in 0 : vector<1x128xf32>, vector<1x128xf32> -> vector<2x128xf32>
    %12 = vector.shape_cast %11 : vector<2x128xf32> to vector<1x2x128xf32>
    %c0_7 = arith.constant 0 : index
    %c0_8 = arith.constant 0 : index
    %c0_9 = arith.constant 0 : index
    %13 = vector.load %arg4[%c0_7, %c0_8, %c0_9] : memref<1x2x128xf32, #tpu.memory_space<vmem>>, vector<1x2x128xf32>
    tpu.vector_store %arg4[%c0_7, %c0_8, %c0_9], %12 {strides = array<i32>} : memref<1x2x128xf32, #tpu.memory_space<vmem>>, vector<1x2x128xf32>,
    return
  }
  func.func @transform_0(%arg0: i32) -> (i32, i32) {
    %c0_i32 = arith.constant 0 : i32
    %c0_i32_0 = arith.constant 0 : i32
    return %arg0, %c0_i32 : i32, i32
  }
  func.func @transform_1(%arg0: i32) -> (i32, i32) {
    %c0_i32 = arith.constant 0 : i32
    %c0_i32_0 = arith.constant 0 : i32
    %c0_i32_1 = arith.constant 0 : i32
    return %c0_i32, %c0_i32_0 : i32, i32
  }
  func.func @transform_2(%arg0: i32) -> (i32, i32) {
    %c0_i32 = arith.constant 0 : i32
    %c0_i32_0 = arith.constant 0 : i32
    return %arg0, %c0_i32 : i32, i32
  }
  func.func @transform_3(%arg0: i32) -> (i32, i32, i32) {
    %c0_i32 = arith.constant 0 : i32
    %c0_i32_0 = arith.constant 0 : i32
    %c0_i32_1 = arith.constant 0 : i32
    return %arg0, %c0_i32, %c0_i32_0 : i32, i32, i32
  }
}

module attributes {stable_mosaic.version = 11 : i64} {
  func.func @_bn_relu_conv3x3_stats_kernel(%arg0: i32, %arg1: i32, %arg2: memref<1x8x16x128xbf16, #tpu.memory_space<vmem>>, %arg3: memref<1x1x16x128xbf16, #tpu.memory_space<vmem>>, %arg4: memref<1x1x16x128xbf16, #tpu.memory_space<vmem>>, %arg5: memref<1x128xf32, #tpu.memory_space<vmem>>, %arg6: memref<1x128xf32, #tpu.memory_space<vmem>>, %arg7: memref<1152x128xbf16, #tpu.memory_space<vmem>>, %arg8: memref<1x8x16x128xbf16, #tpu.memory_space<vmem>>, %arg9: memref<1x2x128xf32, #tpu.memory_space<vmem>>, %arg10: memref<10x18x128xbf16, #tpu.memory_space<vmem>>) attributes {dimension_semantics = [#tpu.dimension_semantics<parallel>, #tpu.dimension_semantics<parallel>], iteration_bounds = array<i64: 2, 2>, scalar_prefetch = 0 : i64, scratch_operands = 1 : i64, tpu.core_type = #tpu.core_type<tc>, window_params = [{transform_indices = @transform_0, window_bounds = array<i64: 1, 8, 16, 128>}, {transform_indices = @transform_1, window_bounds = array<i64: 1, 1, 16, 128>}, {transform_indices = @transform_2, window_bounds = array<i64: 1, 1, 16, 128>}, {pipeline_mode = #tpu.pipeline_mode<synchronous>, transform_indices = @transform_3, window_bounds = array<i64: 1, 128>}, {pipeline_mode = #tpu.pipeline_mode<synchronous>, transform_indices = @transform_4, window_bounds = array<i64: 1, 128>}, {pipeline_mode = #tpu.pipeline_mode<synchronous>, transform_indices = @transform_5, window_bounds = array<i64: 1152, 128>}, {transform_indices = @transform_6, window_bounds = array<i64: 1, 8, 16, 128>}, {transform_indices = @transform_7, window_bounds = array<i64: 1, 2, 128>}]} {
    %c0_i32 = arith.constant 0 : i32
    %0 = arith.cmpi eq, %arg1, %c0_i32 : i32
    %c1_i32 = arith.constant 1 : i32
    %1 = arith.cmpi eq, %arg1, %c1_i32 : i32
    %c0 = arith.constant 0 : index
    %c0_0 = arith.constant 0 : index
    %2 = vector.load %arg5[%c0, %c0_0] : memref<1x128xf32, #tpu.memory_space<vmem>>, vector<1x128xf32>
    %c0_1 = arith.constant 0 : index
    %c0_2 = arith.constant 0 : index
    %3 = vector.load %arg6[%c0_1, %c0_2] : memref<1x128xf32, #tpu.memory_space<vmem>>, vector<1x128xf32>
    %cst = arith.constant 0.000000e+00 : bf16
    %4 = vector.broadcast %cst : bf16 to vector<10x1x128xbf16>
    %c0_3 = arith.constant 0 : index
    %c0_4 = arith.constant 0 : index
    %c0_5 = arith.constant 0 : index
    %5 = vector.load %arg10[%c0_3, %c0_4, %c0_5] : memref<10x18x128xbf16, #tpu.memory_space<vmem>>, vector<10x1x128xbf16>
    tpu.vector_store %arg10[%c0_3, %c0_4, %c0_5], %4 {strides = array<i32>} : memref<10x18x128xbf16, #tpu.memory_space<vmem>>, vector<10x1x128xbf16>,
    %c0_6 = arith.constant 0 : index
    %c17 = arith.constant 17 : index
    %c0_7 = arith.constant 0 : index
    %6 = vector.load %arg10[%c0_6, %c17, %c0_7] : memref<10x18x128xbf16, #tpu.memory_space<vmem>>, vector<10x1x128xbf16>
    tpu.vector_store %arg10[%c0_6, %c17, %c0_7], %4 {strides = array<i32>} : memref<10x18x128xbf16, #tpu.memory_space<vmem>>, vector<10x1x128xbf16>,
    %c0_8 = arith.constant 0 : index
    %c0_9 = arith.constant 0 : index
    %c0_10 = arith.constant 0 : index
    %c0_11 = arith.constant 0 : index
    %7 = vector.load %arg2[%c0_8, %c0_9, %c0_10, %c0_11] : memref<1x8x16x128xbf16, #tpu.memory_space<vmem>>, vector<1x8x16x128xbf16>
    %8 = vector.shape_cast %7 : vector<1x8x16x128xbf16> to vector<128x128xbf16>
    %9 = arith.extf %8 : vector<128x128xbf16> to vector<128x128xf32>
    %10 = vector.broadcast %2 : vector<1x128xf32> to vector<128x128xf32>
    %11 = arith.mulf %9, %10 : vector<128x128xf32>
    %12 = vector.broadcast %3 : vector<1x128xf32> to vector<128x128xf32>
    %13 = arith.addf %11, %12 : vector<128x128xf32>
    %cst_12 = arith.constant 0.000000e+00 : f32
    %14 = vector.broadcast %cst_12 : f32 to vector<128x128xf32>
    %15 = arith.maximumf %13, %14 : vector<128x128xf32>
    %16 = arith.truncf %15 : vector<128x128xf32> to vector<128x128xbf16>
    %17 = vector.shape_cast %16 : vector<128x128xbf16> to vector<8x16x128xbf16>
    %c1 = arith.constant 1 : index
    %c1_13 = arith.constant 1 : index
    %c0_14 = arith.constant 0 : index
    %18 = vector.load %arg10[%c1, %c1_13, %c0_14] : memref<10x18x128xbf16, #tpu.memory_space<vmem>>, vector<8x16x128xbf16>
    tpu.vector_store %arg10[%c1, %c1_13, %c0_14], %17 {strides = array<i32>} : memref<10x18x128xbf16, #tpu.memory_space<vmem>>, vector<8x16x128xbf16>,
    %c0_15 = arith.constant 0 : index
    %c0_16 = arith.constant 0 : index
    %c0_17 = arith.constant 0 : index
    %c0_18 = arith.constant 0 : index
    %19 = vector.load %arg3[%c0_15, %c0_16, %c0_17, %c0_18] : memref<1x1x16x128xbf16, #tpu.memory_space<vmem>>, vector<1x1x16x128xbf16>
    %20 = vector.shape_cast %19 : vector<1x1x16x128xbf16> to vector<16x128xbf16>
    %21 = arith.extf %20 : vector<16x128xbf16> to vector<16x128xf32>
    %22 = vector.broadcast %2 : vector<1x128xf32> to vector<16x128xf32>
    %23 = arith.mulf %21, %22 : vector<16x128xf32>
    %24 = vector.broadcast %3 : vector<1x128xf32> to vector<16x128xf32>
    %25 = arith.addf %23, %24 : vector<16x128xf32>
    %cst_19 = arith.constant 0.000000e+00 : f32
    %26 = vector.broadcast %cst_19 : f32 to vector<16x128xf32>
    %27 = arith.maximumf %25, %26 : vector<16x128xf32>
    %cst_20 = arith.constant 0.000000e+00 : f32
    %28 = vector.broadcast %cst_20 : f32 to vector<16x128xf32>
    %29 = arith.select %0, %28, %27 : vector<16x128xf32>
    %30 = arith.truncf %29 : vector<16x128xf32> to vector<16x128xbf16>
    %31 = vector.shape_cast %30 : vector<16x128xbf16> to vector<1x16x128xbf16>
    %c0_21 = arith.constant 0 : index
    %c1_22 = arith.constant 1 : index
    %c0_23 = arith.constant 0 : index
    %32 = vector.load %arg10[%c0_21, %c1_22, %c0_23] : memref<10x18x128xbf16, #tpu.memory_space<vmem>>, vector<1x16x128xbf16>
    tpu.vector_store %arg10[%c0_21, %c1_22, %c0_23], %31 {strides = array<i32>} : memref<10x18x128xbf16, #tpu.memory_space<vmem>>, vector<1x16x128xbf16>,
    %c0_24 = arith.constant 0 : index
    %c0_25 = arith.constant 0 : index
    %c0_26 = arith.constant 0 : index
    %c0_27 = arith.constant 0 : index
    %33 = vector.load %arg4[%c0_24, %c0_25, %c0_26, %c0_27] : memref<1x1x16x128xbf16, #tpu.memory_space<vmem>>, vector<1x1x16x128xbf16>
    %34 = vector.shape_cast %33 : vector<1x1x16x128xbf16> to vector<16x128xbf16>
    %35 = arith.extf %34 : vector<16x128xbf16> to vector<16x128xf32>
    %36 = vector.broadcast %2 : vector<1x128xf32> to vector<16x128xf32>
    %37 = arith.mulf %35, %36 : vector<16x128xf32>
    %38 = vector.broadcast %3 : vector<1x128xf32> to vector<16x128xf32>
    %39 = arith.addf %37, %38 : vector<16x128xf32>
    %cst_28 = arith.constant 0.000000e+00 : f32
    %40 = vector.broadcast %cst_28 : f32 to vector<16x128xf32>
    %41 = arith.maximumf %39, %40 : vector<16x128xf32>
    %cst_29 = arith.constant 0.000000e+00 : f32
    %42 = vector.broadcast %cst_29 : f32 to vector<16x128xf32>
    %43 = arith.select %1, %42, %41 : vector<16x128xf32>
    %44 = arith.truncf %43 : vector<16x128xf32> to vector<16x128xbf16>
    %45 = vector.shape_cast %44 : vector<16x128xbf16> to vector<1x16x128xbf16>
    %c9 = arith.constant 9 : index
    %c1_30 = arith.constant 1 : index
    %c0_31 = arith.constant 0 : index
    %46 = vector.load %arg10[%c9, %c1_30, %c0_31] : memref<10x18x128xbf16, #tpu.memory_space<vmem>>, vector<1x16x128xbf16>
    tpu.vector_store %arg10[%c9, %c1_30, %c0_31], %45 {strides = array<i32>} : memref<10x18x128xbf16, #tpu.memory_space<vmem>>, vector<1x16x128xbf16>,
    %cst_32 = arith.constant 0.000000e+00 : f32
    %47 = vector.broadcast %cst_32 : f32 to vector<128x128xf32>
    %c0_33 = arith.constant 0 : index
    %c0_34 = arith.constant 0 : index
    %c0_35 = arith.constant 0 : index
    %48 = vector.load %arg10[%c0_33, %c0_34, %c0_35] : memref<10x18x128xbf16, #tpu.memory_space<vmem>>, vector<8x16x128xbf16>
    %49 = vector.shape_cast %48 : vector<8x16x128xbf16> to vector<128x128xbf16>
    %c0_36 = arith.constant 0 : index
    %c0_37 = arith.constant 0 : index
    %50 = vector.load %arg7[%c0_36, %c0_37] : memref<1152x128xbf16, #tpu.memory_space<vmem>>, vector<128x128xbf16>
    %cst_38 = arith.constant dense<0.000000e+00> : vector<128x128xf32>
    %51 = tpu.matmul %49, %50, %cst_38 {dimension_numbers = #tpu.dot_dimension_numbers<[1], [0], [0], [1], [0, 0, 1, 1], [], []>} : vector<128x128xbf16>, vector<128x128xbf16>, vector<128x128xf32> -> vector<128x128xf32>
    %52 = arith.addf %47, %51 : vector<128x128xf32>
    %c0_39 = arith.constant 0 : index
    %c1_40 = arith.constant 1 : index
    %c0_41 = arith.constant 0 : index
    %53 = vector.load %arg10[%c0_39, %c1_40, %c0_41] : memref<10x18x128xbf16, #tpu.memory_space<vmem>>, vector<8x16x128xbf16>
    %54 = vector.shape_cast %53 : vector<8x16x128xbf16> to vector<128x128xbf16>
    %c128 = arith.constant 128 : index
    %c0_42 = arith.constant 0 : index
    %55 = vector.load %arg7[%c128, %c0_42] : memref<1152x128xbf16, #tpu.memory_space<vmem>>, vector<128x128xbf16>
    %cst_43 = arith.constant dense<0.000000e+00> : vector<128x128xf32>
    %56 = tpu.matmul %54, %55, %cst_43 {dimension_numbers = #tpu.dot_dimension_numbers<[1], [0], [0], [1], [0, 0, 1, 1], [], []>} : vector<128x128xbf16>, vector<128x128xbf16>, vector<128x128xf32> -> vector<128x128xf32>
    %57 = arith.addf %52, %56 : vector<128x128xf32>
    %c0_44 = arith.constant 0 : index
    %c2 = arith.constant 2 : index
    %c0_45 = arith.constant 0 : index
    %58 = vector.load %arg10[%c0_44, %c2, %c0_45] : memref<10x18x128xbf16, #tpu.memory_space<vmem>>, vector<8x16x128xbf16>
    %59 = vector.shape_cast %58 : vector<8x16x128xbf16> to vector<128x128xbf16>
    %c256 = arith.constant 256 : index
    %c0_46 = arith.constant 0 : index
    %60 = vector.load %arg7[%c256, %c0_46] : memref<1152x128xbf16, #tpu.memory_space<vmem>>, vector<128x128xbf16>
    %cst_47 = arith.constant dense<0.000000e+00> : vector<128x128xf32>
    %61 = tpu.matmul %59, %60, %cst_47 {dimension_numbers = #tpu.dot_dimension_numbers<[1], [0], [0], [1], [0, 0, 1, 1], [], []>} : vector<128x128xbf16>, vector<128x128xbf16>, vector<128x128xf32> -> vector<128x128xf32>
    %62 = arith.addf %57, %61 : vector<128x128xf32>
    %c1_48 = arith.constant 1 : index
    %c0_49 = arith.constant 0 : index
    %c0_50 = arith.constant 0 : index
    %63 = vector.load %arg10[%c1_48, %c0_49, %c0_50] : memref<10x18x128xbf16, #tpu.memory_space<vmem>>, vector<8x16x128xbf16>
    %64 = vector.shape_cast %63 : vector<8x16x128xbf16> to vector<128x128xbf16>
    %c384 = arith.constant 384 : index
    %c0_51 = arith.constant 0 : index
    %65 = vector.load %arg7[%c384, %c0_51] : memref<1152x128xbf16, #tpu.memory_space<vmem>>, vector<128x128xbf16>
    %cst_52 = arith.constant dense<0.000000e+00> : vector<128x128xf32>
    %66 = tpu.matmul %64, %65, %cst_52 {dimension_numbers = #tpu.dot_dimension_numbers<[1], [0], [0], [1], [0, 0, 1, 1], [], []>} : vector<128x128xbf16>, vector<128x128xbf16>, vector<128x128xf32> -> vector<128x128xf32>
    %67 = arith.addf %62, %66 : vector<128x128xf32>
    %c1_53 = arith.constant 1 : index
    %c1_54 = arith.constant 1 : index
    %c0_55 = arith.constant 0 : index
    %68 = vector.load %arg10[%c1_53, %c1_54, %c0_55] : memref<10x18x128xbf16, #tpu.memory_space<vmem>>, vector<8x16x128xbf16>
    %69 = vector.shape_cast %68 : vector<8x16x128xbf16> to vector<128x128xbf16>
    %c512 = arith.constant 512 : index
    %c0_56 = arith.constant 0 : index
    %70 = vector.load %arg7[%c512, %c0_56] : memref<1152x128xbf16, #tpu.memory_space<vmem>>, vector<128x128xbf16>
    %cst_57 = arith.constant dense<0.000000e+00> : vector<128x128xf32>
    %71 = tpu.matmul %69, %70, %cst_57 {dimension_numbers = #tpu.dot_dimension_numbers<[1], [0], [0], [1], [0, 0, 1, 1], [], []>} : vector<128x128xbf16>, vector<128x128xbf16>, vector<128x128xf32> -> vector<128x128xf32>
    %72 = arith.addf %67, %71 : vector<128x128xf32>
    %c1_58 = arith.constant 1 : index
    %c2_59 = arith.constant 2 : index
    %c0_60 = arith.constant 0 : index
    %73 = vector.load %arg10[%c1_58, %c2_59, %c0_60] : memref<10x18x128xbf16, #tpu.memory_space<vmem>>, vector<8x16x128xbf16>
    %74 = vector.shape_cast %73 : vector<8x16x128xbf16> to vector<128x128xbf16>
    %c640 = arith.constant 640 : index
    %c0_61 = arith.constant 0 : index
    %75 = vector.load %arg7[%c640, %c0_61] : memref<1152x128xbf16, #tpu.memory_space<vmem>>, vector<128x128xbf16>
    %cst_62 = arith.constant dense<0.000000e+00> : vector<128x128xf32>
    %76 = tpu.matmul %74, %75, %cst_62 {dimension_numbers = #tpu.dot_dimension_numbers<[1], [0], [0], [1], [0, 0, 1, 1], [], []>} : vector<128x128xbf16>, vector<128x128xbf16>, vector<128x128xf32> -> vector<128x128xf32>
    %77 = arith.addf %72, %76 : vector<128x128xf32>
    %c2_63 = arith.constant 2 : index
    %c0_64 = arith.constant 0 : index
    %c0_65 = arith.constant 0 : index
    %78 = vector.load %arg10[%c2_63, %c0_64, %c0_65] : memref<10x18x128xbf16, #tpu.memory_space<vmem>>, vector<8x16x128xbf16>
    %79 = vector.shape_cast %78 : vector<8x16x128xbf16> to vector<128x128xbf16>
    %c768 = arith.constant 768 : index
    %c0_66 = arith.constant 0 : index
    %80 = vector.load %arg7[%c768, %c0_66] : memref<1152x128xbf16, #tpu.memory_space<vmem>>, vector<128x128xbf16>
    %cst_67 = arith.constant dense<0.000000e+00> : vector<128x128xf32>
    %81 = tpu.matmul %79, %80, %cst_67 {dimension_numbers = #tpu.dot_dimension_numbers<[1], [0], [0], [1], [0, 0, 1, 1], [], []>} : vector<128x128xbf16>, vector<128x128xbf16>, vector<128x128xf32> -> vector<128x128xf32>
    %82 = arith.addf %77, %81 : vector<128x128xf32>
    %c2_68 = arith.constant 2 : index
    %c1_69 = arith.constant 1 : index
    %c0_70 = arith.constant 0 : index
    %83 = vector.load %arg10[%c2_68, %c1_69, %c0_70] : memref<10x18x128xbf16, #tpu.memory_space<vmem>>, vector<8x16x128xbf16>
    %84 = vector.shape_cast %83 : vector<8x16x128xbf16> to vector<128x128xbf16>
    %c896 = arith.constant 896 : index
    %c0_71 = arith.constant 0 : index
    %85 = vector.load %arg7[%c896, %c0_71] : memref<1152x128xbf16, #tpu.memory_space<vmem>>, vector<128x128xbf16>
    %cst_72 = arith.constant dense<0.000000e+00> : vector<128x128xf32>
    %86 = tpu.matmul %84, %85, %cst_72 {dimension_numbers = #tpu.dot_dimension_numbers<[1], [0], [0], [1], [0, 0, 1, 1], [], []>} : vector<128x128xbf16>, vector<128x128xbf16>, vector<128x128xf32> -> vector<128x128xf32>
    %87 = arith.addf %82, %86 : vector<128x128xf32>
    %c2_73 = arith.constant 2 : index
    %c2_74 = arith.constant 2 : index
    %c0_75 = arith.constant 0 : index
    %88 = vector.load %arg10[%c2_73, %c2_74, %c0_75] : memref<10x18x128xbf16, #tpu.memory_space<vmem>>, vector<8x16x128xbf16>
    %89 = vector.shape_cast %88 : vector<8x16x128xbf16> to vector<128x128xbf16>
    %c1024 = arith.constant 1024 : index
    %c0_76 = arith.constant 0 : index
    %90 = vector.load %arg7[%c1024, %c0_76] : memref<1152x128xbf16, #tpu.memory_space<vmem>>, vector<128x128xbf16>
    %cst_77 = arith.constant dense<0.000000e+00> : vector<128x128xf32>
    %91 = tpu.matmul %89, %90, %cst_77 {dimension_numbers = #tpu.dot_dimension_numbers<[1], [0], [0], [1], [0, 0, 1, 1], [], []>} : vector<128x128xbf16>, vector<128x128xbf16>, vector<128x128xf32> -> vector<128x128xf32>
    %92 = arith.addf %87, %91 : vector<128x128xf32>
    %93 = vector.shape_cast %92 : vector<128x128xf32> to vector<1x8x16x128xf32>
    %94 = arith.truncf %93 : vector<1x8x16x128xf32> to vector<1x8x16x128xbf16>
    %c0_78 = arith.constant 0 : index
    %c0_79 = arith.constant 0 : index
    %c0_80 = arith.constant 0 : index
    %c0_81 = arith.constant 0 : index
    %95 = vector.load %arg8[%c0_78, %c0_79, %c0_80, %c0_81] : memref<1x8x16x128xbf16, #tpu.memory_space<vmem>>, vector<1x8x16x128xbf16>
    tpu.vector_store %arg8[%c0_78, %c0_79, %c0_80, %c0_81], %94 {strides = array<i32>} : memref<1x8x16x128xbf16, #tpu.memory_space<vmem>>, vector<1x8x16x128xbf16>,
    %cst_82 = arith.constant dense<0.000000e+00> : vector<128xf32>
    %96 = vector.multi_reduction <add>, %92, %cst_82 [0] : vector<128x128xf32> to vector<128xf32>
    %97 = vector.shape_cast %96 : vector<128xf32> to vector<1x128xf32>
    %98 = arith.mulf %92, %92 : vector<128x128xf32>
    %cst_83 = arith.constant dense<0.000000e+00> : vector<128xf32>
    %99 = vector.multi_reduction <add>, %98, %cst_83 [0] : vector<128x128xf32> to vector<128xf32>
    %100 = vector.shape_cast %99 : vector<128xf32> to vector<1x128xf32>
    %101 = tpu.concatenate %97, %100 in 0 : vector<1x128xf32>, vector<1x128xf32> -> vector<2x128xf32>
    %102 = vector.shape_cast %101 : vector<2x128xf32> to vector<1x2x128xf32>
    %c0_84 = arith.constant 0 : index
    %c0_85 = arith.constant 0 : index
    %c0_86 = arith.constant 0 : index
    %103 = vector.load %arg9[%c0_84, %c0_85, %c0_86] : memref<1x2x128xf32, #tpu.memory_space<vmem>>, vector<1x2x128xf32>
    tpu.vector_store %arg9[%c0_84, %c0_85, %c0_86], %102 {strides = array<i32>} : memref<1x2x128xf32, #tpu.memory_space<vmem>>, vector<1x2x128xf32>,
    return
  }
  func.func @transform_0(%arg0: i32, %arg1: i32) -> (i32, i32, i32, i32) {
    %c0_i32 = arith.constant 0 : i32
    %c0_i32_0 = arith.constant 0 : i32
    %c0_i32_1 = arith.constant 0 : i32
    return %arg0, %arg1, %c0_i32, %c0_i32_0 : i32, i32, i32, i32
  }
  func.func @transform_1(%arg0: i32, %arg1: i32) -> (i32, i32, i32, i32) {
    %c8_i32 = arith.constant 8 : i32
    %0 = arith.muli %arg1, %c8_i32 : i32
    %c1_i32 = arith.constant 1 : i32
    %1 = arith.subi %0, %c1_i32 : i32
    %c0_i32 = arith.constant 0 : i32
    %2 = arith.maxsi %1, %c0_i32 : i32
    %c0_i32_0 = arith.constant 0 : i32
    %c0_i32_1 = arith.constant 0 : i32
    %c0_i32_2 = arith.constant 0 : i32
    return %arg0, %2, %c0_i32_0, %c0_i32_1 : i32, i32, i32, i32
  }
  func.func @transform_2(%arg0: i32, %arg1: i32) -> (i32, i32, i32, i32) {
    %c8_i32 = arith.constant 8 : i32
    %0 = arith.muli %arg1, %c8_i32 : i32
    %c8_i32_0 = arith.constant 8 : i32
    %1 = arith.addi %0, %c8_i32_0 : i32
    %c15_i32 = arith.constant 15 : i32
    %2 = arith.minsi %1, %c15_i32 : i32
    %c0_i32 = arith.constant 0 : i32
    %c0_i32_1 = arith.constant 0 : i32
    %c0_i32_2 = arith.constant 0 : i32
    return %arg0, %2, %c0_i32, %c0_i32_1 : i32, i32, i32, i32
  }
  func.func @transform_3(%arg0: i32, %arg1: i32) -> (i32, i32) {
    %c0_i32 = arith.constant 0 : i32
    %c0_i32_0 = arith.constant 0 : i32
    %c0_i32_1 = arith.constant 0 : i32
    return %c0_i32, %c0_i32_0 : i32, i32
  }
  func.func @transform_4(%arg0: i32, %arg1: i32) -> (i32, i32) {
    %c0_i32 = arith.constant 0 : i32
    %c0_i32_0 = arith.constant 0 : i32
    %c0_i32_1 = arith.constant 0 : i32
    return %c0_i32, %c0_i32_0 : i32, i32
  }
  func.func @transform_5(%arg0: i32, %arg1: i32) -> (i32, i32) {
    %c0_i32 = arith.constant 0 : i32
    %c0_i32_0 = arith.constant 0 : i32
    %c0_i32_1 = arith.constant 0 : i32
    return %c0_i32, %c0_i32_0 : i32, i32
  }
  func.func @transform_6(%arg0: i32, %arg1: i32) -> (i32, i32, i32, i32) {
    %c0_i32 = arith.constant 0 : i32
    %c0_i32_0 = arith.constant 0 : i32
    %c0_i32_1 = arith.constant 0 : i32
    return %arg0, %arg1, %c0_i32, %c0_i32_0 : i32, i32, i32, i32
  }
  func.func @transform_7(%arg0: i32, %arg1: i32) -> (i32, i32, i32) {
    %c2_i32 = arith.constant 2 : i32
    %0 = arith.muli %arg0, %c2_i32 : i32
    %1 = arith.addi %0, %arg1 : i32
    %c0_i32 = arith.constant 0 : i32
    %c0_i32_0 = arith.constant 0 : i32
    %c0_i32_1 = arith.constant 0 : i32
    return %1, %c0_i32, %c0_i32_0 : i32, i32, i32
  }
}

module attributes {stable_mosaic.version = 11 : i64} {
  func.func @_bn_relu_conv1x1_stats_kernel(%arg0: i32, %arg1: memref<512x128xbf16, #tpu.memory_space<vmem>>, %arg2: memref<1x128xf32, #tpu.memory_space<vmem>>, %arg3: memref<1x128xf32, #tpu.memory_space<vmem>>, %arg4: memref<128x128xbf16, #tpu.memory_space<vmem>>, %arg5: memref<512x128xbf16, #tpu.memory_space<vmem>>, %arg6: memref<1x2x128xf32, #tpu.memory_space<vmem>>) attributes {dimension_semantics = [#tpu.dimension_semantics<parallel>], iteration_bounds = array<i64: 1>, scalar_prefetch = 0 : i64, scratch_operands = 0 : i64, tpu.core_type = #tpu.core_type<tc>, window_params = [{transform_indices = @transform_0, window_bounds = array<i64: 512, 128>}, {pipeline_mode = #tpu.pipeline_mode<synchronous>, transform_indices = @transform_1, window_bounds = array<i64: 1, 128>}, {pipeline_mode = #tpu.pipeline_mode<synchronous>, transform_indices = @transform_2, window_bounds = array<i64: 1, 128>}, {pipeline_mode = #tpu.pipeline_mode<synchronous>, transform_indices = @transform_3, window_bounds = array<i64: 128, 128>}, {transform_indices = @transform_4, window_bounds = array<i64: 512, 128>}, {transform_indices = @transform_5, window_bounds = array<i64: 1, 2, 128>}]} {
    %c0 = arith.constant 0 : index
    %c0_0 = arith.constant 0 : index
    %0 = vector.load %arg1[%c0, %c0_0] : memref<512x128xbf16, #tpu.memory_space<vmem>>, vector<512x128xbf16>
    %1 = arith.extf %0 : vector<512x128xbf16> to vector<512x128xf32>
    %c0_1 = arith.constant 0 : index
    %c0_2 = arith.constant 0 : index
    %2 = vector.load %arg2[%c0_1, %c0_2] : memref<1x128xf32, #tpu.memory_space<vmem>>, vector<1x128xf32>
    %3 = vector.broadcast %2 : vector<1x128xf32> to vector<512x128xf32>
    %4 = arith.mulf %1, %3 : vector<512x128xf32>
    %c0_3 = arith.constant 0 : index
    %c0_4 = arith.constant 0 : index
    %5 = vector.load %arg3[%c0_3, %c0_4] : memref<1x128xf32, #tpu.memory_space<vmem>>, vector<1x128xf32>
    %6 = vector.broadcast %5 : vector<1x128xf32> to vector<512x128xf32>
    %7 = arith.addf %4, %6 : vector<512x128xf32>
    %cst = arith.constant 0.000000e+00 : f32
    %8 = vector.broadcast %cst : f32 to vector<512x128xf32>
    %9 = arith.maximumf %7, %8 : vector<512x128xf32>
    %10 = arith.truncf %9 : vector<512x128xf32> to vector<512x128xbf16>
    %c0_5 = arith.constant 0 : index
    %c0_6 = arith.constant 0 : index
    %11 = vector.load %arg4[%c0_5, %c0_6] : memref<128x128xbf16, #tpu.memory_space<vmem>>, vector<128x128xbf16>
    %cst_7 = arith.constant dense<0.000000e+00> : vector<512x128xf32>
    %12 = tpu.matmul %10, %11, %cst_7 {dimension_numbers = #tpu.dot_dimension_numbers<[1], [0], [0], [1], [0, 0, 1, 1], [], []>} : vector<512x128xbf16>, vector<128x128xbf16>, vector<512x128xf32> -> vector<512x128xf32>
    %13 = arith.truncf %12 : vector<512x128xf32> to vector<512x128xbf16>
    %c0_8 = arith.constant 0 : index
    %c0_9 = arith.constant 0 : index
    %14 = vector.load %arg5[%c0_8, %c0_9] : memref<512x128xbf16, #tpu.memory_space<vmem>>, vector<512x128xbf16>
    tpu.vector_store %arg5[%c0_8, %c0_9], %13 {strides = array<i32>} : memref<512x128xbf16, #tpu.memory_space<vmem>>, vector<512x128xbf16>,
    %cst_10 = arith.constant dense<0.000000e+00> : vector<128xf32>
    %15 = vector.multi_reduction <add>, %12, %cst_10 [0] : vector<512x128xf32> to vector<128xf32>
    %16 = vector.shape_cast %15 : vector<128xf32> to vector<1x128xf32>
    %17 = arith.mulf %12, %12 : vector<512x128xf32>
    %cst_11 = arith.constant dense<0.000000e+00> : vector<128xf32>
    %18 = vector.multi_reduction <add>, %17, %cst_11 [0] : vector<512x128xf32> to vector<128xf32>
    %19 = vector.shape_cast %18 : vector<128xf32> to vector<1x128xf32>
    %20 = tpu.concatenate %16, %19 in 0 : vector<1x128xf32>, vector<1x128xf32> -> vector<2x128xf32>
    %21 = vector.shape_cast %20 : vector<2x128xf32> to vector<1x2x128xf32>
    %c0_12 = arith.constant 0 : index
    %c0_13 = arith.constant 0 : index
    %c0_14 = arith.constant 0 : index
    %22 = vector.load %arg6[%c0_12, %c0_13, %c0_14] : memref<1x2x128xf32, #tpu.memory_space<vmem>>, vector<1x2x128xf32>
    tpu.vector_store %arg6[%c0_12, %c0_13, %c0_14], %21 {strides = array<i32>} : memref<1x2x128xf32, #tpu.memory_space<vmem>>, vector<1x2x128xf32>,
    return
  }
  func.func @transform_0(%arg0: i32) -> (i32, i32) {
    %c0_i32 = arith.constant 0 : i32
    %c0_i32_0 = arith.constant 0 : i32
    return %arg0, %c0_i32 : i32, i32
  }
  func.func @transform_1(%arg0: i32) -> (i32, i32) {
    %c0_i32 = arith.constant 0 : i32
    %c0_i32_0 = arith.constant 0 : i32
    %c0_i32_1 = arith.constant 0 : i32
    return %c0_i32, %c0_i32_0 : i32, i32
  }
  func.func @transform_2(%arg0: i32) -> (i32, i32) {
    %c0_i32 = arith.constant 0 : i32
    %c0_i32_0 = arith.constant 0 : i32
    %c0_i32_1 = arith.constant 0 : i32
    return %c0_i32, %c0_i32_0 : i32, i32
  }
  func.func @transform_3(%arg0: i32) -> (i32, i32) {
    %c0_i32 = arith.constant 0 : i32
    %c0_i32_0 = arith.constant 0 : i32
    %c0_i32_1 = arith.constant 0 : i32
    return %c0_i32, %c0_i32_0 : i32, i32
  }
  func.func @transform_4(%arg0: i32) -> (i32, i32) {
    %c0_i32 = arith.constant 0 : i32
    %c0_i32_0 = arith.constant 0 : i32
    return %arg0, %c0_i32 : i32, i32
  }
  func.func @transform_5(%arg0: i32) -> (i32, i32, i32) {
    %c0_i32 = arith.constant 0 : i32
    %c0_i32_0 = arith.constant 0 : i32
    %c0_i32_1 = arith.constant 0 : i32
    return %arg0, %c0_i32, %c0_i32_0 : i32, i32, i32
  }
}

module attributes {stable_mosaic.version = 11 : i64} {
  func.func @_bn_add_relu_kernel(%arg0: i32, %arg1: memref<512x128xbf16, #tpu.memory_space<vmem>>, %arg2: memref<1x128xf32, #tpu.memory_space<vmem>>, %arg3: memref<1x128xf32, #tpu.memory_space<vmem>>, %arg4: memref<512x128xf32, #tpu.memory_space<vmem>>, %arg5: memref<512x128xf32, #tpu.memory_space<vmem>>) attributes {dimension_semantics = [#tpu.dimension_semantics<parallel>], iteration_bounds = array<i64: 1>, scalar_prefetch = 0 : i64, scratch_operands = 0 : i64, tpu.core_type = #tpu.core_type<tc>, window_params = [{transform_indices = @transform_0, window_bounds = array<i64: 512, 128>}, {pipeline_mode = #tpu.pipeline_mode<synchronous>, transform_indices = @transform_1, window_bounds = array<i64: 1, 128>}, {pipeline_mode = #tpu.pipeline_mode<synchronous>, transform_indices = @transform_2, window_bounds = array<i64: 1, 128>}, {transform_indices = @transform_3, window_bounds = array<i64: 512, 128>}, {transform_indices = @transform_4, window_bounds = array<i64: 512, 128>}]} {
    %c0 = arith.constant 0 : index
    %c0_0 = arith.constant 0 : index
    %0 = vector.load %arg1[%c0, %c0_0] : memref<512x128xbf16, #tpu.memory_space<vmem>>, vector<512x128xbf16>
    %1 = arith.extf %0 : vector<512x128xbf16> to vector<512x128xf32>
    %c0_1 = arith.constant 0 : index
    %c0_2 = arith.constant 0 : index
    %2 = vector.load %arg2[%c0_1, %c0_2] : memref<1x128xf32, #tpu.memory_space<vmem>>, vector<1x128xf32>
    %3 = vector.broadcast %2 : vector<1x128xf32> to vector<512x128xf32>
    %4 = arith.mulf %1, %3 : vector<512x128xf32>
    %c0_3 = arith.constant 0 : index
    %c0_4 = arith.constant 0 : index
    %5 = vector.load %arg3[%c0_3, %c0_4] : memref<1x128xf32, #tpu.memory_space<vmem>>, vector<1x128xf32>
    %6 = vector.broadcast %5 : vector<1x128xf32> to vector<512x128xf32>
    %7 = arith.addf %4, %6 : vector<512x128xf32>
    %c0_5 = arith.constant 0 : index
    %c0_6 = arith.constant 0 : index
    %8 = vector.load %arg4[%c0_5, %c0_6] : memref<512x128xf32, #tpu.memory_space<vmem>>, vector<512x128xf32>
    %9 = arith.addf %7, %8 : vector<512x128xf32>
    %cst = arith.constant 0.000000e+00 : f32
    %10 = vector.broadcast %cst : f32 to vector<512x128xf32>
    %11 = arith.maximumf %9, %10 : vector<512x128xf32>
    %c0_7 = arith.constant 0 : index
    %c0_8 = arith.constant 0 : index
    %12 = vector.load %arg5[%c0_7, %c0_8] : memref<512x128xf32, #tpu.memory_space<vmem>>, vector<512x128xf32>
    tpu.vector_store %arg5[%c0_7, %c0_8], %11 {strides = array<i32>} : memref<512x128xf32, #tpu.memory_space<vmem>>, vector<512x128xf32>,
    return
  }
  func.func @transform_0(%arg0: i32) -> (i32, i32) {
    %c0_i32 = arith.constant 0 : i32
    %c0_i32_0 = arith.constant 0 : i32
    return %arg0, %c0_i32 : i32, i32
  }
  func.func @transform_1(%arg0: i32) -> (i32, i32) {
    %c0_i32 = arith.constant 0 : i32
    %c0_i32_0 = arith.constant 0 : i32
    %c0_i32_1 = arith.constant 0 : i32
    return %c0_i32, %c0_i32_0 : i32, i32
  }
  func.func @transform_2(%arg0: i32) -> (i32, i32) {
    %c0_i32 = arith.constant 0 : i32
    %c0_i32_0 = arith.constant 0 : i32
    %c0_i32_1 = arith.constant 0 : i32
    return %c0_i32, %c0_i32_0 : i32, i32
  }
  func.func @transform_3(%arg0: i32) -> (i32, i32) {
    %c0_i32 = arith.constant 0 : i32
    %c0_i32_0 = arith.constant 0 : i32
    return %arg0, %c0_i32 : i32, i32
  }
  func.func @transform_4(%arg0: i32) -> (i32, i32) {
    %c0_i32 = arith.constant 0 : i32
    %c0_i32_0 = arith.constant 0 : i32
    return %arg0, %c0_i32 : i32, i32
  }
}

</mosaic_0001>

<bundles_post_ra>
// kernel: bottleneck_forward.7
= control target key start
LH: loop header
LB: loop body
LE: loop exit
PB: predicated region body
PF: predicated region fallthrough
CT: control target
= control target key end

     0   :  { %s1351_s0 = inlined_call_operand.vmem [shape: bf16[512,128], index: 0, kind: input, shape index: {}]   ;;  %s1352_s1 = inlined_call_operand.vmem [shape: f32[1,128], index: 1, kind: input, shape index: {}]   ;;  %s1353_s2 = inlined_call_operand.vmem [shape: f32[1,128], index: 2, kind: input, shape index: {}]   ;;  %s1354_s3 = inlined_call_operand.vmem [shape: f32[512,128], index: 3, kind: input, shape index: {}]   ;;  %s1355_s4 = inlined_call_operand.vmem [shape: f32[512,128], index: 4, kind: output, shape index: {}]  }
   0x1   :  { %v550_v0 = vld [vmem:[%s1351_s0] sm:$0xff]   ;;  %v677_v4 = vld [vmem:[%s1351_s0 + $0x8] sm:$0xff]   ;;  %v678_v8 = vld [vmem:[%s1351_s0 + $0x10] sm:$0xff]  }
   0x2   :  { %v739_v1 = vld [vmem:[%s1352_s1] ss:$0 sm:$0xff]  ;;  %v551_v2 = vunpack.c.l.bf16 %v550_v0  ;;  %v552_v3 = vunpack.c.h.bf16 %v550_v0  ;;  %v555_v6 = vunpack.c.l.bf16 %v677_v4  ;;  %v556_v7 = vunpack.c.h.bf16 %v677_v4  ;;  %v679_v13 = vld [vmem:[%s1351_s0 + $0x18] sm:$0xff]   ;;  %v288_v15 = vld [vmem:[%s1354_s3 + $0x8] sm:$0xff] }
   0x3   :  { %v747_v5 = vld [vmem:[%s1353_s2] ss:$0 sm:$0xff]  ;;  %v559_v11 = vunpack.c.l.bf16 %v678_v8  ;;  %v560_v12 = vunpack.c.h.bf16 %v678_v8  ;;  %v563_v18 = vunpack.c.l.bf16 %v679_v13  ;;  %v564_v19 = vunpack.c.h.bf16 %v679_v13  ;;  %v289_v22 = vld [vmem:[%s1354_s3 + $0x10] sm:$0xff]  ;;  %v290_v23 = vld [vmem:[%s1354_s3 + $0x18] sm:$0xff] }
   0x4   :  { %v152_v9 = vmul.f32 %v551_v2, %v739_v1  ;;  %v153_v10 = vmul.f32 %v552_v3, %v739_v1  ;;  %v287_v14 = vld [vmem:[%s1354_s3] sm:$0xff]  ;;  %v154_v16 = vmul.f32 %v555_v6, %v739_v1  ;;  %v155_v17 = vmul.f32 %v556_v7, %v739_v1  ;;  %v292_v29 = vld [vmem:[%s1354_s3 + $0x28] sm:$0xff]  ;;  %v293_v36 = vld [vmem:[%s1354_s3 + $0x30] sm:$0xff] }
   0x5   :  { %v156_v24 = vmul.f32 %v559_v11, %v739_v1  ;;  %v157_v25 = vmul.f32 %v560_v12, %v739_v1  ;;  %v291_v28 = vld [vmem:[%s1354_s3 + $0x20] sm:$0xff]  ;;  %v158_v30 = vmul.f32 %v563_v18, %v739_v1  ;;  %v159_v31 = vmul.f32 %v564_v19, %v739_v1  ;;  %v294_v37 = vld [vmem:[%s1354_s3 + $0x38] sm:$0xff]  ;;  %v681_v47 = vld [vmem:[%s1351_s0 + $0x28] sm:$0xff]  }
   0x6   :  { %v223_v20 = vadd.f32 %v747_v5, %v152_v9  ;;  %v224_v21 = vadd.f32 %v747_v5, %v153_v10  ;;  %v225_v26 = vadd.f32 %v747_v5, %v154_v16  ;;  %v226_v27 = vadd.f32 %v747_v5, %v155_v17  ;;  %v680_v42 = vld [vmem:[%s1351_s0 + $0x20] sm:$0xff]   ;;  %v682_v52 = vld [vmem:[%s1351_s0 + $0x30] sm:$0xff]   ;;  %v683_v57 = vld [vmem:[%s1351_s0 + $0x38] sm:$0xff]  }
   0x7   :  { %v227_v34 = vadd.f32 %v747_v5, %v156_v24  ;;  %v228_v35 = vadd.f32 %v747_v5, %v157_v25  ;;  %v229_v40 = vadd.f32 %v747_v5, %v158_v30  ;;  %v230_v41 = vadd.f32 %v747_v5, %v159_v31  ;;  %v295_v3 = vld [vmem:[%s1354_s3 + $0x40] sm:$0xff]  ;;  %v296_v4 = vld [vmem:[%s1354_s3 + $0x48] sm:$0xff]  ;;  %v297_v12 = vld [vmem:[%s1354_s3 + $0x50] sm:$0xff] }
   0x8   :  { %v351_v32 = vadd.f32 %v287_v14, %v223_v20  ;;  %v352_v33 = vadd.f32 %v288_v15, %v224_v21  ;;  %v353_v38 = vadd.f32 %v289_v22, %v225_v26  ;;  %v354_v39 = vadd.f32 %v290_v23, %v226_v27  ;;  %v298_v13 = vld [vmem:[%s1354_s3 + $0x58] sm:$0xff]  ;;  %v299_v18 = vld [vmem:[%s1354_s3 + $0x60] sm:$0xff]  ;;  %v300_v19 = vld [vmem:[%s1354_s3 + $0x68] sm:$0xff] }
   0x9   :  { %v355_v45 = vadd.f32 %v291_v28, %v227_v34  ;;  %v356_v46 = vadd.f32 %v292_v29, %v228_v35  ;;  %v357_v50 = vadd.f32 %v293_v36, %v229_v40  ;;  %v358_v51 = vadd.f32 %v294_v37, %v230_v41  ;;  %v301_v26 = vld [vmem:[%s1354_s3 + $0x70] sm:$0xff]  ;;  %v302_v27 = vld [vmem:[%s1354_s3 + $0x78] sm:$0xff]  ;;  %v685_v37 = vld [vmem:[%s1351_s0 + $0x48] sm:$0xff]  }
   0xa   :  { %v415_v43 = vmax.f32 %v351_v32, 0.0  ;;  %v416_v44 = vmax.f32 %v352_v33, 0.0  ;;  %v417_v48 = vmax.f32 %v353_v38, 0.0  ;;  %v418_v49 = vmax.f32 %v354_v39, 0.0  ;;  %v684_v32 = vld [vmem:[%s1351_s0 + $0x40] sm:$0xff]  }
   0xb   :  { %v419_v53 = vmax.f32 %v355_v45, 0.0  ;;  %v420_v54 = vmax.f32 %v356_v46, 0.0  ;;  %v567_v55 = vunpack.c.l.bf16 %v680_v42  ;;  %v568_v56 = vunpack.c.h.bf16 %v680_v42  ;;  %v686_v42 = vld [vmem:[%s1351_s0 + $0x50] sm:$0xff]  }
   0xc   :  { %479 = vst [vmem:[%s1355_s4] sm:$0xff] %v415_v43  ;;  %480 = vst [vmem:[%s1355_s4 + $0x8] sm:$0xff] %v416_v44  ;;  %v421_v58 = vmax.f32 %v357_v50, 0.0  ;;  %v422_v59 = vmax.f32 %v358_v51, 0.0  ;;  %v571_v60 = vunpack.c.l.bf16 %v681_v47  ;;  %v572_v61 = vunpack.c.h.bf16 %v681_v47  ;;  %v687_v47 = vld [vmem:[%s1351_s0 + $0x58] sm:$0xff]  }
   0xd   :  { %481 = vst [vmem:[%s1355_s4 + $0x10] sm:$0xff] %v417_v48  ;;  %482 = vst [vmem:[%s1355_s4 + $0x18] sm:$0xff] %v418_v49  ;;  %v160_v62 = vmul.f32 %v567_v55, %v739_v1  ;;  %v161_v63 = vmul.f32 %v568_v56, %v739_v1  ;;  %v575_v0 = vunpack.c.l.bf16 %v682_v52  ;;  %v576_v2 = vunpack.c.h.bf16 %v682_v52  ;;  %v303_v56 = vld [vmem:[%s1354_s3 + $0x80] sm:$0xff] }
   0xe   :  { %483 = vst [vmem:[%s1355_s4 + $0x20] sm:$0xff] %v419_v53  ;;  %484 = vst [vmem:[%s1355_s4 + $0x28] sm:$0xff] %v420_v54  ;;  %v162_v6 = vmul.f32 %v571_v60, %v739_v1  ;;  %v163_v7 = vmul.f32 %v572_v61, %v739_v1  ;;  %v579_v8 = vunpack.c.l.bf16 %v683_v57  ;;  %v580_v9 = vunpack.c.h.bf16 %v683_v57  ;;  %v304_v57 = vld [vmem:[%s1354_s3 + $0x88] sm:$0xff] }
   0xf   :  { %485 = vst [vmem:[%s1355_s4 + $0x30] sm:$0xff] %v421_v58  ;;  %486 = vst [vmem:[%s1355_s4 + $0x38] sm:$0xff] %v422_v59  ;;  %v231_v10 = vadd.f32 %v747_v5, %v160_v62  ;;  %v232_v11 = vadd.f32 %v747_v5, %v161_v63  ;;  %v164_v14 = vmul.f32 %v575_v0, %v739_v1  ;;  %v583_v45 = vunpack.c.l.bf16 %v684_v32  ;;  %v305_v0 = vld [vmem:[%s1354_s3 + $0x90] sm:$0xff] }
  0x10   :  { %v165_v15 = vmul.f32 %v576_v2, %v739_v1  ;;  %v233_v16 = vadd.f32 %v747_v5, %v162_v6  ;;  %v234_v17 = vadd.f32 %v747_v5, %v163_v7  ;;  %v166_v20 = vmul.f32 %v579_v8, %v739_v1  ;;  %v306_v2 = vld [vmem:[%s1354_s3 + $0x98] sm:$0xff]  ;;  %v307_v8 = vld [vmem:[%s1354_s3 + $0xa0] sm:$0xff] }
  0x11   :  { %v167_v21 = vmul.f32 %v580_v9, %v739_v1  ;;  %v359_v22 = vadd.f32 %v295_v3, %v231_v10  ;;  %v360_v23 = vadd.f32 %v296_v4, %v232_v11  ;;  %v235_v24 = vadd.f32 %v747_v5, %v164_v14  ;;  %v308_v9 = vld [vmem:[%s1354_s3 + $0xa8] sm:$0xff] }
  0x12   :  { %v236_v25 = vadd.f32 %v747_v5, %v165_v15  ;;  %v361_v28 = vadd.f32 %v297_v12, %v233_v16  ;;  %v362_v29 = vadd.f32 %v298_v13, %v234_v17  ;;  %v237_v30 = vadd.f32 %v747_v5, %v166_v20  ;;  %v309_v16 = vld [vmem:[%s1354_s3 + $0xb0] sm:$0xff]  ;;  %v310_v17 = vld [vmem:[%s1354_s3 + $0xb8] sm:$0xff] }
  0x13   :  { %v238_v31 = vadd.f32 %v747_v5, %v167_v21  ;;  %v423_v33 = vmax.f32 %v359_v22, 0.0  ;;  %v424_v34 = vmax.f32 %v360_v23, 0.0  ;;  %v363_v35 = vadd.f32 %v299_v18, %v235_v24  ;;  %v688_v22 = vld [vmem:[%s1351_s0 + $0x60] sm:$0xff]  }
  0x14   :  { %v364_v36 = vadd.f32 %v300_v19, %v236_v25  ;;  %v425_v38 = vmax.f32 %v361_v28, 0.0  ;;  %v426_v39 = vmax.f32 %v362_v29, 0.0  ;;  %v365_v40 = vadd.f32 %v301_v26, %v237_v30 }
  0x15   :  { %v366_v41 = vadd.f32 %v302_v27, %v238_v31  ;;  %487 = vst [vmem:[%s1355_s4 + $0x40] sm:$0xff] %v423_v33  ;;  %488 = vst [vmem:[%s1355_s4 + $0x48] sm:$0xff] %v424_v34  ;;  %v427_v43 = vmax.f32 %v363_v35, 0.0  ;;  %v584_v46 = vunpack.c.h.bf16 %v684_v32  ;;  %v587_v50 = vunpack.c.l.bf16 %v685_v37  ;;  %v689_v27 = vld [vmem:[%s1351_s0 + $0x68] sm:$0xff]   ;;  %v690_v32 = vld [vmem:[%s1351_s0 + $0x70] sm:$0xff]  }
  0x16   :  { %v428_v44 = vmax.f32 %v364_v36, 0.0  ;;  %489 = vst [vmem:[%s1355_s4 + $0x50] sm:$0xff] %v425_v38  ;;  %490 = vst [vmem:[%s1355_s4 + $0x58] sm:$0xff] %v426_v39  ;;  %v429_v48 = vmax.f32 %v365_v40, 0.0  ;;  %v588_v51 = vunpack.c.h.bf16 %v685_v37  ;;  %v168_v52 = vmul.f32 %v583_v45, %v739_v1  ;;  %v691_v37 = vld [vmem:[%s1351_s0 + $0x78] sm:$0xff]  }
  0x17   :  { %v430_v49 = vmax.f32 %v366_v41, 0.0  ;;  %491 = vst [vmem:[%s1355_s4 + $0x60] sm:$0xff] %v427_v43  ;;  %v169_v53 = vmul.f32 %v584_v46, %v739_v1  ;;  %v591_v54 = vunpack.c.l.bf16 %v686_v42  ;;  %v592_v55 = vunpack.c.h.bf16 %v686_v42  ;;  %v311_v46 = vld [vmem:[%s1354_s3 + $0xc0] sm:$0xff] }
  0x18   :  { %492 = vst [vmem:[%s1355_s4 + $0x68] sm:$0xff] %v428_v44  ;;  %493 = vst [vmem:[%s1355_s4 + $0x70] sm:$0xff] %v429_v48  ;;  %v170_v58 = vmul.f32 %v587_v50, %v739_v1  ;;  %v171_v59 = vmul.f32 %v588_v51, %v739_v1  ;;  %v595_v60 = vunpack.c.l.bf16 %v687_v47  ;;  %v596_v61 = vunpack.c.h.bf16 %v687_v47  ;;  %v312_v47 = vld [vmem:[%s1354_s3 + $0xc8] sm:$0xff] }
  0x19   :  { %494 = vst [vmem:[%s1355_s4 + $0x78] sm:$0xff] %v430_v49  ;;  %v239_v62 = vadd.f32 %v747_v5, %v168_v52  ;;  %v240_v63 = vadd.f32 %v747_v5, %v169_v53  ;;  %v172_v3 = vmul.f32 %v591_v54, %v739_v1  ;;  %v173_v4 = vmul.f32 %v592_v55, %v739_v1  ;;  %v313_v54 = vld [vmem:[%s1354_s3 + $0xd0] sm:$0xff]  ;;  %v314_v55 = vld [vmem:[%s1354_s3 + $0xd8] sm:$0xff] }
  0x1a   :  { %v241_v6 = vadd.f32 %v747_v5, %v170_v58  ;;  %v242_v7 = vadd.f32 %v747_v5, %v171_v59  ;;  %v174_v10 = vmul.f32 %v595_v60, %v739_v1  ;;  %v175_v11 = vmul.f32 %v596_v61, %v739_v1  ;;  %v315_v60 = vld [vmem:[%s1354_s3 + $0xe0] sm:$0xff]  ;;  %v316_v61 = vld [vmem:[%s1354_s3 + $0xe8] sm:$0xff] }
  0x1b   :  { %v367_v12 = vadd.f32 %v303_v56, %v239_v62  ;;  %v368_v13 = vadd.f32 %v304_v57, %v240_v63  ;;  %v243_v14 = vadd.f32 %v747_v5, %v172_v3  ;;  %v244_v15 = vadd.f32 %v747_v5, %v173_v4 }
  0x1c   :  { %v369_v18 = vadd.f32 %v305_v0, %v241_v6  ;;  %v370_v19 = vadd.f32 %v306_v2, %v242_v7  ;;  %v245_v20 = vadd.f32 %v747_v5, %v174_v10  ;;  %v246_v21 = vadd.f32 %v747_v5, %v175_v11  ;;  %v317_v6 = vld [vmem:[%s1354_s3 + $0xf0] sm:$0xff]  ;;  %v318_v7 = vld [vmem:[%s1354_s3 + $0xf8] sm:$0xff] }
  0x1d   :  { %v431_v23 = vmax.f32 %v367_v12, 0.0  ;;  %v432_v24 = vmax.f32 %v368_v13, 0.0  ;;  %v371_v25 = vadd.f32 %v307_v8, %v243_v14  ;;  %v372_v26 = vadd.f32 %v308_v9, %v244_v15  ;;  %v692_v12 = vld [vmem:[%s1351_s0 + $0x80] sm:$0xff]  }
  0x1e   :  { %v433_v28 = vmax.f32 %v369_v18, 0.0  ;;  %v434_v29 = vmax.f32 %v370_v19, 0.0  ;;  %v373_v30 = vadd.f32 %v309_v16, %v245_v20  ;;  %v374_v31 = vadd.f32 %v310_v17, %v246_v21  ;;  %v693_v17 = vld [vmem:[%s1351_s0 + $0x88] sm:$0xff]  }
  0x1f   :  { %495 = vst [vmem:[%s1355_s4 + $0x80] sm:$0xff] %v431_v23  ;;  %496 = vst [vmem:[%s1355_s4 + $0x88] sm:$0xff] %v432_v24  ;;  %v435_v33 = vmax.f32 %v371_v25, 0.0  ;;  %v436_v34 = vmax.f32 %v372_v26, 0.0  ;;  %v599_v35 = vunpack.c.l.bf16 %v688_v22  ;;  %v600_v36 = vunpack.c.h.bf16 %v688_v22  ;;  %v694_v22 = vld [vmem:[%s1351_s0 + $0x90] sm:$0xff]  }
  0x20   :  { %497 = vst [vmem:[%s1355_s4 + $0x90] sm:$0xff] %v433_v28  ;;  %498 = vst [vmem:[%s1355_s4 + $0x98] sm:$0xff] %v434_v29  ;;  %v437_v38 = vmax.f32 %v373_v30, 0.0  ;;  %v438_v39 = vmax.f32 %v374_v31, 0.0  ;;  %v603_v40 = vunpack.c.l.bf16 %v689_v27  ;;  %v604_v41 = vunpack.c.h.bf16 %v689_v27  ;;  %v695_v27 = vld [vmem:[%s1351_s0 + $0x98] sm:$0xff]  }
  0x21   :  { %499 = vst [vmem:[%s1355_s4 + $0xa0] sm:$0xff] %v435_v33  ;;  %500 = vst [vmem:[%s1355_s4 + $0xa8] sm:$0xff] %v436_v34  ;;  %v176_v42 = vmul.f32 %v599_v35, %v739_v1  ;;  %v177_v43 = vmul.f32 %v600_v36, %v739_v1  ;;  %v607_v44 = vunpack.c.l.bf16 %v690_v32  ;;  %v608_v45 = vunpack.c.h.bf16 %v690_v32  ;;  %v319_v36 = vld [vmem:[%s1354_s3 + $0x100] sm:$0xff] }
  0x22   :  { %501 = vst [vmem:[%s1355_s4 + $0xb0] sm:$0xff] %v437_v38  ;;  %502 = vst [vmem:[%s1355_s4 + $0xb8] sm:$0xff] %v438_v39  ;;  %v178_v48 = vmul.f32 %v603_v40, %v739_v1  ;;  %v179_v49 = vmul.f32 %v604_v41, %v739_v1  ;;  %v611_v50 = vunpack.c.l.bf16 %v691_v37  ;;  %v612_v51 = vunpack.c.h.bf16 %v691_v37  ;;  %v320_v37 = vld [vmem:[%s1354_s3 + $0x108] sm:$0xff] }
  0x23   :  { %v247_v52 = vadd.f32 %v747_v5, %v176_v42  ;;  %v248_v53 = vadd.f32 %v747_v5, %v177_v43  ;;  %v180_v56 = vmul.f32 %v607_v44, %v739_v1  ;;  %v181_v57 = vmul.f32 %v608_v45, %v739_v1  ;;  %v321_v44 = vld [vmem:[%s1354_s3 + $0x110] sm:$0xff]  ;;  %v322_v45 = vld [vmem:[%s1354_s3 + $0x118] sm:$0xff] }
  0x24   :  { %v249_v58 = vadd.f32 %v747_v5, %v178_v48  ;;  %v250_v59 = vadd.f32 %v747_v5, %v179_v49  ;;  %v182_v62 = vmul.f32 %v611_v50, %v739_v1  ;;  %v183_v63 = vmul.f32 %v612_v51, %v739_v1  ;;  %v323_v50 = vld [vmem:[%s1354_s3 + $0x120] sm:$0xff]  ;;  %v324_v51 = vld [vmem:[%s1354_s3 + $0x128] sm:$0xff] }
  0x25   :  { %v375_v0 = vadd.f32 %v311_v46, %v247_v52  ;;  %v376_v2 = vadd.f32 %v312_v47, %v248_v53  ;;  %v251_v3 = vadd.f32 %v747_v5, %v180_v56  ;;  %v252_v4 = vadd.f32 %v747_v5, %v181_v57 }
  0x26   :  { %v377_v8 = vadd.f32 %v313_v54, %v249_v58  ;;  %v378_v9 = vadd.f32 %v314_v55, %v250_v59  ;;  %v253_v10 = vadd.f32 %v747_v5, %v182_v62  ;;  %v254_v11 = vadd.f32 %v747_v5, %v183_v63  ;;  %v325_v58 = vld [vmem:[%s1354_s3 + $0x130] sm:$0xff]  ;;  %v326_v59 = vld [vmem:[%s1354_s3 + $0x138] sm:$0xff] }
  0x27   :  { %v439_v13 = vmax.f32 %v375_v0, 0.0  ;;  %v440_v14 = vmax.f32 %v376_v2, 0.0  ;;  %v379_v15 = vadd.f32 %v315_v60, %v251_v3  ;;  %v380_v16 = vadd.f32 %v316_v61, %v252_v4  ;;  %v696_v0 = vld [vmem:[%s1351_s0 + $0xa0] sm:$0xff]  }
  0x28   :  { %v441_v18 = vmax.f32 %v377_v8, 0.0  ;;  %v442_v19 = vmax.f32 %v378_v9, 0.0  ;;  %v381_v20 = vadd.f32 %v317_v6, %v253_v10  ;;  %v382_v21 = vadd.f32 %v318_v7, %v254_v11  ;;  %v697_v7 = vld [vmem:[%s1351_s0 + $0xa8] sm:$0xff]  }
  0x29   :  { %503 = vst [vmem:[%s1355_s4 + $0xc0] sm:$0xff] %v439_v13  ;;  %504 = vst [vmem:[%s1355_s4 + $0xc8] sm:$0xff] %v440_v14  ;;  %v443_v23 = vmax.f32 %v379_v15, 0.0  ;;  %v444_v24 = vmax.f32 %v380_v16, 0.0  ;;  %v615_v25 = vunpack.c.l.bf16 %v692_v12  ;;  %v616_v26 = vunpack.c.h.bf16 %v692_v12  ;;  %v698_v12 = vld [vmem:[%s1351_s0 + $0xb0] sm:$0xff]  }
  0x2a   :  { %505 = vst [vmem:[%s1355_s4 + $0xd0] sm:$0xff] %v441_v18  ;;  %506 = vst [vmem:[%s1355_s4 + $0xd8] sm:$0xff] %v442_v19  ;;  %v445_v28 = vmax.f32 %v381_v20, 0.0  ;;  %v446_v29 = vmax.f32 %v382_v21, 0.0  ;;  %v619_v30 = vunpack.c.l.bf16 %v693_v17  ;;  %v620_v31 = vunpack.c.h.bf16 %v693_v17  ;;  %v699_v17 = vld [vmem:[%s1351_s0 + $0xb8] sm:$0xff]  }
  0x2b   :  { %507 = vst [vmem:[%s1355_s4 + $0xe0] sm:$0xff] %v443_v23  ;;  %508 = vst [vmem:[%s1355_s4 + $0xe8] sm:$0xff] %v444_v24  ;;  %v184_v32 = vmul.f32 %v615_v25, %v739_v1  ;;  %v185_v33 = vmul.f32 %v616_v26, %v739_v1  ;;  %v623_v34 = vunpack.c.l.bf16 %v694_v22  ;;  %v624_v35 = vunpack.c.h.bf16 %v694_v22  ;;  %v327_v26 = vld [vmem:[%s1354_s3 + $0x140] sm:$0xff] }
  0x2c   :  { %509 = vst [vmem:[%s1355_s4 + $0xf0] sm:$0xff] %v445_v28  ;;  %510 = vst [vmem:[%s1355_s4 + $0xf8] sm:$0xff] %v446_v29  ;;  %v186_v38 = vmul.f32 %v619_v30, %v739_v1  ;;  %v187_v39 = vmul.f32 %v620_v31, %v739_v1  ;;  %v627_v40 = vunpack.c.l.bf16 %v695_v27  ;;  %v628_v41 = vunpack.c.h.bf16 %v695_v27  ;;  %v328_v27 = vld [vmem:[%s1354_s3 + $0x148] sm:$0xff] }
  0x2d   :  { %v255_v42 = vadd.f32 %v747_v5, %v184_v32  ;;  %v256_v43 = vadd.f32 %v747_v5, %v185_v33  ;;  %v188_v46 = vmul.f32 %v623_v34, %v739_v1  ;;  %v189_v47 = vmul.f32 %v624_v35, %v739_v1  ;;  %v329_v34 = vld [vmem:[%s1354_s3 + $0x150] sm:$0xff]  ;;  %v330_v35 = vld [vmem:[%s1354_s3 + $0x158] sm:$0xff] }
  0x2e   :  { %v257_v48 = vadd.f32 %v747_v5, %v186_v38  ;;  %v258_v49 = vadd.f32 %v747_v5, %v187_v39  ;;  %v190_v52 = vmul.f32 %v627_v40, %v739_v1  ;;  %v191_v53 = vmul.f32 %v628_v41, %v739_v1  ;;  %v331_v40 = vld [vmem:[%s1354_s3 + $0x160] sm:$0xff]  ;;  %v332_v41 = vld [vmem:[%s1354_s3 + $0x168] sm:$0xff] }
  0x2f   :  { %v383_v54 = vadd.f32 %v319_v36, %v255_v42  ;;  %v384_v55 = vadd.f32 %v320_v37, %v256_v43  ;;  %v259_v56 = vadd.f32 %v747_v5, %v188_v46  ;;  %v260_v57 = vadd.f32 %v747_v5, %v189_v47 }
  0x30   :  { %v385_v60 = vadd.f32 %v321_v44, %v257_v48  ;;  %v386_v61 = vadd.f32 %v322_v45, %v258_v49  ;;  %v261_v62 = vadd.f32 %v747_v5, %v190_v52  ;;  %v262_v63 = vadd.f32 %v747_v5, %v191_v53  ;;  %v333_v48 = vld [vmem:[%s1354_s3 + $0x170] sm:$0xff]  ;;  %v334_v49 = vld [vmem:[%s1354_s3 + $0x178] sm:$0xff] }
  0x31   :  { %v447_v2 = vmax.f32 %v383_v54, 0.0  ;;  %v448_v3 = vmax.f32 %v384_v55, 0.0  ;;  %v387_v4 = vadd.f32 %v323_v50, %v259_v56  ;;  %v388_v6 = vadd.f32 %v324_v51, %v260_v57  ;;  %v700_v54 = vld [vmem:[%s1351_s0 + $0xc0] sm:$0xff]  }
  0x32   :  { %v449_v8 = vmax.f32 %v385_v60, 0.0  ;;  %v450_v9 = vmax.f32 %v386_v61, 0.0  ;;  %v389_v10 = vadd.f32 %v325_v58, %v261_v62  ;;  %v390_v11 = vadd.f32 %v326_v59, %v262_v63  ;;  %v701_v59 = vld [vmem:[%s1351_s0 + $0xc8] sm:$0xff]  }
  0x33   :  { %511 = vst [vmem:[%s1355_s4 + $0x100] sm:$0xff] %v447_v2  ;;  %512 = vst [vmem:[%s1355_s4 + $0x108] sm:$0xff] %v448_v3  ;;  %v451_v13 = vmax.f32 %v387_v4, 0.0  ;;  %v452_v14 = vmax.f32 %v388_v6, 0.0  ;;  %v631_v15 = vunpack.c.l.bf16 %v696_v0  ;;  %v632_v16 = vunpack.c.h.bf16 %v696_v0  ;;  %v702_v0 = vld [vmem:[%s1351_s0 + $0xd0] sm:$0xff]  }
  0x34   :  { %513 = vst [vmem:[%s1355_s4 + $0x110] sm:$0xff] %v449_v8  ;;  %514 = vst [vmem:[%s1355_s4 + $0x118] sm:$0xff] %v450_v9  ;;  %v453_v18 = vmax.f32 %v389_v10, 0.0  ;;  %v454_v19 = vmax.f32 %v390_v11, 0.0  ;;  %v635_v20 = vunpack.c.l.bf16 %v697_v7  ;;  %v636_v21 = vunpack.c.h.bf16 %v697_v7  ;;  %v703_v7 = vld [vmem:[%s1351_s0 + $0xd8] sm:$0xff]  }
  0x35   :  { %515 = vst [vmem:[%s1355_s4 + $0x120] sm:$0xff] %v451_v13  ;;  %516 = vst [vmem:[%s1355_s4 + $0x128] sm:$0xff] %v452_v14  ;;  %v192_v22 = vmul.f32 %v631_v15, %v739_v1  ;;  %v193_v23 = vmul.f32 %v632_v16, %v739_v1  ;;  %v639_v24 = vunpack.c.l.bf16 %v698_v12  ;;  %v640_v25 = vunpack.c.h.bf16 %v698_v12  ;;  %v335_v16 = vld [vmem:[%s1354_s3 + $0x180] sm:$0xff] }
  0x36   :  { %517 = vst [vmem:[%s1355_s4 + $0x130] sm:$0xff] %v453_v18  ;;  %518 = vst [vmem:[%s1355_s4 + $0x138] sm:$0xff] %v454_v19  ;;  %v194_v28 = vmul.f32 %v635_v20, %v739_v1  ;;  %v195_v29 = vmul.f32 %v636_v21, %v739_v1  ;;  %v643_v30 = vunpack.c.l.bf16 %v699_v17  ;;  %v644_v31 = vunpack.c.h.bf16 %v699_v17  ;;  %v336_v17 = vld [vmem:[%s1354_s3 + $0x188] sm:$0xff] }
  0x37   :  { %v263_v32 = vadd.f32 %v747_v5, %v192_v22  ;;  %v264_v33 = vadd.f32 %v747_v5, %v193_v23  ;;  %v196_v36 = vmul.f32 %v639_v24, %v739_v1  ;;  %v197_v37 = vmul.f32 %v640_v25, %v739_v1  ;;  %v337_v24 = vld [vmem:[%s1354_s3 + $0x190] sm:$0xff]  ;;  %v338_v25 = vld [vmem:[%s1354_s3 + $0x198] sm:$0xff] }
  0x38   :  { %v265_v38 = vadd.f32 %v747_v5, %v194_v28  ;;  %v266_v39 = vadd.f32 %v747_v5, %v195_v29  ;;  %v198_v42 = vmul.f32 %v643_v30, %v739_v1  ;;  %v199_v43 = vmul.f32 %v644_v31, %v739_v1  ;;  %v339_v30 = vld [vmem:[%s1354_s3 + $0x1a0] sm:$0xff]  ;;  %v340_v31 = vld [vmem:[%s1354_s3 + $0x1a8] sm:$0xff] }
  0x39   :  { %v391_v44 = vadd.f32 %v327_v26, %v263_v32  ;;  %v392_v45 = vadd.f32 %v328_v27, %v264_v33  ;;  %v267_v46 = vadd.f32 %v747_v5, %v196_v36  ;;  %v268_v47 = vadd.f32 %v747_v5, %v197_v37 }
  0x3a   :  { %v393_v50 = vadd.f32 %v329_v34, %v265_v38  ;;  %v394_v51 = vadd.f32 %v330_v35, %v266_v39  ;;  %v269_v52 = vadd.f32 %v747_v5, %v198_v42  ;;  %v270_v53 = vadd.f32 %v747_v5, %v199_v43  ;;  %v341_v38 = vld [vmem:[%s1354_s3 + $0x1b0] sm:$0xff]  ;;  %v342_v39 = vld [vmem:[%s1354_s3 + $0x1b8] sm:$0xff] }
  0x3b   :  { %v455_v55 = vmax.f32 %v391_v44, 0.0  ;;  %v456_v56 = vmax.f32 %v392_v45, 0.0  ;;  %v395_v57 = vadd.f32 %v331_v40, %v267_v46  ;;  %v396_v58 = vadd.f32 %v332_v41, %v268_v47  ;;  %v704_v44 = vld [vmem:[%s1351_s0 + $0xe0] sm:$0xff]  }
  0x3c   :  { %v457_v60 = vmax.f32 %v393_v50, 0.0  ;;  %v458_v61 = vmax.f32 %v394_v51, 0.0  ;;  %v397_v62 = vadd.f32 %v333_v48, %v269_v52  ;;  %v398_v63 = vadd.f32 %v334_v49, %v270_v53  ;;  %v705_v49 = vld [vmem:[%s1351_s0 + $0xe8] sm:$0xff]  }
  0x3d   :  { %519 = vst [vmem:[%s1355_s4 + $0x140] sm:$0xff] %v455_v55  ;;  %520 = vst [vmem:[%s1355_s4 + $0x148] sm:$0xff] %v456_v56  ;;  %v459_v2 = vmax.f32 %v395_v57, 0.0  ;;  %v460_v3 = vmax.f32 %v396_v58, 0.0  ;;  %v647_v4 = vunpack.c.l.bf16 %v700_v54  ;;  %v648_v6 = vunpack.c.h.bf16 %v700_v54  ;;  %v706_v54 = vld [vmem:[%s1351_s0 + $0xf0] sm:$0xff]  }
  0x3e   :  { %521 = vst [vmem:[%s1355_s4 + $0x150] sm:$0xff] %v457_v60  ;;  %522 = vst [vmem:[%s1355_s4 + $0x158] sm:$0xff] %v458_v61  ;;  %v461_v8 = vmax.f32 %v397_v62, 0.0  ;;  %v462_v9 = vmax.f32 %v398_v63, 0.0  ;;  %v651_v10 = vunpack.c.l.bf16 %v701_v59  ;;  %v652_v11 = vunpack.c.h.bf16 %v701_v59  ;;  %v707_v59 = vld [vmem:[%s1351_s0 + $0xf8] sm:$0xff]  }
  0x3f   :  { %523 = vst [vmem:[%s1355_s4 + $0x160] sm:$0xff] %v459_v2  ;;  %524 = vst [vmem:[%s1355_s4 + $0x168] sm:$0xff] %v460_v3  ;;  %v200_v12 = vmul.f32 %v647_v4, %v739_v1  ;;  %v201_v13 = vmul.f32 %v648_v6, %v739_v1  ;;  %v655_v14 = vunpack.c.l.bf16 %v702_v0  ;;  %v656_v15 = vunpack.c.h.bf16 %v702_v0  ;;  %v343_v6 = vld [vmem:[%s1354_s3 + $0x1c0] sm:$0xff] }
  0x40   :  { %525 = vst [vmem:[%s1355_s4 + $0x170] sm:$0xff] %v461_v8  ;;  %526 = vst [vmem:[%s1355_s4 + $0x178] sm:$0xff] %v462_v9  ;;  %v202_v18 = vmul.f32 %v651_v10, %v739_v1  ;;  %v203_v19 = vmul.f32 %v652_v11, %v739_v1  ;;  %v659_v20 = vunpack.c.l.bf16 %v703_v7  ;;  %v660_v21 = vunpack.c.h.bf16 %v703_v7  ;;  %v344_v7 = vld [vmem:[%s1354_s3 + $0x1c8] sm:$0xff] }
  0x41   :  { %v271_v22 = vadd.f32 %v747_v5, %v200_v12  ;;  %v272_v23 = vadd.f32 %v747_v5, %v201_v13  ;;  %v204_v26 = vmul.f32 %v655_v14, %v739_v1  ;;  %v205_v27 = vmul.f32 %v656_v15, %v739_v1  ;;  %v345_v14 = vld [vmem:[%s1354_s3 + $0x1d0] sm:$0xff]  ;;  %v346_v15 = vld [vmem:[%s1354_s3 + $0x1d8] sm:$0xff] }
  0x42   :  { %v273_v28 = vadd.f32 %v747_v5, %v202_v18  ;;  %v274_v29 = vadd.f32 %v747_v5, %v203_v19  ;;  %v206_v32 = vmul.f32 %v659_v20, %v739_v1  ;;  %v207_v33 = vmul.f32 %v660_v21, %v739_v1  ;;  %v347_v20 = vld [vmem:[%s1354_s3 + $0x1e0] sm:$0xff]  ;;  %v348_v21 = vld [vmem:[%s1354_s3 + $0x1e8] sm:$0xff] }
  0x43   :  { %v399_v34 = vadd.f32 %v335_v16, %v271_v22  ;;  %v400_v35 = vadd.f32 %v336_v17, %v272_v23  ;;  %v275_v36 = vadd.f32 %v747_v5, %v204_v26  ;;  %v276_v37 = vadd.f32 %v747_v5, %v205_v27 }
  0x44   :  { %v401_v40 = vadd.f32 %v337_v24, %v273_v28  ;;  %v402_v41 = vadd.f32 %v338_v25, %v274_v29  ;;  %v277_v42 = vadd.f32 %v747_v5, %v206_v32  ;;  %v278_v43 = vadd.f32 %v747_v5, %v207_v33  ;;  %v349_v28 = vld [vmem:[%s1354_s3 + $0x1f0] sm:$0xff]  ;;  %v350_v29 = vld [vmem:[%s1354_s3 + $0x1f8] sm:$0xff] }
  0x45   :  { %v463_v45 = vmax.f32 %v399_v34, 0.0  ;;  %v464_v46 = vmax.f32 %v400_v35, 0.0  ;;  %v403_v47 = vadd.f32 %v339_v30, %v275_v36  ;;  %v404_v48 = vadd.f32 %v340_v31, %v276_v37 }
  0x46   :  { %v465_v50 = vmax.f32 %v401_v40, 0.0  ;;  %v466_v51 = vmax.f32 %v402_v41, 0.0  ;;  %v405_v52 = vadd.f32 %v341_v38, %v277_v42  ;;  %v406_v53 = vadd.f32 %v342_v39, %v278_v43 }
  0x47   :  { %527 = vst [vmem:[%s1355_s4 + $0x180] sm:$0xff] %v463_v45  ;;  %528 = vst [vmem:[%s1355_s4 + $0x188] sm:$0xff] %v464_v46  ;;  %v467_v55 = vmax.f32 %v403_v47, 0.0  ;;  %v468_v56 = vmax.f32 %v404_v48, 0.0  ;;  %v663_v57 = vunpack.c.l.bf16 %v704_v44  ;;  %v664_v58 = vunpack.c.h.bf16 %v704_v44 }
  0x48   :  { %529 = vst [vmem:[%s1355_s4 + $0x190] sm:$0xff] %v465_v50  ;;  %530 = vst [vmem:[%s1355_s4 + $0x198] sm:$0xff] %v466_v51  ;;  %v469_v60 = vmax.f32 %v405_v52, 0.0  ;;  %v470_v61 = vmax.f32 %v406_v53, 0.0  ;;  %v667_v62 = vunpack.c.l.bf16 %v705_v49  ;;  %v668_v63 = vunpack.c.h.bf16 %v705_v49 }
  0x49   :  { %531 = vst [vmem:[%s1355_s4 + $0x1a0] sm:$0xff] %v467_v55  ;;  %532 = vst [vmem:[%s1355_s4 + $0x1a8] sm:$0xff] %v468_v56  ;;  %v208_v0 = vmul.f32 %v663_v57, %v739_v1  ;;  %v209_v2 = vmul.f32 %v664_v58, %v739_v1  ;;  %v671_v3 = vunpack.c.l.bf16 %v706_v54  ;;  %v672_v4 = vunpack.c.h.bf16 %v706_v54 }
  0x4a   :  { %533 = vst [vmem:[%s1355_s4 + $0x1b0] sm:$0xff] %v469_v60  ;;  %534 = vst [vmem:[%s1355_s4 + $0x1b8] sm:$0xff] %v470_v61  ;;  %v210_v8 = vmul.f32 %v667_v62, %v739_v1  ;;  %v211_v9 = vmul.f32 %v668_v63, %v739_v1  ;;  %v675_v10 = vunpack.c.l.bf16 %v707_v59  ;;  %v676_v11 = vunpack.c.h.bf16 %v707_v59 }
  0x4b   :  { %v279_v12 = vadd.f32 %v747_v5, %v208_v0  ;;  %v280_v13 = vadd.f32 %v747_v5, %v209_v2  ;;  %v212_v16 = vmul.f32 %v671_v3, %v739_v1  ;;  %v213_v17 = vmul.f32 %v672_v4, %v739_v1 }
  0x4c   :  { %v281_v18 = vadd.f32 %v747_v5, %v210_v8  ;;  %v282_v19 = vadd.f32 %v747_v5, %v211_v9  ;;  %v214_v22 = vmul.f32 %v675_v10, %v739_v1  ;;  %v215_v23 = vmul.f32 %v676_v11, %v739_v1 }
  0x4d   :  { %v407_v24 = vadd.f32 %v343_v6, %v279_v12  ;;  %v408_v25 = vadd.f32 %v344_v7, %v280_v13  ;;  %v283_v26 = vadd.f32 %v747_v5, %v212_v16  ;;  %v284_v27 = vadd.f32 %v747_v5, %v213_v17 }
  0x4e   :  { %v409_v30 = vadd.f32 %v345_v14, %v281_v18  ;;  %v410_v31 = vadd.f32 %v346_v15, %v282_v19  ;;  %v285_v32 = vadd.f32 %v747_v5, %v214_v22  ;;  %v286_v1 = vadd.f32 %v747_v5, %v215_v23 }
  0x4f   :  { %v471_v33 = vmax.f32 %v407_v24, 0.0  ;;  %v472_v34 = vmax.f32 %v408_v25, 0.0  ;;  %v411_v35 = vadd.f32 %v347_v20, %v283_v26  ;;  %v412_v36 = vadd.f32 %v348_v21, %v284_v27 }
  0x50   :  { %v473_v37 = vmax.f32 %v409_v30, 0.0  ;;  %v474_v38 = vmax.f32 %v410_v31, 0.0  ;;  %v413_v39 = vadd.f32 %v349_v28, %v285_v32  ;;  %v414_v40 = vadd.f32 %v350_v29, %v286_v1 }
  0x51   :  { %535 = vst [vmem:[%s1355_s4 + $0x1c0] sm:$0xff] %v471_v33  ;;  %536 = vst [vmem:[%s1355_s4 + $0x1c8] sm:$0xff] %v472_v34  ;;  %v475_v41 = vmax.f32 %v411_v35, 0.0  ;;  %v476_v42 = vmax.f32 %v412_v36, 0.0 }
  0x52   :  { %537 = vst [vmem:[%s1355_s4 + $0x1d0] sm:$0xff] %v473_v37  ;;  %538 = vst [vmem:[%s1355_s4 + $0x1d8] sm:$0xff] %v474_v38  ;;  %v477_v5 = vmax.f32 %v413_v39, 0.0  ;;  %v478_v43 = vmax.f32 %v414_v40, 0.0 }
  0x53   :  { %539 = vst [vmem:[%s1355_s4 + $0x1e0] sm:$0xff] %v475_v41  ;;  %540 = vst [vmem:[%s1355_s4 + $0x1e8] sm:$0xff] %v476_v42 }
  0x54   :  { %541 = vst [vmem:[%s1355_s4 + $0x1f0] sm:$0xff] %v477_v5  ;;  %542 = vst [vmem:[%s1355_s4 + $0x1f8] sm:$0xff] %v478_v43 }

// kernel: bottleneck_forward.4
= control target key start
LH: loop header
LB: loop body
LE: loop exit
PB: predicated region body
PF: predicated region fallthrough
CT: control target
= control target key end

     0   :  { %vm985_vm0 = vcmask 1040384   ;;  %s1994_s1 = inlined_call_operand.vmem [shape: bf16[128,128], index: 1, kind: input, shape index: {}]   ;;  %s1995_s0 = inlined_call_operand.vmem [shape: f32[512,128], index: 0, kind: input, shape index: {}]   ;;  %s1996_s2 = inlined_call_operand.vmem [shape: bf16[512,128], index: 2, kind: output, shape index: {0}]   ;;  %s1997_s3 = inlined_call_operand.vmem [shape: f32[1,2,128], index: 3, kind: output, shape index: {1}]  }
   0x1   :  { %v1459_v0 = vld [vmem:[%s1994_s1] sm:$0xff]   ;;  %v1460_v1 = vld [vmem:[%s1994_s1 + $0x8] sm:$0xff]   ;;  %v1461_v2 = vld [vmem:[%s1994_s1 + $0x10] sm:$0xff]  }
   0x2   :  { %1363 = vmatprep.subr.bf16.mxu0 %v1459_v0  ;;  %1443 = vmatprep.subr.bf16.mxu1 %v1459_v0  ;;  %v1462_v3 = vld [vmem:[%s1994_s1 + $0x18] sm:$0xff]   ;;  %v14_v4 = vld [vmem:[%s1995_s0] sm:$0xff]  ;;  %v15_v5 = vld [vmem:[%s1995_s0 + $0x8] sm:$0xff] }
   0x3   :  { %1364 = vmatpush3.bf16.msra.mxu0 %v1459_v0  ;;  %1451 = vmatpush3.bf16.msra.mxu1 %v1459_v0  ;;  %v78_v6 = vpack.c.bf16 %v15_v5, %v14_v4  ;;  %v1463_v7 = vld [vmem:[%s1994_s1 + $0x20] sm:$0xff]   ;;  %v1464_v8 = vld [vmem:[%s1994_s1 + $0x28] sm:$0xff]   ;;  %v1465_v11 = vld [vmem:[%s1994_s1 + $0x30] sm:$0xff]  }
   0x4   :  { %1365 = vmatprep.subr.bf16.mxu0 %v1460_v1  ;;  %1444 = vmatprep.subr.bf16.mxu1 %v1460_v1  ;;  %v46_v9 = vld [vmem:[%s1995_s0 + $0x100] sm:$0xff]  ;;  %v47_v10 = vld [vmem:[%s1995_s0 + $0x108] sm:$0xff]  ;;  %v1466_v13 = vld [vmem:[%s1994_s1 + $0x38] sm:$0xff]  }
   0x5   :  { %1379 = vmatprep.mubr.bf16.mxu0 %v78_v6  ;;  %v94_v12 = vpack.c.bf16 %v47_v10, %v46_v9  ;;  %v16_v14 = vld [vmem:[%s1995_s0 + $0x10] sm:$0xff]  ;;  %v17_v15 = vld [vmem:[%s1995_s0 + $0x18] sm:$0xff]  ;;  %v18_v16 = vld [vmem:[%s1995_s0 + $0x20] sm:$0xff] }
   0x6   :  { %v19_v17 = vld [vmem:[%s1995_s0 + $0x28] sm:$0xff]  ;;  %v48_v18 = vld [vmem:[%s1995_s0 + $0x110] sm:$0xff]  ;;  %v49_v19 = vld [vmem:[%s1995_s0 + $0x118] sm:$0xff]  ;;  %v79_v22 = vpack.c.bf16 %v17_v15, %v16_v14 }
   0x7   :  { %1366 = vmatpush3.bf16.msra.mxu0 %v1460_v1  ;;  %1452 = vmatpush3.bf16.msra.mxu1 %v1460_v1  ;;  %v50_v20 = vld [vmem:[%s1995_s0 + $0x120] sm:$0xff]  ;;  %v51_v21 = vld [vmem:[%s1995_s0 + $0x128] sm:$0xff]  ;;  %v80_v23 = vpack.c.bf16 %v19_v17, %v18_v16  ;;  %v95_v24 = vpack.c.bf16 %v49_v19, %v48_v18  ;;  %v20_v26 = vld [vmem:[%s1995_s0 + $0x30] sm:$0xff] }
   0x8   :  { %1367 = vmatprep.subr.bf16.mxu0 %v1461_v2  ;;  %1445 = vmatprep.subr.bf16.mxu1 %v1461_v2  ;;  %v96_v25 = vpack.c.bf16 %v51_v21, %v50_v20  ;;  %v21_v27 = vld [vmem:[%s1995_s0 + $0x38] sm:$0xff]  ;;  %v22_v28 = vld [vmem:[%s1995_s0 + $0x40] sm:$0xff]  ;;  %v23_v29 = vld [vmem:[%s1995_s0 + $0x48] sm:$0xff] }
   0x9   :  { %1411 = vmatprep.mubr.bf16.mxu1 %v94_v12  ;;  %v52_v30 = vld [vmem:[%s1995_s0 + $0x130] sm:$0xff]  ;;  %v53_v31 = vld [vmem:[%s1995_s0 + $0x138] sm:$0xff]  ;;  %v54_v32 = vld [vmem:[%s1995_s0 + $0x140] sm:$0xff]  ;;  %v81_v34 = vpack.c.bf16 %v21_v27, %v20_v26  ;;  %v82_v35 = vpack.c.bf16 %v23_v29, %v22_v28 }
   0xa   :  { %v55_v33 = vld [vmem:[%s1995_s0 + $0x148] sm:$0xff]  ;;  %v97_v36 = vpack.c.bf16 %v53_v31, %v52_v30  ;;  %v24_v38 = vld [vmem:[%s1995_s0 + $0x50] sm:$0xff]  ;;  %v25_v39 = vld [vmem:[%s1995_s0 + $0x58] sm:$0xff] }
   0xb   :  { %1368 = vmatpush3.bf16.msra.mxu0 %v1461_v2  ;;  %1453 = vmatpush3.bf16.msra.mxu1 %v1461_v2  ;;  %v98_v37 = vpack.c.bf16 %v55_v33, %v54_v32  ;;  %v26_v40 = vld [vmem:[%s1995_s0 + $0x60] sm:$0xff]  ;;  %v27_v41 = vld [vmem:[%s1995_s0 + $0x68] sm:$0xff]  ;;  %v56_v42 = vld [vmem:[%s1995_s0 + $0x150] sm:$0xff]  ;;  %v83_v46 = vpack.c.bf16 %v25_v39, %v24_v38 }
   0xc   :  { %1369 = vmatprep.subr.bf16.mxu0 %v1462_v3  ;;  %1446 = vmatprep.subr.bf16.mxu1 %v1462_v3  ;;  %v57_v43 = vld [vmem:[%s1995_s0 + $0x158] sm:$0xff]  ;;  %v58_v44 = vld [vmem:[%s1995_s0 + $0x160] sm:$0xff]  ;;  %v59_v45 = vld [vmem:[%s1995_s0 + $0x168] sm:$0xff]  ;;  %v84_v47 = vpack.c.bf16 %v27_v41, %v26_v40 }
   0xd   :  { %v99_v48 = vpack.c.bf16 %v57_v43, %v56_v42  ;;  %v100_v49 = vpack.c.bf16 %v59_v45, %v58_v44  ;;  %v28_v50 = vld [vmem:[%s1995_s0 + $0x70] sm:$0xff]  ;;  %v29_v51 = vld [vmem:[%s1995_s0 + $0x78] sm:$0xff]  ;;  %v30_v52 = vld [vmem:[%s1995_s0 + $0x80] sm:$0xff] }
   0xe   :  { %v31_v53 = vld [vmem:[%s1995_s0 + $0x88] sm:$0xff]  ;;  %v60_v54 = vld [vmem:[%s1995_s0 + $0x170] sm:$0xff]  ;;  %v61_v55 = vld [vmem:[%s1995_s0 + $0x178] sm:$0xff]  ;;  %v85_v58 = vpack.c.bf16 %v29_v51, %v28_v50 }
   0xf   :  { %1370 = vmatpush3.bf16.msra.mxu0 %v1462_v3  ;;  %1454 = vmatpush3.bf16.msra.mxu1 %v1462_v3  ;;  %v62_v56 = vld [vmem:[%s1995_s0 + $0x180] sm:$0xff]  ;;  %v63_v57 = vld [vmem:[%s1995_s0 + $0x188] sm:$0xff]  ;;  %v86_v59 = vpack.c.bf16 %v31_v53, %v30_v52  ;;  %v101_v60 = vpack.c.bf16 %v61_v55, %v60_v54  ;;  %v32_v62 = vld [vmem:[%s1995_s0 + $0x90] sm:$0xff] }
  0x10   :  { %1371 = vmatprep.subr.bf16.mxu0 %v1463_v7  ;;  %1447 = vmatprep.subr.bf16.mxu1 %v1463_v7  ;;  %v102_v61 = vpack.c.bf16 %v63_v57, %v62_v56  ;;  %v33_v63 = vld [vmem:[%s1995_s0 + $0x98] sm:$0xff]  ;;  %v34_v0 = vld [vmem:[%s1995_s0 + $0xa0] sm:$0xff]  ;;  %v35_v1 = vld [vmem:[%s1995_s0 + $0xa8] sm:$0xff] }
  0x11   :  { %v64_v2 = vld [vmem:[%s1995_s0 + $0x190] sm:$0xff]  ;;  %v65_v3 = vld [vmem:[%s1995_s0 + $0x198] sm:$0xff]  ;;  %v66_v4 = vld [vmem:[%s1995_s0 + $0x1a0] sm:$0xff]  ;;  %v87_v6 = vpack.c.bf16 %v33_v63, %v32_v62 }
  0x12   :  { %v67_v5 = vld [vmem:[%s1995_s0 + $0x1a8] sm:$0xff]  ;;  %v36_v10 = vld [vmem:[%s1995_s0 + $0xb0] sm:$0xff]  ;;  %v38_v12 = vld [vmem:[%s1995_s0 + $0xc0] sm:$0xff] }
  0x13   :  { %1372 = vmatpush3.bf16.msra.mxu0 %v1463_v7  ;;  %1455 = vmatpush3.bf16.msra.mxu1 %v1463_v7  ;;  %v88_v7 = vpack.c.bf16 %v35_v1, %v34_v0  ;;  %v104_v9 = vpack.c.bf16 %v67_v5, %v66_v4  ;;  %v68_v14 = vld [vmem:[%s1995_s0 + $0x1b0] sm:$0xff]  ;;  %v69_v15 = vld [vmem:[%s1995_s0 + $0x1b8] sm:$0xff]  ;;  %v70_v16 = vld [vmem:[%s1995_s0 + $0x1c0] sm:$0xff] }
  0x14   :  { %1373 = vmatprep.subr.bf16.mxu0 %v1464_v8  ;;  %1448 = vmatprep.subr.bf16.mxu1 %v1464_v8  ;;  %v71_v17 = vld [vmem:[%s1995_s0 + $0x1c8] sm:$0xff]  ;;  %v105_v20 = vpack.c.bf16 %v69_v15, %v68_v14  ;;  %v72_v26 = vld [vmem:[%s1995_s0 + $0x1d0] sm:$0xff]  ;;  %v73_v27 = vld [vmem:[%s1995_s0 + $0x1d8] sm:$0xff] }
  0x15   :  { %v106_v21 = vpack.c.bf16 %v71_v17, %v70_v16  ;;  %v74_v28 = vld [vmem:[%s1995_s0 + $0x1e0] sm:$0xff]  ;;  %v75_v29 = vld [vmem:[%s1995_s0 + $0x1e8] sm:$0xff]  ;;  %v107_v32 = vpack.c.bf16 %v73_v27, %v72_v26 }
  0x16   :  { %v108_v33 = vpack.c.bf16 %v75_v29, %v74_v28 }
  0x17   :  { %1374 = vmatpush3.bf16.msra.mxu0 %v1464_v8  ;;  %1456 = vmatpush3.bf16.msra.mxu1 %v1464_v8  ;;  %v103_v8 = vpack.c.bf16 %v65_v3, %v64_v2 }
  0x18   :  { %1375 = vmatprep.subr.bf16.mxu0 %v1465_v11  ;;  %1449 = vmatprep.subr.bf16.mxu1 %v1465_v11 }
  0x1b   :  { %1376 = vmatpush3.bf16.msra.mxu0 %v1465_v11  ;;  %1457 = vmatpush3.bf16.msra.mxu1 %v1465_v11  ;;  %v37_v11 = vld [vmem:[%s1995_s0 + $0xb8] sm:$0xff] }
  0x1c   :  { %1377 = vmatprep.subr.bf16.mxu0 %v1466_v13  ;;  %1450 = vmatprep.subr.bf16.mxu1 %v1466_v13  ;;  %v89_v18 = vpack.c.bf16 %v37_v11, %v36_v10 }
  0x1f   :  { %1378 = vmatpush3.bf16.msra.mxu0 %v1466_v13  ;;  %1458 = vmatpush3.bf16.msra.mxu1 %v1466_v13  ;;  %v39_v13 = vld [vmem:[%s1995_s0 + $0xc8] sm:$0xff] }
  0x20   :  { %v90_v19 = vpack.c.bf16 %v39_v13, %v38_v12 }
  0x22   :  { %1380 = vmatmul.mubr.bf16.vlgmr.msra.gmra.mrb[0].mxu0 %v79_v22  ;;  %1412 = vmatmul.mubr.bf16.vlgmr.msra.gmra.mrb[0].mxu1 %v95_v24  ;;  %v40_v22 = vld [vmem:[%s1995_s0 + $0xd0] sm:$0xff]  ;;  %v42_v24 = vld [vmem:[%s1995_s0 + $0xe0] sm:$0xff] }
  0x23   :  { %1383 = vmatprep.mubr.bf16.mxu0 %v80_v23  ;;  %1415 = vmatprep.mubr.bf16.mxu1 %v96_v25  ;;  %v41_v23 = vld [vmem:[%s1995_s0 + $0xd8] sm:$0xff]  ;;  %v43_v25 = vld [vmem:[%s1995_s0 + $0xe8] sm:$0xff] }
  0x24   :  { %v91_v30 = vpack.c.bf16 %v41_v23, %v40_v22  ;;  %v92_v31 = vpack.c.bf16 %v43_v25, %v42_v24 }
  0x2a   :  { %1384 = vmatmul.mubr.bf16.gmra.mrb[4].mxu0 %v81_v34  ;;  %1416 = vmatmul.mubr.bf16.gmra.mrb[4].mxu1 %v97_v36  ;;  %v44_v34 = vld [vmem:[%s1995_s0 + $0xf0] sm:$0xff] }
  0x2b   :  { %1387 = vmatprep.mubr.bf16.mxu0 %v82_v35  ;;  %1419 = vmatprep.mubr.bf16.mxu1 %v98_v37  ;;  %v45_v35 = vld [vmem:[%s1995_s0 + $0xf8] sm:$0xff]  ;;  %v76_v36 = vld [vmem:[%s1995_s0 + $0x1f0] sm:$0xff] }
  0x2c   :  { %v77_v37 = vld [vmem:[%s1995_s0 + $0x1f8] sm:$0xff]  ;;  %v93_v38 = vpack.c.bf16 %v45_v35, %v44_v34 }
  0x2d   :  { %v109_v39 = vpack.c.bf16 %v77_v37, %v76_v36 }
  0x32   :  { %1388 = vmatmul.mubr.bf16.gmra.mrb[8].mxu0 %v83_v46  ;;  %1420 = vmatmul.mubr.bf16.gmra.mrb[8].mxu1 %v99_v48 }
  0x33   :  { %1391 = vmatprep.mubr.bf16.mxu0 %v84_v47  ;;  %1423 = vmatprep.mubr.bf16.mxu1 %v100_v49 }
  0x3a   :  { %1392 = vmatmul.mubr.bf16.gmra.mrb[12].mxu0 %v85_v58  ;;  %1424 = vmatmul.mubr.bf16.gmra.mrb[12].mxu1 %v101_v60 }
  0x3b   :  { %1395 = vmatprep.mubr.bf16.mxu0 %v86_v59  ;;  %1427 = vmatprep.mubr.bf16.mxu1 %v102_v61 }
  0x42   :  { %1396 = vmatmul.mubr.bf16.gmra.mrb[16].mxu0 %v87_v6  ;;  %1428 = vmatmul.mubr.bf16.gmra.mrb[16].mxu1 %v103_v8 }
  0x43   :  { %1399 = vmatprep.mubr.bf16.mxu0 %v88_v7  ;;  %1431 = vmatprep.mubr.bf16.mxu1 %v104_v9 }
  0x4a   :  { %1400 = vmatmul.mubr.bf16.gmra.mrb[20].mxu0 %v89_v18  ;;  %1432 = vmatmul.mubr.bf16.gmra.mrb[20].mxu1 %v105_v20 }
  0x4b   :  { %1403 = vmatprep.mubr.bf16.mxu0 %v90_v19  ;;  %1435 = vmatprep.mubr.bf16.mxu1 %v106_v21 }
  0x52   :  { %1404 = vmatmul.mubr.bf16.gmra.mrb[24].mxu0 %v91_v30  ;;  %1436 = vmatmul.mubr.bf16.gmra.mrb[24].mxu1 %v107_v32 }
  0x53   :  { %1407 = vmatprep.mubr.bf16.mxu0 %v92_v31  ;;  %1439 = vmatprep.mubr.bf16.mxu1 %v108_v33 }
  0x5a   :  { %1408 = vmatmul.mubr.bf16.gmra.mrb[28].mxu0 %v93_v38  ;;  %1440 = vmatmul.mubr.bf16.gmra.mrb[28].mxu1 %v109_v39 }
  0xf5   :  { %v1381_v40 = vpop.f32.mrb[0].mxu0  ;;  %v1703_v42 = vpop.f32.mrb[0].mxu1 }
  0xf6   :  { %v208_v41 = vpop.f32.mrb[1].mxu0  ;;  %v1705_v44 = vpop.f32.mrb[1].mxu1  ;;  %v854_v55 = vmul.f32 %v1381_v40, %v1381_v40 }
  0xf7   :  { %v1382_v43 = vpop.f32.mrb[2].mxu0  ;;  %v852_v45 = vmul.f32 %v208_v41, %v208_v41  ;;  %v1707_v48 = vpop.f32.mrb[2].mxu1 }
  0xf8   :  { %v1140_v46 = vpack.c.bf16 %v1382_v43, %v1381_v40  ;;  %v211_v47 = vpop.f32.mrb[3].mxu0  ;;  %v1220_v52 = vpack.c.bf16 %v1707_v48, %v1703_v42  ;;  %v1711_v53 = vpop.f32.mrb[3].mxu1  ;;  %v855_v58 = vmul.f32 %v1382_v43, %v1382_v43 }
  0xf9   :  { %v1135_v49 = vpack.c.bf16 %v211_v47, %v208_v41  ;;  %v783_v50 = vadd.f32 %v211_v47, %v208_v41  ;;  %v853_v51 = vmul.f32 %v211_v47, %v211_v47  ;;  %v1215_v54 = vpack.c.bf16 %v1711_v53, %v1705_v44 }
  0xfa   :  { %1292 = vst [vmem:[%s1996_s2 + $0x8] sm:$0xff] %v1140_v46   ;;  %1308 = vst [vmem:[%s1996_s2 + $0x88] sm:$0xff] %v1220_v52  }
  0xfb   :  { %1136 = vst [vmem:[%s1996_s2] sm:$0xff] %v1135_v49   ;;  %v784_v56 = vadd.f32 %v1381_v40, %v783_v50  ;;  %v916_v57 = vadd.f32 %v853_v51, %v852_v45  ;;  %1307 = vst [vmem:[%s1996_s2 + $0x80] sm:$0xff] %v1215_v54  }
  0xfd   :  { %v917_v59 = vadd.f32 %v916_v57, %v854_v55  ;;  %v1385_v60 = vpop.f32.mrb[4].mxu0  ;;  %v785_v61 = vadd.f32 %v1382_v43, %v784_v56  ;;  %v1727_v63 = vpop.f32.mrb[4].mxu1 }
  0xfe   :  { %v224_v62 = vpop.f32.mrb[5].mxu0  ;;  %v1729_v4 = vpop.f32.mrb[5].mxu1  ;;  %v858_v15 = vmul.f32 %v1385_v60, %v1385_v60 }
  0xff   :  { %v786_v0 = vadd.f32 %v785_v61, %v224_v62  ;;  %v856_v1 = vmul.f32 %v224_v62, %v224_v62  ;;  %v918_v2 = vadd.f32 %v917_v59, %v855_v58  ;;  %v1386_v3 = vpop.f32.mrb[6].mxu0  ;;  %v1731_v7 = vpop.f32.mrb[6].mxu1 }
 0x100   :  { %v1150_v5 = vpack.c.bf16 %v1386_v3, %v1385_v60  ;;  %v227_v6 = vpop.f32.mrb[7].mxu0  ;;  %v1733_v12 = vpop.f32.mrb[7].mxu1  ;;  %v1230_v13 = vpack.c.bf16 %v1731_v7, %v1727_v63  ;;  %v859_v18 = vmul.f32 %v1386_v3, %v1386_v3 }
 0x101   :  { %v919_v8 = vadd.f32 %v918_v2, %v856_v1  ;;  %v1145_v9 = vpack.c.bf16 %v227_v6, %v224_v62  ;;  %v787_v10 = vadd.f32 %v786_v0, %v227_v6  ;;  %v857_v11 = vmul.f32 %v227_v6, %v227_v6 }
 0x102   :  { %1294 = vst [vmem:[%s1996_s2 + $0x18] sm:$0xff] %v1150_v5   ;;  %v1225_v14 = vpack.c.bf16 %v1733_v12, %v1729_v4  ;;  %1310 = vst [vmem:[%s1996_s2 + $0x98] sm:$0xff] %v1230_v13  }
 0x103   :  { %1293 = vst [vmem:[%s1996_s2 + $0x10] sm:$0xff] %v1145_v9   ;;  %v788_v16 = vadd.f32 %v1385_v60, %v787_v10  ;;  %v920_v17 = vadd.f32 %v919_v8, %v857_v11 }
 0x104   :  { %1309 = vst [vmem:[%s1996_s2 + $0x90] sm:$0xff] %v1225_v14  }
 0x105   :  { %v921_v19 = vadd.f32 %v920_v17, %v858_v15  ;;  %v1389_v20 = vpop.f32.mrb[8].mxu0  ;;  %v789_v21 = vadd.f32 %v1386_v3, %v788_v16  ;;  %v1751_v23 = vpop.f32.mrb[8].mxu1 }
 0x106   :  { %v240_v22 = vpop.f32.mrb[9].mxu0  ;;  %v1753_v28 = vpop.f32.mrb[9].mxu1  ;;  %v862_v39 = vmul.f32 %v1389_v20, %v1389_v20 }
 0x107   :  { %v790_v24 = vadd.f32 %v789_v21, %v240_v22  ;;  %v860_v25 = vmul.f32 %v240_v22, %v240_v22  ;;  %v922_v26 = vadd.f32 %v921_v19, %v859_v18  ;;  %v1390_v27 = vpop.f32.mrb[10].mxu0  ;;  %v1755_v31 = vpop.f32.mrb[10].mxu1 }
 0x108   :  { %v1160_v29 = vpack.c.bf16 %v1390_v27, %v1389_v20  ;;  %v243_v30 = vpop.f32.mrb[11].mxu0  ;;  %v1757_v36 = vpop.f32.mrb[11].mxu1  ;;  %v1240_v37 = vpack.c.bf16 %v1755_v31, %v1751_v23  ;;  %v863_v43 = vmul.f32 %v1390_v27, %v1390_v27 }
 0x109   :  { %v923_v32 = vadd.f32 %v922_v26, %v860_v25  ;;  %v1155_v33 = vpack.c.bf16 %v243_v30, %v240_v22  ;;  %v791_v34 = vadd.f32 %v790_v24, %v243_v30  ;;  %v861_v35 = vmul.f32 %v243_v30, %v243_v30 }
 0x10a   :  { %1296 = vst [vmem:[%s1996_s2 + $0x28] sm:$0xff] %v1160_v29   ;;  %v1235_v38 = vpack.c.bf16 %v1757_v36, %v1753_v28  ;;  %1312 = vst [vmem:[%s1996_s2 + $0xa8] sm:$0xff] %v1240_v37  }
 0x10b   :  { %1295 = vst [vmem:[%s1996_s2 + $0x20] sm:$0xff] %v1155_v33   ;;  %v792_v40 = vadd.f32 %v1389_v20, %v791_v34  ;;  %v924_v41 = vadd.f32 %v923_v32, %v861_v35 }
 0x10c   :  { %1311 = vst [vmem:[%s1996_s2 + $0xa0] sm:$0xff] %v1235_v38  }
 0x10d   :  { %v925_v45 = vadd.f32 %v924_v41, %v862_v39  ;;  %v1393_v46 = vpop.f32.mrb[12].mxu0  ;;  %v793_v47 = vadd.f32 %v1390_v27, %v792_v40  ;;  %v1775_v50 = vpop.f32.mrb[12].mxu1 }
 0x10e   :  { %v256_v49 = vpop.f32.mrb[13].mxu0  ;;  %v1777_v56 = vpop.f32.mrb[13].mxu1  ;;  %v866_v5 = vmul.f32 %v1393_v46, %v1393_v46 }
 0x10f   :  { %v794_v51 = vadd.f32 %v793_v47, %v256_v49  ;;  %v864_v52 = vmul.f32 %v256_v49, %v256_v49  ;;  %v926_v54 = vadd.f32 %v925_v45, %v863_v43  ;;  %v1394_v55 = vpop.f32.mrb[14].mxu0  ;;  %v1779_v59 = vpop.f32.mrb[14].mxu1 }
 0x110   :  { %v1170_v57 = vpack.c.bf16 %v1394_v55, %v1393_v46  ;;  %v259_v58 = vpop.f32.mrb[15].mxu0  ;;  %v1781_v1 = vpop.f32.mrb[15].mxu1  ;;  %v1250_v2 = vpack.c.bf16 %v1779_v59, %v1775_v50  ;;  %v867_v9 = vmul.f32 %v1394_v55, %v1394_v55 }
 0x111   :  { %v927_v60 = vadd.f32 %v926_v54, %v864_v52  ;;  %v1165_v61 = vpack.c.bf16 %v259_v58, %v256_v49  ;;  %v795_v62 = vadd.f32 %v794_v51, %v259_v58  ;;  %v865_v0 = vmul.f32 %v259_v58, %v259_v58 }
 0x112   :  { %1298 = vst [vmem:[%s1996_s2 + $0x38] sm:$0xff] %v1170_v57   ;;  %v1245_v3 = vpack.c.bf16 %v1781_v1, %v1777_v56  ;;  %1314 = vst [vmem:[%s1996_s2 + $0xb8] sm:$0xff] %v1250_v2  }
 0x113   :  { %1297 = vst [vmem:[%s1996_s2 + $0x30] sm:$0xff] %v1165_v61   ;;  %v796_v6 = vadd.f32 %v1393_v46, %v795_v62  ;;  %v928_v8 = vadd.f32 %v927_v60, %v865_v0 }
 0x114   :  { %1313 = vst [vmem:[%s1996_s2 + $0xb0] sm:$0xff] %v1245_v3  }
 0x115   :  { %v929_v10 = vadd.f32 %v928_v8, %v866_v5  ;;  %v1397_v11 = vpop.f32.mrb[16].mxu0  ;;  %v797_v13 = vadd.f32 %v1394_v55, %v796_v6  ;;  %v1799_v15 = vpop.f32.mrb[16].mxu1 }
 0x116   :  { %v272_v14 = vpop.f32.mrb[17].mxu0  ;;  %v1801_v20 = vpop.f32.mrb[17].mxu1  ;;  %v870_v34 = vmul.f32 %v1397_v11, %v1397_v11 }
 0x117   :  { %v798_v16 = vadd.f32 %v797_v13, %v272_v14  ;;  %v868_v17 = vmul.f32 %v272_v14, %v272_v14  ;;  %v930_v18 = vadd.f32 %v929_v10, %v867_v9  ;;  %v1398_v19 = vpop.f32.mrb[18].mxu0  ;;  %v1803_v24 = vpop.f32.mrb[18].mxu1 }
 0x118   :  { %v1180_v21 = vpack.c.bf16 %v1398_v19, %v1397_v11  ;;  %v275_v22 = vpop.f32.mrb[19].mxu0  ;;  %v1805_v30 = vpop.f32.mrb[19].mxu1  ;;  %v1260_v32 = vpack.c.bf16 %v1803_v24, %v1799_v15  ;;  %v871_v38 = vmul.f32 %v1398_v19, %v1398_v19 }
 0x119   :  { %v931_v25 = vadd.f32 %v930_v18, %v868_v17  ;;  %v1175_v26 = vpack.c.bf16 %v275_v22, %v272_v14  ;;  %v799_v27 = vadd.f32 %v798_v16, %v275_v22  ;;  %v869_v29 = vmul.f32 %v275_v22, %v275_v22 }
 0x11a   :  { %1300 = vst [vmem:[%s1996_s2 + $0x48] sm:$0xff] %v1180_v21   ;;  %v1255_v33 = vpack.c.bf16 %v1805_v30, %v1801_v20  ;;  %1316 = vst [vmem:[%s1996_s2 + $0xc8] sm:$0xff] %v1260_v32  }
 0x11b   :  { %1299 = vst [vmem:[%s1996_s2 + $0x40] sm:$0xff] %v1175_v26   ;;  %v800_v35 = vadd.f32 %v1397_v11, %v799_v27  ;;  %v932_v37 = vadd.f32 %v931_v25, %v869_v29 }
 0x11c   :  { %1315 = vst [vmem:[%s1996_s2 + $0xc0] sm:$0xff] %v1255_v33  }
 0x11d   :  { %v933_v39 = vadd.f32 %v932_v37, %v870_v34  ;;  %v1401_v40 = vpop.f32.mrb[20].mxu0  ;;  %v801_v41 = vadd.f32 %v1398_v19, %v800_v35  ;;  %v1823_v45 = vpop.f32.mrb[20].mxu1 }
 0x11e   :  { %v288_v43 = vpop.f32.mrb[21].mxu0  ;;  %v1825_v52 = vpop.f32.mrb[21].mxu1  ;;  %v874_v5 = vmul.f32 %v1401_v40, %v1401_v40 }
 0x11f   :  { %v802_v46 = vadd.f32 %v801_v41, %v288_v43  ;;  %v872_v47 = vmul.f32 %v288_v43, %v288_v43  ;;  %v934_v49 = vadd.f32 %v933_v39, %v871_v38  ;;  %v1402_v51 = vpop.f32.mrb[22].mxu0  ;;  %v1827_v57 = vpop.f32.mrb[22].mxu1 }
 0x120   :  { %v1190_v54 = vpack.c.bf16 %v1402_v51, %v1401_v40  ;;  %v291_v55 = vpop.f32.mrb[23].mxu0  ;;  %v1829_v0 = vpop.f32.mrb[23].mxu1  ;;  %v1270_v2 = vpack.c.bf16 %v1827_v57, %v1823_v45  ;;  %v875_v9 = vmul.f32 %v1402_v51, %v1402_v51 }
 0x121   :  { %v935_v58 = vadd.f32 %v934_v49, %v872_v47  ;;  %v1185_v60 = vpack.c.bf16 %v291_v55, %v288_v43  ;;  %v803_v61 = vadd.f32 %v802_v46, %v291_v55  ;;  %v873_v62 = vmul.f32 %v291_v55, %v291_v55 }
 0x122   :  { %1302 = vst [vmem:[%s1996_s2 + $0x58] sm:$0xff] %v1190_v54   ;;  %v1265_v3 = vpack.c.bf16 %v1829_v0, %v1825_v52  ;;  %1318 = vst [vmem:[%s1996_s2 + $0xd8] sm:$0xff] %v1270_v2  }
 0x123   :  { %1301 = vst [vmem:[%s1996_s2 + $0x50] sm:$0xff] %v1185_v60   ;;  %v804_v6 = vadd.f32 %v1401_v40, %v803_v61  ;;  %v936_v8 = vadd.f32 %v935_v58, %v873_v62 }
 0x124   :  { %1317 = vst [vmem:[%s1996_s2 + $0xd0] sm:$0xff] %v1265_v3  }
 0x125   :  { %v937_v10 = vadd.f32 %v936_v8, %v874_v5  ;;  %v1405_v11 = vpop.f32.mrb[24].mxu0  ;;  %v805_v13 = vadd.f32 %v1402_v51, %v804_v6  ;;  %v1847_v16 = vpop.f32.mrb[24].mxu1 }
 0x126   :  { %v304_v14 = vpop.f32.mrb[25].mxu0  ;;  %v1849_v22 = vpop.f32.mrb[25].mxu1  ;;  %v878_v39 = vmul.f32 %v1405_v11, %v1405_v11 }
 0x127   :  { %v806_v17 = vadd.f32 %v805_v13, %v304_v14  ;;  %v876_v18 = vmul.f32 %v304_v14, %v304_v14  ;;  %v938_v19 = vadd.f32 %v937_v10, %v875_v9  ;;  %v1406_v21 = vpop.f32.mrb[26].mxu0  ;;  %v1851_v27 = vpop.f32.mrb[26].mxu1 }
 0x128   :  { %v1200_v25 = vpack.c.bf16 %v1406_v21, %v1405_v11  ;;  %v307_v26 = vpop.f32.mrb[27].mxu0  ;;  %v1853_v35 = vpop.f32.mrb[27].mxu1  ;;  %v1280_v37 = vpack.c.bf16 %v1851_v27, %v1847_v16  ;;  %v879_v43 = vmul.f32 %v1406_v21, %v1406_v21 }
 0x129   :  { %v939_v29 = vadd.f32 %v938_v19, %v876_v18  ;;  %v1195_v32 = vpack.c.bf16 %v307_v26, %v304_v14  ;;  %v807_v33 = vadd.f32 %v806_v17, %v307_v26  ;;  %v877_v34 = vmul.f32 %v307_v26, %v307_v26 }
 0x12a   :  { %1304 = vst [vmem:[%s1996_s2 + $0x68] sm:$0xff] %v1200_v25   ;;  %v1275_v38 = vpack.c.bf16 %v1853_v35, %v1849_v22  ;;  %1320 = vst [vmem:[%s1996_s2 + $0xe8] sm:$0xff] %v1280_v37  }
 0x12b   :  { %1303 = vst [vmem:[%s1996_s2 + $0x60] sm:$0xff] %v1195_v32   ;;  %v808_v40 = vadd.f32 %v1405_v11, %v807_v33  ;;  %v940_v41 = vadd.f32 %v939_v29, %v877_v34  ;;  %v884_v29 = vmul.f32 %v1705_v44, %v1705_v44 }
 0x12c   :  { %1319 = vst [vmem:[%s1996_s2 + $0xe0] sm:$0xff] %v1275_v38   ;;  %v885_v38 = vmul.f32 %v1711_v53, %v1711_v53 }
 0x12d   :  { %v941_v46 = vadd.f32 %v940_v41, %v878_v39  ;;  %v1409_v47 = vpop.f32.mrb[28].mxu0  ;;  %v809_v49 = vadd.f32 %v1406_v21, %v808_v40  ;;  %v1871_v54 = vpop.f32.mrb[28].mxu1  ;;  %v886_v39 = vmul.f32 %v1703_v42, %v1703_v42 }
 0x12e   :  { %v320_v51 = vpop.f32.mrb[29].mxu0  ;;  %v1873_v62 = vpop.f32.mrb[29].mxu1  ;;  %v882_v17 = vmul.f32 %v1409_v47, %v1409_v47 }
 0x12f   :  { %v810_v55 = vadd.f32 %v809_v49, %v320_v51  ;;  %v880_v58 = vmul.f32 %v320_v51, %v320_v51  ;;  %v942_v60 = vadd.f32 %v941_v46, %v879_v43  ;;  %v1410_v61 = vpop.f32.mrb[30].mxu0  ;;  %v1875_v5 = vpop.f32.mrb[30].mxu1  ;;  %v887_v43 = vmul.f32 %v1707_v48, %v1707_v48 }
 0x130   :  { %v1210_v2 = vpack.c.bf16 %v1410_v61, %v1409_v47  ;;  %v323_v3 = vpop.f32.mrb[31].mxu0  ;;  %v1877_v11 = vpop.f32.mrb[31].mxu1  ;;  %v1290_v13 = vpack.c.bf16 %v1875_v5, %v1871_v54  ;;  %v883_v21 = vmul.f32 %v1410_v61, %v1410_v61 }
 0x131   :  { %v943_v6 = vadd.f32 %v942_v60, %v880_v58  ;;  %v1205_v8 = vpack.c.bf16 %v323_v3, %v320_v51  ;;  %v811_v9 = vadd.f32 %v810_v55, %v323_v3  ;;  %v881_v10 = vmul.f32 %v323_v3, %v323_v3 }
 0x132   :  { %1306 = vst [vmem:[%s1996_s2 + $0x78] sm:$0xff] %v1210_v2   ;;  %v1285_v14 = vpack.c.bf16 %v1877_v11, %v1873_v62  ;;  %1322 = vst [vmem:[%s1996_s2 + $0xf8] sm:$0xff] %v1290_v13   ;;  %v889_v58 = vmul.f32 %v1733_v12, %v1733_v12 }
 0x133   :  { %1305 = vst [vmem:[%s1996_s2 + $0x70] sm:$0xff] %v1205_v8   ;;  %v812_v18 = vadd.f32 %v1409_v47, %v811_v9  ;;  %v944_v19 = vadd.f32 %v943_v6, %v881_v10  ;;  %v893_v10 = vmul.f32 %v1757_v36, %v1757_v36 }
 0x134   :  { %1321 = vst [vmem:[%s1996_s2 + $0xf0] sm:$0xff] %v1285_v14  }
 0x135   :  { %v945_v25 = vadd.f32 %v944_v19, %v882_v17  ;;  %v813_v26 = vadd.f32 %v1410_v61, %v812_v18 }
 0x137   :  { %v814_v32 = vadd.f32 %v813_v26, %v1705_v44  ;;  %v946_v33 = vadd.f32 %v945_v25, %v883_v21  ;;  %v888_v44 = vmul.f32 %v1729_v4, %v1729_v4  ;;  %v897_v26 = vmul.f32 %v1781_v1, %v1781_v1 }
 0x139   :  { %v947_v34 = vadd.f32 %v946_v33, %v884_v29  ;;  %v815_v37 = vadd.f32 %v814_v32, %v1711_v53 }
 0x13b   :  { %v816_v40 = vadd.f32 %v1703_v42, %v815_v37  ;;  %v948_v41 = vadd.f32 %v947_v34, %v885_v38  ;;  %v890_v42 = vmul.f32 %v1727_v63, %v1727_v63 }
 0x13d   :  { %v949_v46 = vadd.f32 %v948_v41, %v886_v39  ;;  %v817_v47 = vadd.f32 %v1707_v48, %v816_v40  ;;  %v891_v48 = vmul.f32 %v1731_v7, %v1731_v7  ;;  %v901_v40 = vmul.f32 %v1805_v30, %v1805_v30 }
 0x13f   :  { %v818_v49 = vadd.f32 %v817_v47, %v1729_v4  ;;  %v950_v51 = vadd.f32 %v949_v46, %v887_v43  ;;  %v892_v4 = vmul.f32 %v1753_v28, %v1753_v28 }
 0x141   :  { %v951_v55 = vadd.f32 %v950_v51, %v888_v44  ;;  %v819_v53 = vadd.f32 %v818_v49, %v1733_v12 }
 0x143   :  { %v820_v60 = vadd.f32 %v1727_v63, %v819_v53  ;;  %v952_v61 = vadd.f32 %v951_v55, %v889_v58  ;;  %v894_v63 = vmul.f32 %v1751_v23, %v1751_v23  ;;  %v905_v55 = vmul.f32 %v1829_v0, %v1829_v0 }
 0x145   :  { %v953_v2 = vadd.f32 %v952_v61, %v890_v42  ;;  %v821_v3 = vadd.f32 %v1731_v7, %v820_v60  ;;  %v895_v7 = vmul.f32 %v1755_v31, %v1755_v31 }
 0x147   :  { %v822_v6 = vadd.f32 %v821_v3, %v1753_v28  ;;  %v954_v8 = vadd.f32 %v953_v2, %v891_v48  ;;  %v896_v28 = vmul.f32 %v1777_v56, %v1777_v56  ;;  %v909_v3 = vmul.f32 %v1853_v35, %v1853_v35 }
 0x149   :  { %v955_v9 = vadd.f32 %v954_v8, %v892_v4  ;;  %v823_v12 = vadd.f32 %v822_v6, %v1757_v36 }
 0x14b   :  { %v824_v13 = vadd.f32 %v1751_v23, %v823_v12  ;;  %v956_v14 = vadd.f32 %v955_v9, %v893_v10  ;;  %v898_v23 = vmul.f32 %v1775_v50, %v1775_v50 }
 0x14d   :  { %v957_v17 = vadd.f32 %v956_v14, %v894_v63  ;;  %v825_v18 = vadd.f32 %v1755_v31, %v824_v13  ;;  %v899_v31 = vmul.f32 %v1779_v59, %v1779_v59  ;;  %v913_v13 = vmul.f32 %v1877_v11, %v1877_v11 }
 0x14f   :  { %v826_v19 = vadd.f32 %v825_v18, %v1777_v56  ;;  %v958_v21 = vadd.f32 %v957_v17, %v895_v7  ;;  %v900_v56 = vmul.f32 %v1801_v20, %v1801_v20 }
 0x151   :  { %v959_v25 = vadd.f32 %v958_v21, %v896_v28  ;;  %v827_v36 = vadd.f32 %v826_v19, %v1781_v1 }
 0x153   :  { %v828_v29 = vadd.f32 %v1775_v50, %v827_v36  ;;  %v960_v32 = vadd.f32 %v959_v25, %v897_v26  ;;  %v902_v50 = vmul.f32 %v1799_v15, %v1799_v15 }
 0x155   :  { %v961_v33 = vadd.f32 %v960_v32, %v898_v23  ;;  %v829_v34 = vadd.f32 %v1779_v59, %v828_v29  ;;  %v903_v59 = vmul.f32 %v1803_v24, %v1803_v24 }
 0x157   :  { %v830_v37 = vadd.f32 %v829_v34, %v1801_v20  ;;  %v962_v38 = vadd.f32 %v961_v33, %v899_v31  ;;  %v904_v20 = vmul.f32 %v1825_v52, %v1825_v52 }
 0x159   :  { %v963_v39 = vadd.f32 %v962_v38, %v900_v56  ;;  %v831_v1 = vadd.f32 %v830_v37, %v1805_v30 }
 0x15b   :  { %v832_v41 = vadd.f32 %v1799_v15, %v831_v1  ;;  %v964_v43 = vadd.f32 %v963_v39, %v901_v40  ;;  %v906_v15 = vmul.f32 %v1823_v45, %v1823_v45 }
 0x15d   :  { %v965_v46 = vadd.f32 %v964_v43, %v902_v50  ;;  %v833_v47 = vadd.f32 %v1803_v24, %v832_v41  ;;  %v907_v24 = vmul.f32 %v1827_v57, %v1827_v57 }
 0x15f   :  { %v834_v44 = vadd.f32 %v833_v47, %v1825_v52  ;;  %v966_v49 = vadd.f32 %v965_v46, %v903_v59  ;;  %v908_v52 = vmul.f32 %v1849_v22, %v1849_v22 }
 0x161   :  { %v967_v51 = vadd.f32 %v966_v49, %v904_v20  ;;  %v835_v30 = vadd.f32 %v834_v44, %v1829_v0 }
 0x163   :  { %v836_v53 = vadd.f32 %v1823_v45, %v835_v30  ;;  %v968_v58 = vadd.f32 %v967_v51, %v905_v55  ;;  %v910_v45 = vmul.f32 %v1847_v16, %v1847_v16 }
 0x165   :  { %v969_v42 = vadd.f32 %v968_v58, %v906_v15  ;;  %v837_v60 = vadd.f32 %v1827_v57, %v836_v53  ;;  %v911_v57 = vmul.f32 %v1851_v27, %v1851_v27 }
 0x167   :  { %v838_v61 = vadd.f32 %v837_v60, %v1849_v22  ;;  %v970_v48 = vadd.f32 %v969_v42, %v907_v24  ;;  %v912_v22 = vmul.f32 %v1873_v62, %v1873_v62 }
 0x169   :  { %v971_v2 = vadd.f32 %v970_v48, %v908_v52  ;;  %v839_v0 = vadd.f32 %v838_v61, %v1853_v35 }
 0x16b   :  { %v840_v4 = vadd.f32 %v1847_v16, %v839_v0  ;;  %v972_v6 = vadd.f32 %v971_v2, %v909_v3  ;;  %v914_v16 = vmul.f32 %v1871_v54, %v1871_v54 }
 0x16d   :  { %v973_v8 = vadd.f32 %v972_v6, %v910_v45  ;;  %v841_v9 = vadd.f32 %v1851_v27, %v840_v4  ;;  %v915_v27 = vmul.f32 %v1875_v5, %v1875_v5 }
 0x16f   :  { %v842_v12 = vadd.f32 %v841_v9, %v1873_v62  ;;  %v974_v10 = vadd.f32 %v973_v8, %v911_v57 }
 0x171   :  { %v975_v63 = vadd.f32 %v974_v10, %v912_v22  ;;  %v843_v35 = vadd.f32 %v842_v12, %v1877_v11 }
 0x173   :  { %v844_v14 = vadd.f32 %v1871_v54, %v843_v35  ;;  %v976_v7 = vadd.f32 %v975_v63, %v913_v13 }
 0x175   :  { %v845_v17 = vadd.f32 %v1875_v5, %v844_v14  ;;  %v977_v18 = vadd.f32 %v976_v7, %v914_v16 }
 0x177   :  { %v846_v62 = vrot.slane %v845_v17, 4  ;;  %v978_v28 = vadd.f32 %v977_v18, %v915_v27 }
 0x179   :  { %v847_v19 = vadd.f32 %v846_v62, %v845_v17  ;;  %v979_v21 = vrot.slane %v978_v28, 4 }
 0x17b   :  { %v848_v25 = vrot.slane %v847_v19, 2  ;;  %v980_v36 = vadd.f32 %v979_v21, %v978_v28 }
 0x17d   :  { %v849_v26 = vadd.f32 %v848_v25, %v847_v19  ;;  %v981_v11 = vrot.slane %v980_v36, 2 }
 0x17f   :  { %v850_v23 = vrot.slane %v849_v26, 1  ;;  %v982_v29 = vadd.f32 %v981_v11, %v980_v36 }
 0x181   :  { %v983_v32 = vrot.slane %v982_v29, 1  ;;  %v851_v54 = vadd.f32 %v850_v23, %v849_v26 }
 0x183   :  { %v984_v31 = vadd.f32 %v983_v32, %v982_v29 }
 0x185   :  { %v986_v33 = vsel %vm985_vm0, %v851_v54, %v984_v31 }
 0x186   :  { %987 = vst [vmem:[%s1997_s3] sm:$0x3] %v986_v33 }

// kernel: bottleneck_forward.6
= control target key start
LH: loop header
LB: loop body
LE: loop exit
PB: predicated region body
PF: predicated region fallthrough
CT: control target
= control target key end

     0   :  { %vm1261_vm0 = vcmask 1040384   ;;  %s2517_s3 = inlined_call_operand.vmem [shape: bf16[128,128], index: 3, kind: input, shape index: {}]   ;;  %s2518_s0 = inlined_call_operand.vmem [shape: bf16[512,128], index: 0, kind: input, shape index: {}]   ;;  %s2519_s1 = inlined_call_operand.vmem [shape: f32[1,128], index: 1, kind: input, shape index: {}]   ;;  %s2520_s2 = inlined_call_operand.vmem [shape: f32[1,128], index: 2, kind: input, shape index: {}]   ;;  %s2521_s4 = inlined_call_operand.vmem [shape: bf16[512,128], index: 4, kind: output, shape index: {0}]   ;;  %s2522_s5 = inlined_call_operand.vmem [shape: f32[1,2,128], index: 5, kind: output, shape index: {1}]  }
   0x1   :  { %v1896_v0 = vld [vmem:[%s2517_s3] sm:$0xff]   ;;  %v1897_v1 = vld [vmem:[%s2517_s3 + $0x8] sm:$0xff]   ;;  %v1898_v2 = vld [vmem:[%s2517_s3 + $0x10] sm:$0xff]  }
   0x2   :  { %1800 = vmatprep.subr.bf16.mxu0 %v1896_v0  ;;  %1880 = vmatprep.subr.bf16.mxu1 %v1896_v0  ;;  %v1899_v3 = vld [vmem:[%s2517_s3 + $0x18] sm:$0xff]   ;;  %v1411_v4 = vld [vmem:[%s2518_s0] sm:$0xff]   ;;  %v1698_v8 = vld [vmem:[%s2518_s0 + $0x8] sm:$0xff]  }
   0x3   :  { %1801 = vmatpush3.bf16.msra.mxu0 %v1896_v0  ;;  %1888 = vmatpush3.bf16.msra.mxu1 %v1896_v0  ;;  %v1952_v5 = vld [vmem:[%s2519_s1] ss:$0 sm:$0xff]  ;;  %v1412_v6 = vunpack.c.l.bf16 %v1411_v4  ;;  %v1413_v7 = vunpack.c.h.bf16 %v1411_v4  ;;  %v1699_v9 = vld [vmem:[%s2518_s0 + $0x10] sm:$0xff]   ;;  %v1416_v14 = vunpack.c.l.bf16 %v1698_v8  ;;  %v1417_v15 = vunpack.c.h.bf16 %v1698_v8  ;;  %v1901_v22 = vld [vmem:[%s2517_s3 + $0x28] sm:$0xff]  }
   0x4   :  { %1802 = vmatprep.subr.bf16.mxu0 %v1897_v1  ;;  %1881 = vmatprep.subr.bf16.mxu1 %v1897_v1  ;;  %v1963_v10 = vld [vmem:[%s2520_s2] ss:$0 sm:$0xff]  ;;  %v1420_v16 = vunpack.c.l.bf16 %v1699_v9  ;;  %v1421_v19 = vunpack.c.h.bf16 %v1699_v9  ;;  %v1700_v26 = vld [vmem:[%s2518_s0 + $0x18] sm:$0xff]   ;;  %v1902_v31 = vld [vmem:[%s2517_s3 + $0x30] sm:$0xff]  }
   0x5   :  { %v155_v11 = vmul.f32 %v1412_v6, %v1952_v5  ;;  %v156_v12 = vmul.f32 %v1413_v7, %v1952_v5  ;;  %v1900_v13 = vld [vmem:[%s2517_s3 + $0x20] sm:$0xff]   ;;  %v157_v23 = vmul.f32 %v1416_v14, %v1952_v5  ;;  %v158_v24 = vmul.f32 %v1417_v15, %v1952_v5  ;;  %v1702_v38 = vld [vmem:[%s2518_s0 + $0x28] sm:$0xff]   ;;  %v1703_v41 = vld [vmem:[%s2518_s0 + $0x30] sm:$0xff]  }
   0x6   :  { %v159_v25 = vmul.f32 %v1420_v16, %v1952_v5  ;;  %v160_v28 = vmul.f32 %v1421_v19, %v1952_v5  ;;  %v1701_v29 = vld [vmem:[%s2518_s0 + $0x20] sm:$0xff]   ;;  %v1424_v30 = vunpack.c.l.bf16 %v1700_v26  ;;  %v1425_v35 = vunpack.c.h.bf16 %v1700_v26  ;;  %v1704_v42 = vld [vmem:[%s2518_s0 + $0x38] sm:$0xff]   ;;  %v1706_v63 = vld [vmem:[%s2518_s0 + $0x48] sm:$0xff]  }
   0x7   :  { %1803 = vmatpush3.bf16.msra.mxu0 %v1897_v1  ;;  %1889 = vmatpush3.bf16.msra.mxu1 %v1897_v1  ;;  %v226_v17 = vadd.f32 %v1963_v10, %v155_v11  ;;  %v227_v18 = vadd.f32 %v1963_v10, %v156_v12  ;;  %v228_v32 = vadd.f32 %v1963_v10, %v157_v23  ;;  %v1428_v37 = vunpack.c.l.bf16 %v1701_v29  ;;  %v1903_v43 = vld [vmem:[%s2517_s3 + $0x38] sm:$0xff]   ;;  %v1705_v48 = vld [vmem:[%s2518_s0 + $0x40] sm:$0xff]   ;;  %v1707_v4 = vld [vmem:[%s2518_s0 + $0x50] sm:$0xff]  }
   0x8   :  { %1804 = vmatprep.subr.bf16.mxu0 %v1898_v2  ;;  %1882 = vmatprep.subr.bf16.mxu1 %v1898_v2  ;;  %v229_v33 = vadd.f32 %v1963_v10, %v158_v24  ;;  %v230_v34 = vadd.f32 %v1963_v10, %v159_v25  ;;  %v231_v36 = vadd.f32 %v1963_v10, %v160_v28  ;;  %v1429_v40 = vunpack.c.h.bf16 %v1701_v29  ;;  %v1708_v23 = vld [vmem:[%s2518_s0 + $0x58] sm:$0xff]  }
   0x9   :  { %v290_v20 = vmax.f32 %v226_v17, 0.0  ;;  %v291_v21 = vmax.f32 %v227_v18, 0.0  ;;  %v161_v39 = vmul.f32 %v1424_v30, %v1952_v5  ;;  %v292_v44 = vmax.f32 %v228_v32, 0.0 }
   0xa   :  { %v293_v45 = vmax.f32 %v229_v33, 0.0  ;;  %v294_v46 = vmax.f32 %v230_v34, 0.0  ;;  %v162_v47 = vmul.f32 %v1425_v35, %v1952_v5  ;;  %v295_v49 = vmax.f32 %v231_v36, 0.0 }
   0xb   :  { %1805 = vmatpush3.bf16.msra.mxu0 %v1898_v2  ;;  %1890 = vmatpush3.bf16.msra.mxu1 %v1898_v2  ;;  %v354_v27 = vpack.c.bf16 %v291_v21, %v290_v20  ;;  %v163_v50 = vmul.f32 %v1428_v37, %v1952_v5  ;;  %v1432_v51 = vunpack.c.l.bf16 %v1702_v38  ;;  %v1433_v52 = vunpack.c.h.bf16 %v1702_v38 }
   0xc   :  { %1806 = vmatprep.subr.bf16.mxu0 %v1899_v3  ;;  %1883 = vmatprep.subr.bf16.mxu1 %v1899_v3  ;;  %v1436_v53 = vunpack.c.l.bf16 %v1703_v41  ;;  %v1437_v54 = vunpack.c.h.bf16 %v1703_v41  ;;  %v1440_v55 = vunpack.c.l.bf16 %v1704_v42  ;;  %v1441_v56 = vunpack.c.h.bf16 %v1704_v42 }
   0xd   :  { %1816 = vmatprep.mubr.bf16.mxu0 %v354_v27  ;;  %v164_v57 = vmul.f32 %v1429_v40, %v1952_v5  ;;  %v1444_v58 = vunpack.c.l.bf16 %v1705_v48  ;;  %v1445_v59 = vunpack.c.h.bf16 %v1705_v48  ;;  %v355_v60 = vpack.c.bf16 %v293_v45, %v292_v44  ;;  %v1713_v44 = vld [vmem:[%s2518_s0 + $0x80] sm:$0xff]  }
   0xe   :  { %v232_v61 = vadd.f32 %v1963_v10, %v161_v39  ;;  %v233_v62 = vadd.f32 %v1963_v10, %v162_v47  ;;  %v356_v0 = vpack.c.bf16 %v295_v49, %v294_v46  ;;  %v234_v1 = vadd.f32 %v1963_v10, %v163_v50 }
   0xf   :  { %1807 = vmatpush3.bf16.msra.mxu0 %v1899_v3  ;;  %1891 = vmatpush3.bf16.msra.mxu1 %v1899_v3  ;;  %v165_v2 = vmul.f32 %v1432_v51, %v1952_v5  ;;  %v166_v3 = vmul.f32 %v1433_v52, %v1952_v5  ;;  %v167_v6 = vmul.f32 %v1436_v53, %v1952_v5  ;;  %v1448_v14 = vunpack.c.l.bf16 %v1706_v63  ;;  %v2056_v52 = vld [vmem:[%s2518_s0 + $0x60] sm:$0xff]  }
  0x10   :  { %1808 = vmatprep.subr.bf16.mxu0 %v1900_v13  ;;  %1884 = vmatprep.subr.bf16.mxu1 %v1900_v13  ;;  %v168_v7 = vmul.f32 %v1437_v54, %v1952_v5  ;;  %v169_v8 = vmul.f32 %v1440_v55, %v1952_v5  ;;  %v170_v9 = vmul.f32 %v1441_v56, %v1952_v5  ;;  %v296_v15 = vmax.f32 %v232_v61, 0.0 }
  0x11   :  { %v235_v11 = vadd.f32 %v1963_v10, %v164_v57  ;;  %v171_v12 = vmul.f32 %v1444_v58, %v1952_v5  ;;  %v297_v16 = vmax.f32 %v233_v62, 0.0  ;;  %v1449_v17 = vunpack.c.h.bf16 %v1706_v63 }
  0x12   :  { %v1452_v18 = vunpack.c.l.bf16 %v1707_v4  ;;  %v298_v19 = vmax.f32 %v234_v1, 0.0  ;;  %v236_v20 = vadd.f32 %v1963_v10, %v165_v2  ;;  %v237_v21 = vadd.f32 %v1963_v10, %v166_v3 }
  0x13   :  { %1809 = vmatpush3.bf16.msra.mxu0 %v1900_v13  ;;  %1892 = vmatpush3.bf16.msra.mxu1 %v1900_v13  ;;  %v172_v13 = vmul.f32 %v1445_v59, %v1952_v5  ;;  %v238_v24 = vadd.f32 %v1963_v10, %v167_v6  ;;  %v239_v25 = vadd.f32 %v1963_v10, %v168_v7  ;;  %v299_v28 = vmax.f32 %v235_v11, 0.0  ;;  %v1714_v59 = vld [vmem:[%s2518_s0 + $0x88] sm:$0xff]   ;;  %v1716_v11 = vld [vmem:[%s2518_s0 + $0x98] sm:$0xff]  }
  0x14   :  { %1810 = vmatprep.subr.bf16.mxu0 %v1901_v22  ;;  %1885 = vmatprep.subr.bf16.mxu1 %v1901_v22  ;;  %v240_v26 = vadd.f32 %v1963_v10, %v169_v8  ;;  %v241_v27 = vadd.f32 %v1963_v10, %v170_v9  ;;  %v242_v29 = vadd.f32 %v1963_v10, %v171_v12  ;;  %v1456_v35 = vunpack.c.l.bf16 %v1708_v23 }
  0x15   :  { %v243_v30 = vadd.f32 %v1963_v10, %v172_v13  ;;  %v357_v32 = vpack.c.bf16 %v297_v16, %v296_v15  ;;  %v174_v33 = vmul.f32 %v1449_v17, %v1952_v5  ;;  %v175_v34 = vmul.f32 %v1452_v18, %v1952_v5 }
  0x16   :  { %v300_v36 = vmax.f32 %v236_v20, 0.0  ;;  %v301_v37 = vmax.f32 %v237_v21, 0.0  ;;  %v1457_v39 = vunpack.c.h.bf16 %v1708_v23  ;;  %v302_v40 = vmax.f32 %v238_v24, 0.0  ;;  %v1717_v24 = vld [vmem:[%s2518_s0 + $0xa0] sm:$0xff]  }
  0x17   :  { %1811 = vmatpush3.bf16.msra.mxu0 %v1901_v22  ;;  %1893 = vmatpush3.bf16.msra.mxu1 %v1901_v22  ;;  %v1453_v22 = vunpack.c.h.bf16 %v1707_v4  ;;  %v303_v41 = vmax.f32 %v239_v25, 0.0  ;;  %v304_v42 = vmax.f32 %v240_v26, 0.0  ;;  %v358_v45 = vpack.c.bf16 %v299_v28, %v298_v19 }
  0x18   :  { %1812 = vmatprep.subr.bf16.mxu0 %v1902_v31  ;;  %1886 = vmatprep.subr.bf16.mxu1 %v1902_v31  ;;  %v306_v46 = vmax.f32 %v242_v29, 0.0  ;;  %v307_v47 = vmax.f32 %v243_v30, 0.0  ;;  %v245_v49 = vadd.f32 %v1963_v10, %v174_v33  ;;  %v2050_v50 = vadd.f32 %v1963_v10, %v175_v34  ;;  %v1718_v33 = vld [vmem:[%s2518_s0 + $0xa8] sm:$0xff]  }
  0x19   :  { %v176_v38 = vmul.f32 %v1453_v22, %v1952_v5  ;;  %v177_v51 = vmul.f32 %v1456_v35, %v1952_v5  ;;  %v178_v54 = vmul.f32 %v1457_v39, %v1952_v5  ;;  %v1476_v55 = vunpack.c.l.bf16 %v1713_v44 }
  0x1a   :  { %v359_v56 = vpack.c.bf16 %v301_v37, %v300_v36  ;;  %v360_v57 = vpack.c.bf16 %v303_v41, %v302_v40  ;;  %v1460_v62 = vunpack.c.l.bf16 %v2056_v52  ;;  %v1477_v63 = vunpack.c.h.bf16 %v1713_v44 }
  0x1b   :  { %1813 = vmatpush3.bf16.msra.mxu0 %v1902_v31  ;;  %1894 = vmatpush3.bf16.msra.mxu1 %v1902_v31  ;;  %v173_v31 = vmul.f32 %v1448_v14, %v1952_v5  ;;  %v2059_v53 = vadd.f32 %v1963_v10, %v176_v38  ;;  %v309_v1 = vmax.f32 %v245_v49, 0.0  ;;  %v310_v2 = vmax.f32 %v2050_v50, 0.0 }
  0x1c   :  { %1814 = vmatprep.subr.bf16.mxu0 %v1903_v43  ;;  %1887 = vmatprep.subr.bf16.mxu1 %v1903_v43  ;;  %v2075_v3 = vadd.f32 %v1963_v10, %v177_v51  ;;  %v187_v4 = vmul.f32 %v1476_v55, %v1952_v5  ;;  %v2080_v7 = vadd.f32 %v1963_v10, %v178_v54  ;;  %v1480_v9 = vunpack.c.l.bf16 %v1714_v59 }
  0x1d   :  { %v244_v48 = vadd.f32 %v1963_v10, %v173_v31  ;;  %v311_v6 = vmax.f32 %v2059_v53, 0.0  ;;  %v188_v8 = vmul.f32 %v1477_v63, %v1952_v5  ;;  %v1461_v12 = vunpack.c.h.bf16 %v2056_v52 }
  0x1e   :  { %v258_v13 = vadd.f32 %v1963_v10, %v187_v4  ;;  %v1481_v14 = vunpack.c.h.bf16 %v1714_v59  ;;  %v2089_v16 = vmul.f32 %v1460_v62, %v1952_v5  ;;  %v189_v18 = vmul.f32 %v1480_v9, %v1952_v5 }
  0x1f   :  { %1815 = vmatpush3.bf16.msra.mxu0 %v1903_v43  ;;  %1895 = vmatpush3.bf16.msra.mxu1 %v1903_v43  ;;  %v305_v43 = vmax.f32 %v241_v27, 0.0  ;;  %v308_v61 = vmax.f32 %v244_v48, 0.0  ;;  %v259_v17 = vadd.f32 %v1963_v10, %v188_v8  ;;  %v1488_v23 = vunpack.c.l.bf16 %v1716_v11 }
  0x20   :  { %v322_v20 = vmax.f32 %v258_v13, 0.0  ;;  %v190_v21 = vmul.f32 %v1481_v14, %v1952_v5  ;;  %v260_v27 = vadd.f32 %v1963_v10, %v189_v18  ;;  %v1489_v31 = vunpack.c.h.bf16 %v1716_v11  ;;  %v1721_v18 = vld [vmem:[%s2518_s0 + $0xc0] sm:$0xff]  }
  0x21   :  { %v2062_v58 = vpack.c.bf16 %v305_v43, %v304_v42  ;;  %v2098_v25 = vpack.c.bf16 %v309_v1, %v308_v61  ;;  %v323_v26 = vmax.f32 %v259_v17, 0.0  ;;  %v1492_v37 = vunpack.c.l.bf16 %v1717_v24  ;;  %v1720_v1 = vld [vmem:[%s2518_s0 + $0xb8] sm:$0xff]  }
  0x22   :  { %1817 = vmatmul.mubr.bf16.vlgmr.msra.gmra.mrb[0].mxu0 %v355_v60  ;;  %v2067_v60 = vpack.c.bf16 %v307_v47, %v306_v46  ;;  %v261_v29 = vadd.f32 %v1963_v10, %v190_v21  ;;  %v324_v35 = vmax.f32 %v260_v27, 0.0  ;;  %v194_v40 = vmul.f32 %v1489_v31, %v1952_v5  ;;  %v1719_v46 = vld [vmem:[%s2518_s0 + $0xb0] sm:$0xff]   ;;  %v1710_v47 = vld [vmem:[%s2518_s0 + $0x68] sm:$0xff]  }
  0x23   :  { %1820 = vmatprep.mubr.bf16.mxu0 %v356_v0  ;;  %v1715_v0 = vld [vmem:[%s2518_s0 + $0x90] sm:$0xff]   ;;  %v370_v34 = vpack.c.bf16 %v323_v26, %v322_v20  ;;  %v1493_v43 = vunpack.c.h.bf16 %v1717_v24  ;;  %v195_v44 = vmul.f32 %v1492_v37, %v1952_v5  ;;  %v1497_v54 = vunpack.c.h.bf16 %v1718_v33 }
  0x24   :  { %v1484_v15 = vunpack.c.l.bf16 %v1715_v0  ;;  %v1485_v19 = vunpack.c.h.bf16 %v1715_v0  ;;  %v325_v38 = vmax.f32 %v261_v29, 0.0  ;;  %v265_v49 = vadd.f32 %v1963_v10, %v194_v40  ;;  %v1723_v40 = vld [vmem:[%s2518_s0 + $0xd0] sm:$0xff]  }
  0x25   :  { %1848 = vmatprep.mubr.bf16.mxu1 %v370_v34  ;;  %v198_v62 = vmul.f32 %v1497_v54, %v1952_v5  ;;  %v1500_v63 = vunpack.c.l.bf16 %v1719_v46  ;;  %v1501_v0 = vunpack.c.h.bf16 %v1719_v46  ;;  %v312_v4 = vmax.f32 %v2075_v3, 0.0 }
  0x26   :  { %v191_v22 = vmul.f32 %v1484_v15, %v1952_v5  ;;  %v192_v28 = vmul.f32 %v1485_v19, %v1952_v5  ;;  %v371_v48 = vpack.c.bf16 %v325_v38, %v324_v35  ;;  %v329_v61 = vmax.f32 %v265_v49, 0.0 }
  0x27   :  { %v1464_v8 = vunpack.c.l.bf16 %v1710_v47  ;;  %v313_v13 = vmax.f32 %v2080_v7, 0.0  ;;  %v1465_v14 = vunpack.c.h.bf16 %v1710_v47  ;;  %v199_v15 = vmul.f32 %v1500_v63, %v1952_v5 }
  0x28   :  { %v262_v30 = vadd.f32 %v1963_v10, %v191_v22  ;;  %v263_v36 = vadd.f32 %v1963_v10, %v192_v28  ;;  %1849 = vmatmul.mubr.bf16.vlgmr.msra.gmra.mrb[0].mxu1 %v371_v48  ;;  %v200_v17 = vmul.f32 %v1501_v0, %v1952_v5  ;;  %v180_v3 = vmul.f32 %v1461_v12, %v1952_v5 }
  0x29   :  { %v1504_v19 = vunpack.c.l.bf16 %v1720_v1  ;;  %v1505_v20 = vunpack.c.h.bf16 %v1720_v1  ;;  %v270_v24 = vadd.f32 %v1963_v10, %v199_v15  ;;  %v1508_v27 = vunpack.c.l.bf16 %v1721_v18  ;;  %v1724_v15 = vld [vmem:[%s2518_s0 + $0xd8] sm:$0xff]  }
  0x2a   :  { %1821 = vmatmul.mubr.bf16.gmra.mrb[4].mxu0 %v357_v32  ;;  %v193_v32 = vmul.f32 %v1488_v23, %v1952_v5  ;;  %v326_v39 = vmax.f32 %v262_v30, 0.0  ;;  %v327_v42 = vmax.f32 %v263_v36, 0.0  ;;  %v269_v23 = vadd.f32 %v1963_v10, %v198_v62 }
  0x2b   :  { %1824 = vmatprep.mubr.bf16.mxu0 %v358_v45  ;;  %v1496_v45 = vunpack.c.l.bf16 %v1718_v33  ;;  %v1509_v52 = vunpack.c.h.bf16 %v1721_v18  ;;  %v364_v12 = vpack.c.bf16 %v311_v6, %v310_v2  ;;  %v250_v28 = vadd.f32 %v1963_v10, %v2089_v16  ;;  %v1712_v33 = vld [vmem:[%s2518_s0 + $0x78] sm:$0xff]   ;;  %v1722_v16 = vld [vmem:[%s2518_s0 + $0xc8] sm:$0xff]  }
  0x2c   :  { %v264_v41 = vadd.f32 %v1963_v10, %v193_v32  ;;  %v372_v55 = vpack.c.bf16 %v327_v42, %v326_v39  ;;  %v251_v31 = vadd.f32 %v1963_v10, %v180_v3  ;;  %v181_v32 = vmul.f32 %v1464_v8, %v1952_v5 }
  0x2d   :  { %v197_v59 = vmul.f32 %v1496_v45, %v1952_v5  ;;  %v201_v34 = vmul.f32 %v1504_v19, %v1952_v5  ;;  %v202_v50 = vmul.f32 %v1505_v20, %v1952_v5  ;;  %v365_v35 = vpack.c.bf16 %v313_v13, %v312_v4 }
  0x2e   :  { %v328_v51 = vmax.f32 %v264_v41, 0.0  ;;  %1852 = vmatprep.mubr.bf16.mxu1 %v372_v55  ;;  %v182_v53 = vmul.f32 %v1465_v14, %v1952_v5  ;;  %v333_v6 = vmax.f32 %v269_v23, 0.0  ;;  %v334_v36 = vmax.f32 %v270_v24, 0.0 }
  0x2f   :  { %v268_v22 = vadd.f32 %v1963_v10, %v197_v59  ;;  %v203_v38 = vmul.f32 %v1508_v27, %v1952_v5  ;;  %v204_v39 = vmul.f32 %v1509_v52, %v1952_v5  ;;  %v314_v41 = vmax.f32 %v250_v28, 0.0 }
  0x30   :  { %v373_v21 = vpack.c.bf16 %v329_v61, %v328_v51  ;;  %v315_v45 = vmax.f32 %v251_v31, 0.0  ;;  %v272_v46 = vadd.f32 %v1963_v10, %v201_v34  ;;  %v273_v47 = vadd.f32 %v1963_v10, %v202_v50 }
  0x31   :  { %v332_v2 = vmax.f32 %v268_v22, 0.0  ;;  %v1512_v48 = vunpack.c.l.bf16 %v1722_v16  ;;  %v1513_v51 = vunpack.c.h.bf16 %v1722_v16  ;;  %v1516_v54 = vunpack.c.l.bf16 %v1723_v40 }
  0x32   :  { %1825 = vmatmul.mubr.bf16.gmra.mrb[8].mxu0 %v359_v56  ;;  %v196_v56 = vmul.f32 %v1493_v43, %v1952_v5  ;;  %1853 = vmatmul.mubr.bf16.gmra.mrb[4].mxu1 %v373_v21  ;;  %v1517_v55 = vunpack.c.h.bf16 %v1723_v40  ;;  %v275_v59 = vadd.f32 %v1963_v10, %v204_v39  ;;  %v253_v61 = vadd.f32 %v1963_v10, %v182_v53  ;;  %v1725_v21 = vld [vmem:[%s2518_s0 + $0xe0] sm:$0xff]  }
  0x33   :  { %1828 = vmatprep.mubr.bf16.mxu0 %v360_v57  ;;  %v266_v57 = vadd.f32 %v1963_v10, %v195_v44  ;;  %v1472_v44 = vunpack.c.l.bf16 %v1712_v33  ;;  %v375_v49 = vpack.c.bf16 %v333_v6, %v332_v2  ;;  %v1473_v0 = vunpack.c.h.bf16 %v1712_v33 }
  0x34   :  { %v267_v9 = vadd.f32 %v1963_v10, %v196_v56  ;;  %v252_v56 = vadd.f32 %v1963_v10, %v181_v32  ;;  %v366_v1 = vpack.c.bf16 %v315_v45, %v314_v41  ;;  %v336_v4 = vmax.f32 %v272_v46, 0.0  ;;  %v1727_v41 = vld [vmem:[%s2518_s0 + $0xf0] sm:$0xff]  }
  0x35   :  { %v330_v11 = vmax.f32 %v266_v57, 0.0  ;;  %v274_v57 = vadd.f32 %v1963_v10, %v203_v38  ;;  %v337_v8 = vmax.f32 %v273_v47, 0.0  ;;  %v207_v13 = vmul.f32 %v1516_v54, %v1952_v5 }
  0x36   :  { %v331_v7 = vmax.f32 %v267_v9, 0.0  ;;  %v205_v9 = vmul.f32 %v1512_v48, %v1952_v5  ;;  %v208_v14 = vmul.f32 %v1517_v55, %v1952_v5  ;;  %v339_v3 = vmax.f32 %v275_v59, 0.0 }
  0x37   :  { %v338_v18 = vmax.f32 %v274_v57, 0.0  ;;  %v186_v20 = vmul.f32 %v1473_v0, %v1952_v5  ;;  %v377_v23 = vpack.c.bf16 %v337_v8, %v336_v4  ;;  %v278_v27 = vadd.f32 %v1963_v10, %v207_v13 }
  0x38   :  { %v374_v26 = vpack.c.bf16 %v331_v7, %v330_v11  ;;  %v206_v11 = vmul.f32 %v1513_v51, %v1952_v5  ;;  %v317_v7 = vmax.f32 %v253_v61, 0.0  ;;  %v276_v24 = vadd.f32 %v1963_v10, %v205_v9 }
  0x39   :  { %v279_v52 = vadd.f32 %v1963_v10, %v208_v14  ;;  %v378_v28 = vpack.c.bf16 %v339_v3, %v338_v18  ;;  %v257_v33 = vadd.f32 %v1963_v10, %v186_v20  ;;  %v342_v2 = vmax.f32 %v278_v27, 0.0 }
  0x3a   :  { %1829 = vmatmul.mubr.bf16.gmra.mrb[12].mxu0 %v2062_v58  ;;  %v1711_v58 = vld [vmem:[%s2518_s0 + $0x70] sm:$0xff]   ;;  %1856 = vmatprep.mubr.bf16.mxu1 %v374_v26  ;;  %v1520_v26 = vunpack.c.l.bf16 %v1724_v15  ;;  %v340_v50 = vmax.f32 %v276_v24, 0.0  ;;  %v1532_v51 = vunpack.c.l.bf16 %v1727_v41  ;;  %v1533_v54 = vunpack.c.h.bf16 %v1727_v41 }
  0x3b   :  { %1832 = vmatprep.mubr.bf16.mxu0 %v2067_v60  ;;  %v271_v60 = vadd.f32 %v1963_v10, %v200_v17  ;;  %v1468_v29 = vunpack.c.l.bf16 %v1711_v58  ;;  %v1469_v30 = vunpack.c.h.bf16 %v1711_v58  ;;  %1857 = vmatmul.mubr.bf16.gmra.mrb[8].mxu1 %v375_v49  ;;  %v185_v17 = vmul.f32 %v1472_v44, %v1952_v5 }
  0x3c   :  { %v316_v58 = vmax.f32 %v252_v56, 0.0  ;;  %v343_v6 = vmax.f32 %v279_v52, 0.0  ;;  %v321_v40 = vmax.f32 %v257_v33, 0.0  ;;  %v216_v0 = vmul.f32 %v1533_v54, %v1952_v5 }
  0x3d   :  { %v335_v37 = vmax.f32 %v271_v60, 0.0  ;;  %v183_v42 = vmul.f32 %v1468_v29, %v1952_v5  ;;  %v184_v43 = vmul.f32 %v1469_v30, %v1952_v5  ;;  %v277_v60 = vadd.f32 %v1963_v10, %v206_v11 }
  0x3e   :  { %v1524_v29 = vunpack.c.l.bf16 %v1725_v21  ;;  %v1525_v30 = vunpack.c.h.bf16 %v1725_v21  ;;  %v367_v31 = vpack.c.bf16 %v317_v7, %v316_v58  ;;  %v256_v32 = vadd.f32 %v1963_v10, %v185_v17 }
  0x3f   :  { %v254_v62 = vadd.f32 %v1963_v10, %v183_v42  ;;  %v255_v63 = vadd.f32 %v1963_v10, %v184_v43  ;;  %v341_v53 = vmax.f32 %v277_v60, 0.0  ;;  %v380_v45 = vpack.c.bf16 %v343_v6, %v342_v2 }
  0x40   :  { %v212_v38 = vmul.f32 %v1525_v30, %v1952_v5  ;;  %v320_v39 = vmax.f32 %v256_v32, 0.0  ;;  %v287_v17 = vadd.f32 %v1963_v10, %v216_v0 }
  0x41   :  { %v318_v19 = vmax.f32 %v254_v62, 0.0  ;;  %v319_v22 = vmax.f32 %v255_v63, 0.0  ;;  %v379_v44 = vpack.c.bf16 %v341_v53, %v340_v50  ;;  %v215_v63 = vmul.f32 %v1532_v51, %v1952_v5 }
  0x42   :  { %1833 = vmatmul.mubr.bf16.gmra.mrb[16].mxu0 %v2098_v25  ;;  %v376_v25 = vpack.c.bf16 %v335_v37, %v334_v36  ;;  %v1726_v36 = vld [vmem:[%s2518_s0 + $0xe8] sm:$0xff]   ;;  %v211_v37 = vmul.f32 %v1524_v29, %v1952_v5  ;;  %v283_v49 = vadd.f32 %v1963_v10, %v212_v38  ;;  %v369_v55 = vpack.c.bf16 %v321_v40, %v320_v39 }
  0x43   :  { %1836 = vmatprep.mubr.bf16.mxu0 %v364_v12  ;;  %v1521_v12 = vunpack.c.h.bf16 %v1724_v15  ;;  %v368_v34 = vpack.c.bf16 %v319_v22, %v318_v19  ;;  %v1528_v43 = vunpack.c.l.bf16 %v1726_v36  ;;  %v1529_v47 = vunpack.c.h.bf16 %v1726_v36 }
  0x44   :  { %1860 = vmatprep.mubr.bf16.mxu1 %v376_v25  ;;  %v282_v48 = vadd.f32 %v1963_v10, %v211_v37  ;;  %v347_v62 = vmax.f32 %v283_v49, 0.0  ;;  %v286_v15 = vadd.f32 %v1963_v10, %v215_v63  ;;  %v351_v20 = vmax.f32 %v287_v17, 0.0 }
  0x45   :  { %1861 = vmatmul.mubr.bf16.gmra.mrb[12].mxu1 %v377_v23  ;;  %v210_v16 = vmul.f32 %v1521_v12, %v1952_v5  ;;  %v213_v56 = vmul.f32 %v1528_v43, %v1952_v5  ;;  %v214_v59 = vmul.f32 %v1529_v47, %v1952_v5 }
  0x46   :  { %1864 = vmatprep.mubr.bf16.mxu1 %v378_v28  ;;  %v346_v61 = vmax.f32 %v282_v48, 0.0  ;;  %v350_v19 = vmax.f32 %v286_v15, 0.0 }
  0x47   :  { %v281_v46 = vadd.f32 %v1963_v10, %v210_v16  ;;  %v284_v4 = vadd.f32 %v1963_v10, %v213_v56  ;;  %v285_v9 = vadd.f32 %v1963_v10, %v214_v59 }
  0x48   :  { %v382_v14 = vpack.c.bf16 %v347_v62, %v346_v61  ;;  %v384_v24 = vpack.c.bf16 %v351_v20, %v350_v19 }
  0x49   :  { %v345_v57 = vmax.f32 %v281_v46, 0.0  ;;  %v348_v18 = vmax.f32 %v284_v4, 0.0  ;;  %v349_v3 = vmax.f32 %v285_v9, 0.0 }
  0x4a   :  { %1837 = vmatmul.mubr.bf16.gmra.mrb[20].mxu0 %v365_v35  ;;  %v209_v35 = vmul.f32 %v1520_v26, %v1952_v5 }
  0x4b   :  { %1840 = vmatprep.mubr.bf16.mxu0 %v366_v1  ;;  %v1728_v1 = vld [vmem:[%s2518_s0 + $0xf8] sm:$0xff]   ;;  %v383_v21 = vpack.c.bf16 %v349_v3, %v348_v18 }
  0x4c   :  { %v280_v42 = vadd.f32 %v1963_v10, %v209_v35  ;;  %v1536_v11 = vunpack.c.l.bf16 %v1728_v1  ;;  %v1537_v13 = vunpack.c.h.bf16 %v1728_v1 }
  0x4d   :  { %1865 = vmatmul.mubr.bf16.gmra.mrb[16].mxu1 %v379_v44 }
  0x4e   :  { %v344_v25 = vmax.f32 %v280_v42, 0.0  ;;  %1868 = vmatprep.mubr.bf16.mxu1 %v380_v45  ;;  %v217_v58 = vmul.f32 %v1536_v11, %v1952_v5  ;;  %v218_v7 = vmul.f32 %v1537_v13, %v1952_v5 }
  0x50   :  { %v381_v8 = vpack.c.bf16 %v345_v57, %v344_v25  ;;  %v288_v22 = vadd.f32 %v1963_v10, %v217_v58  ;;  %v289_v23 = vadd.f32 %v1963_v10, %v218_v7 }
  0x52   :  { %1841 = vmatmul.mubr.bf16.gmra.mrb[24].mxu0 %v367_v31  ;;  %v352_v26 = vmax.f32 %v288_v22, 0.0  ;;  %v353_v60 = vmax.f32 %v289_v23, 0.0 }
  0x53   :  { %1844 = vmatprep.mubr.bf16.mxu0 %v368_v34 }
  0x54   :  { %v385_v27 = vpack.c.bf16 %v353_v60, %v352_v26 }
  0x55   :  { %1869 = vmatmul.mubr.bf16.gmra.mrb[20].mxu1 %v381_v8 }
  0x56   :  { %1872 = vmatprep.mubr.bf16.mxu1 %v382_v14 }
  0x5a   :  { %1845 = vmatmul.mubr.bf16.gmra.mrb[28].mxu0 %v369_v55 }
  0x5d   :  { %1873 = vmatmul.mubr.bf16.gmra.mrb[24].mxu1 %v383_v21 }
  0x5e   :  { %1876 = vmatprep.mubr.bf16.mxu1 %v384_v24 }
  0x65   :  { %1877 = vmatmul.mubr.bf16.gmra.mrb[28].mxu1 %v385_v27 }
  0xf5   :  { %v1818_v52 = vpop.f32.mrb[0].mxu0 }
  0xf6   :  { %v484_v12 = vpop.f32.mrb[1].mxu0  ;;  %v1130_v10 = vmul.f32 %v1818_v52, %v1818_v52 }
  0xf7   :  { %v1819_v28 = vpop.f32.mrb[2].mxu0  ;;  %v1128_v30 = vmul.f32 %v484_v12, %v484_v12 }
  0xf8   :  { %v1546_v29 = vpack.c.bf16 %v1819_v28, %v1818_v52  ;;  %v487_v5 = vpop.f32.mrb[3].mxu0  ;;  %v1131_v35 = vmul.f32 %v1819_v28, %v1819_v28 }
  0xf9   :  { %v1541_v31 = vpack.c.bf16 %v487_v5, %v484_v12  ;;  %v1059_v32 = vadd.f32 %v487_v5, %v484_v12  ;;  %v1129_v33 = vmul.f32 %v487_v5, %v487_v5 }
  0xfa   :  { %1729 = vst [vmem:[%s2521_s4 + $0x8] sm:$0xff] %v1546_v29  }
  0xfb   :  { %1542 = vst [vmem:[%s2521_s4] sm:$0xff] %v1541_v31   ;;  %v1060_v34 = vadd.f32 %v1818_v52, %v1059_v32  ;;  %v1192_v50 = vadd.f32 %v1129_v33, %v1128_v30  ;;  %v2244_v14 = vpop.f32.mrb[0].mxu1 }
  0xfc   :  { %v2246_v15 = vpop.f32.mrb[1].mxu1 }
  0xfd   :  { %v1193_v53 = vadd.f32 %v1192_v50, %v1130_v10  ;;  %v1822_v2 = vpop.f32.mrb[4].mxu0  ;;  %v1061_v6 = vadd.f32 %v1819_v28, %v1060_v34  ;;  %v2248_v7 = vpop.f32.mrb[2].mxu1 }
  0xfe   :  { %v500_v16 = vpop.f32.mrb[5].mxu0  ;;  %v1134_v46 = vmul.f32 %v1822_v2, %v1822_v2  ;;  %v1626_v20 = vpack.c.bf16 %v2248_v7, %v2244_v14  ;;  %v2252_v21 = vpop.f32.mrb[3].mxu1 }
  0xff   :  { %v1062_v36 = vadd.f32 %v1061_v6, %v500_v16  ;;  %v1132_v37 = vmul.f32 %v500_v16, %v500_v16  ;;  %v1194_v38 = vadd.f32 %v1193_v53, %v1131_v35  ;;  %v1823_v39 = vpop.f32.mrb[6].mxu0  ;;  %v1621_v60 = vpack.c.bf16 %v2252_v21, %v2246_v15 }
 0x100   :  { %v1556_v40 = vpack.c.bf16 %v1823_v39, %v1822_v2  ;;  %v503_v41 = vpop.f32.mrb[7].mxu0  ;;  %v1135_v49 = vmul.f32 %v1823_v39, %v1823_v39  ;;  %1745 = vst [vmem:[%s2521_s4 + $0x88] sm:$0xff] %v1626_v20  }
 0x101   :  { %v1195_v42 = vadd.f32 %v1194_v38, %v1132_v37  ;;  %v1551_v43 = vpack.c.bf16 %v503_v41, %v500_v16  ;;  %v1063_v44 = vadd.f32 %v1062_v36, %v503_v41  ;;  %v1133_v45 = vmul.f32 %v503_v41, %v503_v41  ;;  %1744 = vst [vmem:[%s2521_s4 + $0x80] sm:$0xff] %v1621_v60  }
 0x102   :  { %1731 = vst [vmem:[%s2521_s4 + $0x18] sm:$0xff] %v1556_v40  }
 0x103   :  { %1730 = vst [vmem:[%s2521_s4 + $0x10] sm:$0xff] %v1551_v43   ;;  %v1064_v47 = vadd.f32 %v1822_v2, %v1063_v44  ;;  %v1196_v48 = vadd.f32 %v1195_v42, %v1133_v45 }
 0x105   :  { %v1197_v51 = vadd.f32 %v1196_v48, %v1134_v46  ;;  %v1826_v54 = vpop.f32.mrb[8].mxu0  ;;  %v1065_v55 = vadd.f32 %v1823_v39, %v1064_v47  ;;  %v2268_v33 = vpop.f32.mrb[4].mxu1 }
 0x106   :  { %v516_v56 = vpop.f32.mrb[9].mxu0  ;;  %v1138_v9 = vmul.f32 %v1826_v54, %v1826_v54  ;;  %v2270_v10 = vpop.f32.mrb[5].mxu1 }
 0x107   :  { %v1066_v25 = vadd.f32 %v1065_v55, %v516_v56  ;;  %v1136_v57 = vmul.f32 %v516_v56, %v516_v56  ;;  %v1198_v59 = vadd.f32 %v1197_v51, %v1135_v49  ;;  %v1827_v61 = vpop.f32.mrb[10].mxu0  ;;  %v2272_v2 = vpop.f32.mrb[6].mxu1 }
 0x108   :  { %v1566_v62 = vpack.c.bf16 %v1827_v61, %v1826_v54  ;;  %v519_v63 = vpop.f32.mrb[11].mxu0  ;;  %v1139_v17 = vmul.f32 %v1827_v61, %v1827_v61  ;;  %v1636_v16 = vpack.c.bf16 %v2272_v2, %v2268_v33  ;;  %v2276_v36 = vpop.f32.mrb[7].mxu1 }
 0x109   :  { %v1199_v0 = vadd.f32 %v1198_v59, %v1136_v57  ;;  %v1561_v1 = vpack.c.bf16 %v519_v63, %v516_v56  ;;  %v1067_v4 = vadd.f32 %v1066_v25, %v519_v63  ;;  %v1137_v8 = vmul.f32 %v519_v63, %v519_v63 }
 0x10a   :  { %1733 = vst [vmem:[%s2521_s4 + $0x28] sm:$0xff] %v1566_v62   ;;  %v1631_v41 = vpack.c.bf16 %v2276_v36, %v2270_v10  ;;  %1747 = vst [vmem:[%s2521_s4 + $0x98] sm:$0xff] %v1636_v16  }
 0x10b   :  { %1732 = vst [vmem:[%s2521_s4 + $0x20] sm:$0xff] %v1561_v1   ;;  %v1068_v11 = vadd.f32 %v1826_v54, %v1067_v4  ;;  %v1200_v13 = vadd.f32 %v1199_v0, %v1137_v8 }
 0x10c   :  { %1746 = vst [vmem:[%s2521_s4 + $0x90] sm:$0xff] %v1631_v41  }
 0x10d   :  { %v1201_v18 = vadd.f32 %v1200_v13, %v1138_v9  ;;  %v1830_v3 = vpop.f32.mrb[12].mxu0  ;;  %v1069_v58 = vadd.f32 %v1827_v61, %v1068_v11 }
 0x10e   :  { %v532_v19 = vpop.f32.mrb[13].mxu0  ;;  %v1142_v30 = vmul.f32 %v1830_v3, %v1830_v3  ;;  %v2292_v54 = vpop.f32.mrb[8].mxu1 }
 0x10f   :  { %v1070_v22 = vadd.f32 %v1069_v58, %v532_v19  ;;  %v1140_v23 = vmul.f32 %v532_v19, %v532_v19  ;;  %v1202_v24 = vadd.f32 %v1201_v18, %v1139_v17  ;;  %v1831_v26 = vpop.f32.mrb[14].mxu0  ;;  %v2294_v55 = vpop.f32.mrb[9].mxu1 }
 0x110   :  { %v1576_v27 = vpack.c.bf16 %v1831_v26, %v1830_v3  ;;  %v535_v52 = vpop.f32.mrb[15].mxu0  ;;  %v1143_v34 = vmul.f32 %v1831_v26, %v1831_v26  ;;  %v2296_v61 = vpop.f32.mrb[10].mxu1 }
 0x111   :  { %v1203_v12 = vadd.f32 %v1202_v24, %v1140_v23  ;;  %v1571_v28 = vpack.c.bf16 %v535_v52, %v532_v19  ;;  %v1071_v29 = vadd.f32 %v1070_v22, %v535_v52  ;;  %v1141_v5 = vmul.f32 %v535_v52, %v535_v52  ;;  %v2300_v0 = vpop.f32.mrb[11].mxu1 }
 0x112   :  { %1735 = vst [vmem:[%s2521_s4 + $0x38] sm:$0xff] %v1576_v27   ;;  %v1646_v63 = vpack.c.bf16 %v2296_v61, %v2292_v54  ;;  %v1641_v11 = vpack.c.bf16 %v2300_v0, %v2294_v55 }
 0x113   :  { %1734 = vst [vmem:[%s2521_s4 + $0x30] sm:$0xff] %v1571_v28   ;;  %v1072_v31 = vadd.f32 %v1830_v3, %v1071_v29  ;;  %v1204_v32 = vadd.f32 %v1203_v12, %v1141_v5 }
 0x114   :  { %1749 = vst [vmem:[%s2521_s4 + $0xa8] sm:$0xff] %v1646_v63   ;;  %1748 = vst [vmem:[%s2521_s4 + $0xa0] sm:$0xff] %v1641_v11  }
 0x115   :  { %v1205_v50 = vadd.f32 %v1204_v32, %v1142_v30  ;;  %v1834_v35 = vpop.f32.mrb[16].mxu0  ;;  %v1073_v53 = vadd.f32 %v1831_v26, %v1072_v31 }
 0x116   :  { %v548_v6 = vpop.f32.mrb[17].mxu0  ;;  %v1146_v48 = vmul.f32 %v1834_v35, %v1834_v35 }
 0x117   :  { %v1074_v37 = vadd.f32 %v1073_v53, %v548_v6  ;;  %v1144_v38 = vmul.f32 %v548_v6, %v548_v6  ;;  %v1206_v39 = vadd.f32 %v1205_v50, %v1143_v34  ;;  %v1835_v40 = vpop.f32.mrb[18].mxu0 }
 0x118   :  { %v1586_v42 = vpack.c.bf16 %v1835_v40, %v1834_v35  ;;  %v551_v43 = vpop.f32.mrb[19].mxu0  ;;  %v1147_v56 = vmul.f32 %v1835_v40, %v1835_v40  ;;  %v2316_v24 = vpop.f32.mrb[12].mxu1 }
 0x119   :  { %v1207_v44 = vadd.f32 %v1206_v39, %v1144_v38  ;;  %v1581_v45 = vpack.c.bf16 %v551_v43, %v548_v6  ;;  %v1075_v46 = vadd.f32 %v1074_v37, %v551_v43  ;;  %v1145_v47 = vmul.f32 %v551_v43, %v551_v43  ;;  %v2318_v26 = vpop.f32.mrb[13].mxu1 }
 0x11a   :  { %1737 = vst [vmem:[%s2521_s4 + $0x48] sm:$0xff] %v1586_v42   ;;  %v2320_v28 = vpop.f32.mrb[14].mxu1 }
 0x11b   :  { %1736 = vst [vmem:[%s2521_s4 + $0x40] sm:$0xff] %v1581_v45   ;;  %v1076_v49 = vadd.f32 %v1834_v35, %v1075_v46  ;;  %v1208_v51 = vadd.f32 %v1207_v44, %v1145_v47  ;;  %v1656_v5 = vpack.c.bf16 %v2320_v28, %v2316_v24  ;;  %v2324_v30 = vpop.f32.mrb[15].mxu1 }
 0x11c   :  { %v1651_v35 = vpack.c.bf16 %v2324_v30, %v2318_v26 }
 0x11d   :  { %v1209_v25 = vadd.f32 %v1208_v51, %v1146_v48  ;;  %v1838_v57 = vpop.f32.mrb[20].mxu0  ;;  %v1077_v59 = vadd.f32 %v1835_v40, %v1076_v49  ;;  %1751 = vst [vmem:[%s2521_s4 + $0xb8] sm:$0xff] %v1656_v5  }
 0x11e   :  { %v564_v62 = vpop.f32.mrb[21].mxu0  ;;  %v1150_v20 = vmul.f32 %v1838_v57, %v1838_v57  ;;  %1750 = vst [vmem:[%s2521_s4 + $0xb0] sm:$0xff] %v1651_v35   ;;  %v1161_v35 = vmul.f32 %v2252_v21, %v2252_v21 }
 0x11f   :  { %v1078_v1 = vadd.f32 %v1077_v59, %v564_v62  ;;  %v1148_v4 = vmul.f32 %v564_v62, %v564_v62  ;;  %v1210_v8 = vadd.f32 %v1209_v25, %v1147_v56  ;;  %v1839_v9 = vpop.f32.mrb[22].mxu0 }
 0x120   :  { %v1596_v13 = vpack.c.bf16 %v1839_v9, %v1838_v57  ;;  %v567_v17 = vpop.f32.mrb[23].mxu0  ;;  %v1151_v60 = vmul.f32 %v1839_v9, %v1839_v9  ;;  %v2340_v43 = vpop.f32.mrb[16].mxu1 }
 0x121   :  { %v1211_v18 = vadd.f32 %v1210_v8, %v1148_v4  ;;  %v1591_v3 = vpack.c.bf16 %v567_v17, %v564_v62  ;;  %v1079_v58 = vadd.f32 %v1078_v1, %v567_v17  ;;  %v1149_v19 = vmul.f32 %v567_v17, %v567_v17  ;;  %v2342_v44 = vpop.f32.mrb[17].mxu1 }
 0x122   :  { %1739 = vst [vmem:[%s2521_s4 + $0x58] sm:$0xff] %v1596_v13   ;;  %v2344_v49 = vpop.f32.mrb[18].mxu1 }
 0x123   :  { %1738 = vst [vmem:[%s2521_s4 + $0x50] sm:$0xff] %v1591_v3   ;;  %v1080_v22 = vadd.f32 %v1838_v57, %v1079_v58  ;;  %v1212_v23 = vadd.f32 %v1211_v18, %v1149_v19  ;;  %v1666_v56 = vpack.c.bf16 %v2344_v49, %v2340_v43  ;;  %v2348_v25 = vpop.f32.mrb[19].mxu1 }
 0x124   :  { %v1661_v1 = vpack.c.bf16 %v2348_v25, %v2342_v44 }
 0x125   :  { %v1213_v27 = vadd.f32 %v1212_v23, %v1150_v20  ;;  %v1842_v52 = vpop.f32.mrb[24].mxu0  ;;  %v1081_v12 = vadd.f32 %v1839_v9, %v1080_v22  ;;  %1753 = vst [vmem:[%s2521_s4 + $0xc8] sm:$0xff] %v1666_v56  }
 0x126   :  { %v580_v29 = vpop.f32.mrb[25].mxu0  ;;  %v1154_v40 = vmul.f32 %v1842_v52, %v1842_v52  ;;  %1752 = vst [vmem:[%s2521_s4 + $0xc0] sm:$0xff] %v1661_v1  }
 0x127   :  { %v1082_v31 = vadd.f32 %v1081_v12, %v580_v29  ;;  %v1152_v32 = vmul.f32 %v580_v29, %v580_v29  ;;  %v1214_v34 = vadd.f32 %v1213_v27, %v1151_v60  ;;  %v1843_v50 = vpop.f32.mrb[26].mxu0  ;;  %v1160_v27 = vmul.f32 %v2246_v15, %v2246_v15 }
 0x128   :  { %v1606_v53 = vpack.c.bf16 %v1843_v50, %v1842_v52  ;;  %v583_v6 = vpop.f32.mrb[27].mxu0  ;;  %v1155_v45 = vmul.f32 %v1843_v50, %v1843_v50  ;;  %v2364_v19 = vpop.f32.mrb[20].mxu1 }
 0x129   :  { %v1215_v16 = vadd.f32 %v1214_v34, %v1152_v32  ;;  %v1601_v37 = vpack.c.bf16 %v583_v6, %v580_v29  ;;  %v1083_v38 = vadd.f32 %v1082_v31, %v583_v6  ;;  %v1153_v39 = vmul.f32 %v583_v6, %v583_v6  ;;  %v2366_v20 = vpop.f32.mrb[21].mxu1 }
 0x12a   :  { %1741 = vst [vmem:[%s2521_s4 + $0x68] sm:$0xff] %v1606_v53  }
 0x12b   :  { %1740 = vst [vmem:[%s2521_s4 + $0x60] sm:$0xff] %v1601_v37   ;;  %v1084_v41 = vadd.f32 %v1842_v52, %v1083_v38  ;;  %v1216_v42 = vadd.f32 %v1215_v16, %v1153_v39  ;;  %v2370_v52 = vpop.f32.mrb[22].mxu1  ;;  %v1163_v38 = vmul.f32 %v2248_v7, %v2248_v7 }
 0x12c   :  { %v1676_v12 = vpack.c.bf16 %v2370_v52, %v2364_v19  ;;  %v2374_v29 = vpop.f32.mrb[23].mxu1 }
 0x12d   :  { %v1217_v46 = vadd.f32 %v1216_v42, %v1154_v40  ;;  %v1846_v47 = vpop.f32.mrb[28].mxu0  ;;  %v1085_v48 = vadd.f32 %v1843_v50, %v1084_v41  ;;  %v1671_v32 = vpack.c.bf16 %v2374_v29, %v2366_v20  ;;  %v1164_v40 = vmul.f32 %v2270_v10, %v2270_v10 }
 0x12e   :  { %v596_v51 = vpop.f32.mrb[29].mxu0  ;;  %v1158_v18 = vmul.f32 %v1846_v47, %v1846_v47  ;;  %1755 = vst [vmem:[%s2521_s4 + $0xd8] sm:$0xff] %v1676_v12   ;;  %v1172_v12 = vmul.f32 %v2318_v26, %v2318_v26 }
 0x12f   :  { %v1086_v57 = vadd.f32 %v1085_v48, %v596_v51  ;;  %v1156_v59 = vmul.f32 %v596_v51, %v596_v51  ;;  %v1218_v62 = vadd.f32 %v1217_v46, %v1155_v45  ;;  %v1847_v63 = vpop.f32.mrb[30].mxu0  ;;  %1754 = vst [vmem:[%s2521_s4 + $0xd0] sm:$0xff] %v1671_v32  }
 0x130   :  { %v1616_v4 = vpack.c.bf16 %v1847_v63, %v1846_v47  ;;  %v599_v8 = vpop.f32.mrb[31].mxu0  ;;  %v1159_v22 = vmul.f32 %v1847_v63, %v1847_v63  ;;  %v2391_v16 = vpop.f32.mrb[24].mxu1 }
 0x131   :  { %v1219_v9 = vadd.f32 %v1218_v62, %v1156_v59  ;;  %v1611_v11 = vpack.c.bf16 %v599_v8, %v596_v51  ;;  %v1087_v13 = vadd.f32 %v1086_v57, %v599_v8  ;;  %v1157_v17 = vmul.f32 %v599_v8, %v599_v8  ;;  %v2393_v37 = vpop.f32.mrb[25].mxu1 }
 0x132   :  { %1743 = vst [vmem:[%s2521_s4 + $0x78] sm:$0xff] %v1616_v4   ;;  %v2400_v41 = vpop.f32.mrb[26].mxu1  ;;  %v1165_v51 = vmul.f32 %v2276_v36, %v2276_v36  ;;  %v1168_v4 = vmul.f32 %v2294_v55, %v2294_v55 }
 0x133   :  { %1742 = vst [vmem:[%s2521_s4 + $0x70] sm:$0xff] %v1611_v11   ;;  %v1088_v3 = vadd.f32 %v1846_v47, %v1087_v13  ;;  %v1220_v58 = vadd.f32 %v1219_v9, %v1157_v17  ;;  %v1686_v42 = vpack.c.bf16 %v2400_v41, %v2391_v16 }
 0x135   :  { %v1221_v23 = vadd.f32 %v1220_v58, %v1158_v18  ;;  %v1089_v60 = vadd.f32 %v1847_v63, %v1088_v3  ;;  %1757 = vst [vmem:[%s2521_s4 + $0xe8] sm:$0xff] %v1686_v42   ;;  %v1167_v63 = vmul.f32 %v2272_v2, %v2272_v2  ;;  %v1169_v3 = vmul.f32 %v2300_v0, %v2300_v0 }
 0x137   :  { %v1090_v5 = vadd.f32 %v1089_v60, %v2246_v15  ;;  %v1222_v31 = vadd.f32 %v1221_v23, %v1159_v22  ;;  %v1162_v15 = vmul.f32 %v2244_v14, %v2244_v14  ;;  %v1171_v23 = vmul.f32 %v2296_v61, %v2296_v61 }
 0x139   :  { %v1223_v34 = vadd.f32 %v1222_v31, %v1160_v27  ;;  %v1091_v50 = vadd.f32 %v1090_v5, %v2252_v21 }
 0x13b   :  { %v1092_v53 = vadd.f32 %v2244_v14, %v1091_v50  ;;  %v1224_v6 = vadd.f32 %v1223_v34, %v1161_v35  ;;  %v2404_v14 = vpop.f32.mrb[27].mxu1  ;;  %v1173_v34 = vmul.f32 %v2324_v30, %v2324_v30 }
 0x13c   :  { %v1681_v47 = vpack.c.bf16 %v2404_v14, %v2393_v37  ;;  %v2421_v59 = vpop.f32.mrb[28].mxu1 }
 0x13d   :  { %v1225_v39 = vadd.f32 %v1224_v6, %v1162_v15  ;;  %v1093_v21 = vadd.f32 %v2248_v7, %v1092_v53  ;;  %v2423_v62 = vpop.f32.mrb[29].mxu1 }
 0x13e   :  { %1756 = vst [vmem:[%s2521_s4 + $0xe0] sm:$0xff] %v1681_v47   ;;  %v2430_v8 = vpop.f32.mrb[30].mxu1 }
 0x13f   :  { %v1094_v45 = vadd.f32 %v1093_v21, %v2270_v10  ;;  %v1226_v46 = vadd.f32 %v1225_v39, %v1163_v38  ;;  %v1166_v10 = vmul.f32 %v2268_v33, %v2268_v33  ;;  %v1696_v9 = vpack.c.bf16 %v2430_v8, %v2421_v59 }
 0x140   :  { %v1177_v21 = vmul.f32 %v2348_v25, %v2348_v25 }
 0x141   :  { %v1227_v7 = vadd.f32 %v1226_v46, %v1164_v40  ;;  %v1095_v48 = vadd.f32 %v1094_v45, %v2276_v36  ;;  %1759 = vst [vmem:[%s2521_s4 + $0xf8] sm:$0xff] %v1696_v9   ;;  %v1185_v9 = vmul.f32 %v2404_v14, %v2404_v14 }
 0x143   :  { %v1096_v56 = vadd.f32 %v2268_v33, %v1095_v48  ;;  %v1228_v57 = vadd.f32 %v1227_v7, %v1165_v51  ;;  %v2434_v33 = vpop.f32.mrb[31].mxu1  ;;  %v1181_v51 = vmul.f32 %v2374_v29, %v2374_v29 }
 0x144   :  { %v1691_v17 = vpack.c.bf16 %v2434_v33, %v2423_v62 }
 0x145   :  { %v1229_v1 = vadd.f32 %v1228_v57, %v1166_v10  ;;  %v1097_v36 = vadd.f32 %v2272_v2, %v1096_v56 }
 0x146   :  { %1758 = vst [vmem:[%s2521_s4 + $0xf0] sm:$0xff] %v1691_v17  }
 0x147   :  { %v1098_v11 = vadd.f32 %v1097_v36, %v2294_v55  ;;  %v1230_v13 = vadd.f32 %v1229_v1, %v1167_v63  ;;  %v1170_v55 = vmul.f32 %v2292_v54, %v2292_v54 }
 0x149   :  { %v1231_v2 = vadd.f32 %v1230_v13, %v1168_v4  ;;  %v1099_v18 = vadd.f32 %v1098_v11, %v2300_v0 }
 0x14b   :  { %v1100_v58 = vadd.f32 %v2292_v54, %v1099_v18  ;;  %v1232_v22 = vadd.f32 %v1231_v2, %v1169_v3  ;;  %v1174_v54 = vmul.f32 %v2316_v24, %v2316_v24 }
 0x14d   :  { %v1233_v60 = vadd.f32 %v1232_v22, %v1170_v55  ;;  %v1101_v27 = vadd.f32 %v2296_v61, %v1100_v58  ;;  %v1175_v61 = vmul.f32 %v2320_v28, %v2320_v28  ;;  %v1189_v58 = vmul.f32 %v2434_v33, %v2434_v33 }
 0x14f   :  { %v1102_v0 = vadd.f32 %v1101_v27, %v2318_v26  ;;  %v1234_v5 = vadd.f32 %v1233_v60, %v1171_v23  ;;  %v1176_v26 = vmul.f32 %v2342_v44, %v2342_v44 }
 0x151   :  { %v1235_v31 = vadd.f32 %v1234_v5, %v1172_v12  ;;  %v1103_v32 = vadd.f32 %v1102_v0, %v2324_v30 }
 0x153   :  { %v1104_v50 = vadd.f32 %v2316_v24, %v1103_v32  ;;  %v1236_v35 = vadd.f32 %v1235_v31, %v1173_v34  ;;  %v1178_v24 = vmul.f32 %v2340_v43, %v2340_v43 }
 0x155   :  { %v1237_v15 = vadd.f32 %v1236_v35, %v1174_v54  ;;  %v1105_v53 = vadd.f32 %v2320_v28, %v1104_v50  ;;  %v1179_v28 = vmul.f32 %v2344_v49, %v2344_v49 }
 0x157   :  { %v1106_v6 = vadd.f32 %v1105_v53, %v2342_v44  ;;  %v1238_v38 = vadd.f32 %v1237_v15, %v1175_v61  ;;  %v1180_v44 = vmul.f32 %v2366_v20, %v2366_v20 }
 0x159   :  { %v1239_v39 = vadd.f32 %v1238_v38, %v1176_v26  ;;  %v1107_v30 = vadd.f32 %v1106_v6, %v2348_v25 }
 0x15b   :  { %v1108_v40 = vadd.f32 %v2340_v43, %v1107_v30  ;;  %v1240_v42 = vadd.f32 %v1239_v39, %v1177_v21  ;;  %v1182_v43 = vmul.f32 %v2364_v19, %v2364_v19 }
 0x15d   :  { %v1241_v45 = vadd.f32 %v1240_v42, %v1178_v24  ;;  %v1109_v46 = vadd.f32 %v2344_v49, %v1108_v40  ;;  %v1183_v49 = vmul.f32 %v2370_v52, %v2370_v52 }
 0x15f   :  { %v1110_v47 = vadd.f32 %v1109_v46, %v2366_v20  ;;  %v1242_v7 = vadd.f32 %v1241_v45, %v1179_v28  ;;  %v1184_v20 = vmul.f32 %v2393_v37, %v2393_v37 }
 0x161   :  { %v1243_v48 = vadd.f32 %v1242_v7, %v1180_v44  ;;  %v1111_v25 = vadd.f32 %v1110_v47, %v2374_v29 }
 0x163   :  { %v1112_v10 = vadd.f32 %v2364_v19, %v1111_v25  ;;  %v1244_v56 = vadd.f32 %v1243_v48, %v1181_v51  ;;  %v1186_v19 = vmul.f32 %v2391_v16, %v2391_v16 }
 0x165   :  { %v1245_v57 = vadd.f32 %v1244_v56, %v1182_v43  ;;  %v1113_v63 = vadd.f32 %v2370_v52, %v1112_v10  ;;  %v1187_v52 = vmul.f32 %v2400_v41, %v2400_v41 }
 0x167   :  { %v1114_v1 = vadd.f32 %v1113_v63, %v2393_v37  ;;  %v1246_v36 = vadd.f32 %v1245_v57, %v1183_v49  ;;  %v1188_v37 = vmul.f32 %v2423_v62, %v2423_v62 }
 0x169   :  { %v1247_v4 = vadd.f32 %v1246_v36, %v1184_v20  ;;  %v1115_v29 = vadd.f32 %v1114_v1, %v2404_v14 }
 0x16b   :  { %v1116_v11 = vadd.f32 %v2391_v16, %v1115_v29  ;;  %v1248_v13 = vadd.f32 %v1247_v4, %v1185_v9  ;;  %v1190_v16 = vmul.f32 %v2421_v59, %v2421_v59 }
 0x16d   :  { %v1249_v17 = vadd.f32 %v1248_v13, %v1186_v19  ;;  %v1117_v2 = vadd.f32 %v2400_v41, %v1116_v11  ;;  %v1191_v41 = vmul.f32 %v2430_v8, %v2430_v8 }
 0x16f   :  { %v1118_v18 = vadd.f32 %v1117_v2, %v2423_v62  ;;  %v1250_v3 = vadd.f32 %v1249_v17, %v1187_v52 }
 0x171   :  { %v1251_v55 = vadd.f32 %v1250_v3, %v1188_v37  ;;  %v1119_v14 = vadd.f32 %v1118_v18, %v2434_v33 }
 0x173   :  { %v1120_v22 = vadd.f32 %v2421_v59, %v1119_v14  ;;  %v1252_v23 = vadd.f32 %v1251_v55, %v1189_v58 }
 0x175   :  { %v1121_v60 = vadd.f32 %v2430_v8, %v1120_v22  ;;  %v1253_v27 = vadd.f32 %v1252_v23, %v1190_v16 }
 0x177   :  { %v1122_v62 = vrot.slane %v1121_v60, 4  ;;  %v1254_v12 = vadd.f32 %v1253_v27, %v1191_v41 }
 0x179   :  { %v1123_v0 = vadd.f32 %v1122_v62, %v1121_v60  ;;  %v1255_v5 = vrot.slane %v1254_v12, 4 }
 0x17b   :  { %v1124_v31 = vrot.slane %v1123_v0, 2  ;;  %v1256_v32 = vadd.f32 %v1255_v5, %v1254_v12 }
 0x17d   :  { %v1125_v34 = vadd.f32 %v1124_v31, %v1123_v0  ;;  %v1257_v33 = vrot.slane %v1256_v32, 2 }
 0x17f   :  { %v1126_v54 = vrot.slane %v1125_v34, 1  ;;  %v1258_v50 = vadd.f32 %v1257_v33, %v1256_v32 }
 0x181   :  { %v1259_v35 = vrot.slane %v1258_v50, 1  ;;  %v1127_v59 = vadd.f32 %v1126_v54, %v1125_v34 }
 0x183   :  { %v1260_v61 = vadd.f32 %v1259_v35, %v1258_v50 }
 0x185   :  { %v1262_v15 = vsel %vm1261_vm0, %v1127_v59, %v1260_v61 }
 0x186   :  { %1263 = vst [vmem:[%s2522_s5] sm:$0x3] %v1262_v15 }

// kernel: bottleneck_forward.5
= control target key start
LH: loop header
LB: loop body
LE: loop exit
PB: predicated region body
PF: predicated region fallthrough
CT: control target
= control target key end

     0   :  { %s5345_s24 = smov 0   ;;  %s5347_s25 = smov 0   ;;  %s6553_s0 = inlined_call_operand.vmem [shape: bf16[2,16,16,128], index: 0, kind: input, shape index: {}, may-alias: {0,1,2}]   ;;  %s6554_s1 = inlined_call_operand.vmem [shape: bf16[2,16,16,128], index: 1, kind: input, shape index: {}, may-alias: {0,1,2}]   ;;  %s6555_s2 = inlined_call_operand.vmem [shape: bf16[2,16,16,128], index: 2, kind: input, shape index: {}, may-alias: {0,1,2}]   ;;  %s6556_s3 = inlined_call_operand.vmem [shape: f32[1,128], index: 3, kind: input, shape index: {}]   ;;  %s6557_s4 = inlined_call_operand.vmem [shape: f32[1,128], index: 4, kind: input, shape index: {}]   ;;  %s6558_s5 = inlined_call_operand.vmem [shape: bf16[1152,128], index: 5, kind: input, shape index: {}]   ;;  %s6559_s6 = inlined_call_operand.vmem [shape: bf16[2,16,16,128], index: 6, kind: output, shape index: {0}]   ;;  %s6560_s7 = inlined_call_operand.vmem [shape: f32[4,2,128], index: 7, kind: output, shape index: {1}]  }
   0x1   :  { %s5349_s26 = smov 0   ;;  %s5351_s27 = smov 0  }
   0x2   :  { %s5353_s28 = smov 0  }
   0x3 LB: > { %s27_s29 = sadd.s32 1, %s5295_s26  ;;  %s30_s30 = sadd.s32 1, %s5299_s27  ;;  %s5303_s28 = sphi %s5353_s28, %s18_s28   ;;  %s5299_s27 = sphi %s5351_s27, %s6581_s27   ;;  %s5295_s26 = sphi %s5349_s26, %s6580_s26   ;;  %s5291_s25 = sphi %s5347_s25, %s6579_s25   ;;  %s5287_s24 = sphi %s5345_s24, %s6578_s24  }
   0x4   : > { %p28_p0 = scmp.ge.s32.totalorder %s27_s29, 2  ;;  %p4167_p1 = scmp.ge.s32.totalorder %s5303_s28, 1 }
   0x5   : > { %p330_p2 = scmp.lt.s32.totalorder %s5303_s28, 5 }
   0x6   : > { %s6583_s29 = smov (%p28_p0, %s27_s29), 0  ;;  %s6585_s30 = smov (!%p28_p0, %s30_s30), %s5299_s27 }
   0x7   : > { %p331_p3 = pnand %p4167_p1, %p330_p2  ;;  %p32_p4 = scmp.ge.s32.totalorder %s6585_s30, 2 }
   0x8   : > { %v5151_v0 = vld [vmem:[%s6558_s5 + $0x100] sm:$0xff] (!%p331_p3)   ;;  %s5383_s10 = sshll.u32 (!%p331_p3), %s5287_s24, 3  ;;  %v5152_v1 = vld [vmem:[%s6558_s5 + $0x108] sm:$0xff] (!%p331_p3)   ;;  %p405_p5 = scmp.lt.s32.totalorder (!%p331_p3), %s5291_s25, 1  ;;  %v5154_v3 = vld [vmem:[%s6558_s5 + $0x110] sm:$0xff] (!%p331_p3)   ;;  %vm473_vm0 = vcmask (!%p331_p3), 1040384  }
   0x9   : > { %s6587_s30 = smov (%p32_p4, %s6585_s30), 0  ;;  %334 = sbr.rel (%p331_p3) target bundleno = 528 (0x210), region = 44 }
   0xa   : > { %4807 = vmatprep.subr.bf16.mxu0 (!%p331_p3), %v5151_v0  ;;  %v5153_v2 = vld [vmem:[%s6558_s5 + $0x40] sm:$0xff] (!%p331_p3)   ;;  %p407_p6 = scmp.lt.s32.totalorder (!%p331_p3), %s5383_s10, 15  ;;  %v5155_v4 = vld [vmem:[%s6558_s5 + $0x48] sm:$0xff] (!%p331_p3)   ;;  %v5157_v5 = vld [vmem:[%s6558_s5 + $0x50] sm:$0xff] (!%p331_p3)   ;;  %s5417_s16 = sadd.s32 (!%p331_p3), 4294967295, %s5383_s10  ;;  %vm841_vm6 = vcmask (!%p331_p3), 1043456  }
   0xb   : > { %4808 = vmatpush3.bf16.msra.mxu0 (!%p331_p3), %v5151_v0  ;;  %4679 = vmatprep.subr.bf16.mxu1 (!%p331_p3), %v5153_v2  ;;  %v5156_v6 = vld [vmem:[%s6558_s5 + $0x118] sm:$0xff] (!%p331_p3)   ;;  %p417_p7 = scmp.gt.s32.totalorder (!%p331_p3), %s5417_s16, 0  ;;  %v5158_v8 = vld [vmem:[%s6558_s5 + $0x120] sm:$0xff] (!%p331_p3)   ;;  %v5160_v10 = vld [vmem:[%s6558_s5 + $0x128] sm:$0xff] (!%p331_p3)   ;;  %vm474_vm1 = vsmask.f32 (!%p331_p3), 256 }
   0xc   : > { %4809 = vmatprep.subr.bf16.mxu0 (!%p331_p3), %v5152_v1  ;;  %4680 = vmatpush3.bf16.msra.mxu1 (!%p331_p3), %v5153_v2  ;;  %v5159_v7 = vld [vmem:[%s6558_s5 + $0x58] sm:$0xff] (!%p331_p3)   ;;  %v5161_v9 = vld [vmem:[%s6558_s5 + $0x60] sm:$0xff] (!%p331_p3)   ;;  %p4174_p8 = scmp.lt.s32.totalorder (!%p331_p3), %s5417_s16, 15  ;;  %p469_p9 = scmp.eq.s32.totalorder (!%p331_p3), %s5287_s24, 0  ;;  %vm5441_vm2 = vmand (!%p331_p3), %vm473_vm0, %vm474_vm1  ;;  %vm506_vm3 = vsmask.f32 (!%p331_p3), 7938 }
   0xd   : > { %4681 = vmatprep.subr.bf16.mxu1 (!%p331_p3), %v5155_v4  ;;  %v479_v12 = vld [vmem:[#allocation2 + $0xc] sm:$0x1] (!%p331_p3)  ;;  %v511_v13 = vld [vmem:[#allocation2 + $0x14] sm:$0x1] (!%p331_p3)  ;;  %v5448_v14 = vld [vmem:[%s6556_s3] ss:$0 sm:$0xff] (!%p331_p3) }
   0xe   : > { %v480_v15 = vsel (!%p331_p3), %vm5441_vm2, 0, %v479_v12  ;;  %vm5454_vm4 = vmand (!%p331_p3), %vm473_vm0, %vm506_vm3  ;;  %v5163_v18 = vld [vmem:[%s6558_s5 + $0x68] sm:$0xff] (!%p331_p3)   ;;  %v5465_v19 = vld [vmem:[%s6557_s4] ss:$0 sm:$0xff] (!%p331_p3)  ;;  %vm678_vm5 = vsmask.f32 (!%p331_p3), 4368 }
   0xf   : > { %4810 = vmatpush3.bf16.msra.mxu0 (!%p331_p3), %v5152_v1  ;;  %481 = vst [vmem:[#allocation2 + $0xc] sm:$0x1] (!%p331_p3), %v480_v15  ;;  %v512_v20 = vsel (!%p331_p3), %vm5454_vm4, 0, %v511_v13  ;;  %v5162_v23 = vld [vmem:[%s6558_s5 + $0x130] sm:$0xff] (!%p331_p3)   ;;  %v482_v27 = vld [vmem:[#allocation2 + $0x18] sm:$0x1] (!%p331_p3)  ;;  %vm5523_vm8 = vmor (!%p331_p3), %vm474_vm1, %vm678_vm5 }
  0x10   : > { %s406_s17 = scalar_select %p405_p5, %s5291_s25, 1  ;;  %4811 = vmatprep.subr.bf16.mxu0 %v5154_v3  ;;  %4682 = vmatpush3.bf16.msra.mxu1 %v5155_v4  ;;  %513 = vst [vmem:[#allocation2 + $0x14] sm:$0x1] %v512_v20  ;;  %v5165_v24 = vld [vmem:[%s6558_s5 + $0x70] sm:$0xff]   ;;  %v514_v28 = vld [vmem:[#allocation2 + $0x20] sm:$0x1]  ;;  %vm5531_vm9 = vmand %vm841_vm6, %vm506_vm3 }
  0x11   : > { %s408_s20 = scalar_select %p407_p6, %s5383_s10, 15  ;;  %4683 = vmatprep.subr.bf16.mxu1 %v5157_v5  ;;  %v483_v32 = vsel %vm5441_vm2, 0, %v482_v27  ;;  %v515_v33 = vsel %vm5454_vm4, 0, %v514_v28  ;;  %v476_v34 = vld [vmem:[#allocation2] sm:$0x1]  ;;  %v5164_v36 = vld [vmem:[%s6558_s5 + $0x138] sm:$0xff]  }
  0x12   : > { %s5401_s21 = sshll.u32 %s406_s17, 5  ;;  %v508_v35 = vld [vmem:[#allocation2 + $0x8] sm:$0x1]  ;;  %484 = vst [vmem:[#allocation2 + $0x18] sm:$0x1] %v483_v32  ;;  %v477_v39 = vsel %vm5441_vm2, 0, %v476_v34 }
  0x13   : > { %s4169_s8 = sshll.u32 %s408_s20, 1  ;;  %4812 = vmatpush3.bf16.msra.mxu0 %v5154_v3  ;;  %516 = vst [vmem:[#allocation2 + $0x20] sm:$0x1] %v515_v33  ;;  %v509_v40 = vsel %vm5454_vm4, 0, %v508_v35  ;;  %478 = vst [vmem:[#allocation2] sm:$0x1] %v477_v39 }
  0x14   : > { %s5407_s9 = sadd.s32 %s5401_s21, %s4169_s8  ;;  %4813 = vmatprep.subr.bf16.mxu0 %v5156_v6  ;;  %4684 = vmatpush3.bf16.msra.mxu1 %v5157_v5  ;;  %510 = vst [vmem:[#allocation2 + $0x8] sm:$0x1] %v509_v40  ;;  %v5167_v49 = vld [vmem:[%s6558_s5 + $0x78] sm:$0xff]   ;;  %v485_v52 = vld [vmem:[#allocation2 + $0x24] sm:$0x1]  ;;  %vm1641_vm13 = vcmask 1042432  }
  0x15   : > { %s4171_s15 = sshll.u32 %s5407_s9, 2  ;;  %4685 = vmatprep.subr.bf16.mxu1 %v5159_v7  ;;  %v5510_v53 = vld [vmem:[%s6558_s5 + $0x140] sm:$0xff]   ;;  %v486_v57 = vsel %vm5441_vm2, 0, %v485_v52  ;;  %vm1036_vm10 = vsmask.f32 3328  ;;  %vm1642_vm14 = vcmask 1046532  }
  0x16   : > { %s5428_s22 = scalar_lea.vmem %s6553_s0, %s4171_s15  ;;  %487 = vst [vmem:[#allocation2 + $0x24] sm:$0x1] %v486_v57  ;;  %vm1037_vm11 = vsmask.f32 7440  ;;  %vm5882_vm15 = vmor %vm1641_vm13, %vm1642_vm14  ;;  %p470_p11 = scmp.eq.s32.totalorder %s5287_s24, 1  ;;  %v5231_v16 = vld [vmem:[%s6558_s5 + $0xf8] sm:$0xff]  }
  0x17   : > { %s418_s11 = scalar_select %p417_p7, %s5417_s16, 0  ;;  %4814 = vmatpush3.bf16.msra.mxu0 %v5156_v6  ;;  %v4442_v17 = vld [vmem:[%s5428_s22] sm:$0xff]   ;;  %v4521_v29 = vld [vmem:[%s5428_s22 + $0x8] sm:$0xff]   ;;  %v4522_v58 = vld [vmem:[%s5428_s22 + $0x10] sm:$0xff]  }
  0x18   : > { %4815 = vmatprep.subr.bf16.mxu0 %v5158_v8  ;;  %4686 = vmatpush3.bf16.msra.mxu1 %v5159_v7  ;;  %v4443_v21 = vunpack.c.l.bf16 %v4442_v17  ;;  %v4444_v22 = vunpack.c.h.bf16 %v4442_v17  ;;  %s5481_s17 = scalar_select %p469_p9, 1, 0  ;;  %v4447_v37 = vunpack.c.l.bf16 %v4521_v29  ;;  %v4448_v38 = vunpack.c.h.bf16 %v4521_v29  ;;  %v5538_v7 = vld [vmem:[%s6558_s5] sm:$0xff]   ;;  %v847_v12 = vld [vmem:[#allocation2 + $0x14] sm:$0x1]  ;;  %vm5589_vm12 = vmor %vm1036_vm10, %vm1037_vm11 }
  0x19   : > { %4687 = vmatprep.subr.bf16.mxu1 %v5161_v9  ;;  %s6589_s11 = smov (!%p4174_p8, %s418_s11), 15  ;;  %v488_v29 = vld [vmem:[#allocation2 + $0x30] sm:$0x1]  ;;  %v850_v33 = vld [vmem:[#allocation2 + $0x18] sm:$0xf]  ;;  %s4193_s9 = sshll.u32 %s5291_s25, 1 }
  0x1a   : > { %v576_v25 = vmul.f32 %v4443_v21, %v5448_v14  ;;  %v577_v26 = vmul.f32 %v4444_v22, %v5448_v14  ;;  %s4179_s16 = sshll.u32 %s6589_s11, 1  ;;  %v910_v43 = vstv %s5481_s17  ;;  %v578_v44 = vmul.f32 %v4447_v37, %v5448_v14  ;;  %v854_v37 = vld [vmem:[#allocation2 + $0x20] sm:$0x1] }
  0x1b   : > { %4816 = vmatpush3.bf16.msra.mxu0 %v5158_v8  ;;  %s425_s18 = sadd.s32 %s4179_s16, %s5401_s21  ;;  %v579_v45 = vmul.f32 %v4448_v38, %v5448_v14  ;;  %vm5514_vm7 = vcmp.eq.s32.totalorder %v910_v43, 1  ;;  %v4451_v8 = vunpack.c.l.bf16 %v4522_v58  ;;  %v489_v43 = vsel %vm5441_vm2, 0, %v488_v29 }
  0x1c   : > { %4817 = vmatprep.subr.bf16.mxu0 %v5160_v10  ;;  %4688 = vmatpush3.bf16.msra.mxu1 %v5161_v9  ;;  %v598_v30 = vadd.f32 %v5465_v19, %v576_v25  ;;  %v599_v31 = vadd.f32 %v5465_v19, %v577_v26  ;;  %s4181_s11 = sshll.u32 %s425_s18, 2  ;;  %v600_v54 = vadd.f32 %v5465_v19, %v578_v44  ;;  %v4452_v9 = vunpack.c.h.bf16 %v4522_v58 }
  0x1d   : > { %4689 = vmatprep.subr.bf16.mxu1 %v5163_v18  ;;  %s427_s12 = scalar_lea.vmem %s6554_s1, %s4181_s11  ;;  %v601_v55 = vadd.f32 %v5465_v19, %v579_v45  ;;  %490 = vst [vmem:[#allocation2 + $0x30] sm:$0x1] %v489_v43 }
  0x1e   : > { %v614_v41 = vmax.f32 %v598_v30, 0.0  ;;  %v615_v42 = vmax.f32 %v599_v31, 0.0  ;;  %v4474_v46 = vld [vmem:[%s427_s12] sm:$0xff]   ;;  %v616_v0 = vmax.f32 %v600_v54, 0.0  ;;  %s6071_s13 = scalar_select %p470_p11, 1, 0 }
  0x1f   : > { %4818 = vmatpush3.bf16.msra.mxu0 %v5160_v10  ;;  %v4475_v50 = vunpack.c.l.bf16 %v4474_v46  ;;  %v4476_v51 = vunpack.c.h.bf16 %v4474_v46  ;;  %v617_v1 = vmax.f32 %v601_v55, 0.0  ;;  %v843_v10 = vld [vmem:[#allocation2 + $0xc] sm:$0xf]  ;;  %s6498_s12 = scalar_lea.vmem %s6559_s6, %s4171_s15  ;;  %s461_s15 = sadd.s32 %s5287_s24, %s4193_s9 }
  0x20   : > { %4819 = vmatprep.subr.bf16.mxu0 %v5162_v23  ;;  %4690 = vmatpush3.bf16.msra.mxu1 %v5163_v18  ;;  %v4405_v47 = vpack.c.bf16 %v614_v41, %v614_v41  ;;  %v4406_v48 = vpack.c.bf16 %v615_v42, %v615_v42  ;;  %v4407_v13 = vpack.c.bf16 %v616_v0, %v616_v0  ;;  %p462_p12 = scmp.lt.s32.totalorder %s461_s15, 3 }
  0x21   : > { %4691 = vmatprep.subr.bf16.mxu1 %v5165_v24  ;;  %v903_v2 = vmul.f32 %v4475_v50, %v5448_v14  ;;  %v904_v3 = vmul.f32 %v4476_v51, %v5448_v14  ;;  %v4408_v15 = vpack.c.bf16 %v617_v1, %v617_v1  ;;  %v580_v41 = vmul.f32 %v4451_v8, %v5448_v14 }
  0x22   : > { %v681_v59 = vshrl.u32 %v4405_v47, 16  ;;  %v684_v60 = vshll.u32 %v4405_v47, 16  ;;  %v689_v61 = vshrl.u32 %v4406_v48, 16  ;;  %v692_v62 = vshll.u32 %v4406_v48, 16  ;;  %v520_v48 = vld [vmem:[#allocation2 + $0x38] sm:$0x1] }
  0x23   : > { %4820 = vmatpush3.bf16.msra.mxu0 %v5162_v23  ;;  %v905_v17 = vadd.f32 %v5465_v19, %v903_v2  ;;  %v906_v18 = vadd.f32 %v5465_v19, %v904_v3  ;;  %v698_v25 = vshrl.u32 %v4407_v13, 16  ;;  %v701_v26 = vshll.u32 %v4407_v13, 16  ;;  %s6595_s15 = smov (!%p462_p12, %s461_s15), 3 }
  0x24   : > { %4821 = vmatprep.subr.bf16.mxu0 %v5164_v36  ;;  %4692 = vmatpush3.bf16.msra.mxu1 %v5165_v24  ;;  %v683_v4 = vrot.slane %v681_v59, 7  ;;  %v691_v5 = vrot.slane %v689_v61, 7  ;;  %v517_v24 = vld [vmem:[#allocation2 + $0x2c] sm:$0x1]  ;;  %v706_v27 = vshrl.u32 %v4408_v15, 16  ;;  %v709_v28 = vshll.u32 %v4408_v15, 16 }
  0x25   : > { %4693 = vmatprep.subr.bf16.mxu1 %v5167_v49  ;;  %v907_v34 = vmax.f32 %v905_v17, 0.0  ;;  %v700_v35 = vrot.slane %v698_v25, 7  ;;  %v908_v38 = vmax.f32 %v906_v18, 0.0  ;;  %v518_v39 = vsel %vm5454_vm4, 0, %v517_v24  ;;  %v5569_v59 = vld [vmem:[%s5428_s22 + $0x18] sm:$0xff]   ;;  %v5577_v17 = vld [vmem:[%s5428_s22 + $0x20] sm:$0xff]  }
  0x26   : > { %v686_v20 = vor.u32 %v684_v60, %v683_v4  ;;  %v687_v21 = vrot.slane %v683_v4, 4  ;;  %v694_v22 = vor.u32 %v692_v62, %v691_v5  ;;  %v696_v23 = vrot.slane %v691_v5, 4  ;;  %519 = vst [vmem:[#allocation2 + $0x2c] sm:$0x1] %v518_v39  ;;  %s4194_s25 = sshll.u32 %s6595_s15, 1 }
  0x27   : > { %4822 = vmatpush3.bf16.msra.mxu0 %v5164_v36  ;;  %v708_v36 = vrot.slane %v706_v27, 7  ;;  %v912_v40 = vsel %vm5514_vm7, 0.0, %v907_v34  ;;  %v581_v42 = vmul.f32 %v4452_v9, %v5448_v14  ;;  %v703_v44 = vor.u32 %v701_v26, %v700_v35  ;;  %s465_s24 = scalar_lea.vmem %s6560_s7, %s4194_s25 }
  0x28   : > { %4839 = vmatprep.subr.bf16.mxu0 %v5510_v53  ;;  %4694 = vmatpush3.bf16.msra.mxu1 %v5167_v49  ;;  %v695_v30 = vsel %vm5523_vm8, %v687_v21, %v694_v22  ;;  %v844_v31 = vsel %vm5531_vm9, %v686_v20, %v843_v10  ;;  %v848_v32 = vsel %vm5441_vm2, %v696_v23, %v847_v12  ;;  %v704_v45 = vrot.slane %v700_v35, 4 }
  0x29   : > { %4711 = vmatprep.subr.bf16.mxu1 %v5538_v7  ;;  %845 = vst [vmem:[#allocation2 + $0xc] sm:$0xf] %v844_v31  ;;  %846 = vst [vmem:[#allocation2 + $0x10] sm:$0xf] %v695_v30  ;;  %v711_v46 = vor.u32 %v709_v28, %v708_v36  ;;  %v713_v47 = vrot.slane %v708_v36, 4  ;;  %v913_v49 = vsel %vm5514_vm7, 0.0, %v908_v38  ;;  %v4421_v50 = vpack.c.bf16 %v912_v40, %v912_v40 }
  0x2a   : > { %849 = vst [vmem:[#allocation2 + $0x14] sm:$0x1] %v848_v32  ;;  %v602_v51 = vadd.f32 %v5465_v19, %v580_v41  ;;  %v603_v52 = vadd.f32 %v5465_v19, %v581_v42  ;;  %v851_v55 = vsel %vm5531_vm9, %v703_v44, %v850_v33  ;;  %v4422_v58 = vpack.c.bf16 %v913_v49, %v913_v49 }
  0x2b   : > { %v712_v54 = vsel %vm5523_vm8, %v704_v45, %v711_v46  ;;  %v855_v57 = vsel %vm5441_vm2, %v713_v47, %v854_v37  ;;  %852 = vst [vmem:[#allocation2 + $0x18] sm:$0xf] %v851_v55  ;;  %v921_v56 = vshrl.u32 %v4421_v50, 16  ;;  %v924_v62 = vshll.u32 %v4421_v50, 16  ;;  %v940_v46 = vld [vmem:[#allocation2] sm:$0xf] }
  0x2c   : > { %853 = vst [vmem:[#allocation2 + $0x1c] sm:$0xf] %v712_v54  ;;  %856 = vst [vmem:[#allocation2 + $0x20] sm:$0x1] %v855_v57  ;;  %v618_v60 = vmax.f32 %v602_v51, 0.0  ;;  %v619_v61 = vmax.f32 %v603_v52, 0.0  ;;  %v4455_v9 = vunpack.c.l.bf16 %v5569_v59  ;;  %v4456_v29 = vunpack.c.h.bf16 %v5569_v59 }
  0x2d   : > { %v929_v0 = vshrl.u32 %v4422_v58, 16  ;;  %v932_v1 = vshll.u32 %v4422_v58, 16  ;;  %v521_v2 = vsel %vm5454_vm4, 0, %v520_v48  ;;  %v923_v20 = vrot.slane %v921_v56, 7  ;;  %v944_v52 = vld [vmem:[#allocation2 + $0x8] sm:$0x1] }
  0x2e   : > { %v5573_v8 = vpack.c.bf16 %v618_v60, %v618_v60  ;;  %522 = vst [vmem:[#allocation2 + $0x38] sm:$0x1] %v521_v2  ;;  %v5579_v22 = vpack.c.bf16 %v619_v61, %v619_v61  ;;  %v4459_v30 = vunpack.c.l.bf16 %v5577_v17  ;;  %v582_v47 = vmul.f32 %v4455_v9, %v5448_v14 }
  0x2f   : > { %v931_v21 = vrot.slane %v929_v0, 7  ;;  %v927_v28 = vrot.slane %v923_v20, 4  ;;  %v926_v36 = vor.u32 %v924_v62, %v923_v20  ;;  %v583_v60 = vmul.f32 %v4456_v29, %v5448_v14 }
  0x30   : > { %v2150_v3 = vld [vmem:[#allocation2 + $0xc] sm:$0xf]  ;;  %v2151_v4 = vld [vmem:[#allocation2 + $0x10] sm:$0xf] }
  0x31   : > { %v2152_v5 = vld [vmem:[#allocation2 + $0x14] sm:$0x1]  ;;  %v2175_v10 = vshrl.u32 %v2150_v3, 16  ;;  %v2178_v12 = vshll.u32 %v2150_v3, 16  ;;  %v2184_v13 = vshll.u32 %v2151_v4, 16  ;;  %v2188_v15 = vshrl.u32 %v2151_v4, 16 }
  0x32   : > { %v2194_v18 = vshll.u32 %v2152_v5, 16  ;;  %v2153_v33 = vld [vmem:[#allocation2 + $0x18] sm:$0xf]  ;;  %v934_v37 = vor.u32 %v932_v1, %v931_v21  ;;  %v998_v54 = vld [vmem:[#allocation2 + $0xc] sm:$0xf]  ;;  %v936_v3 = vrot.slane %v931_v21, 4  ;;  %v941_v4 = vsel %vm5531_vm9, %v926_v36, %v940_v46 }
  0x33   : > { %v2177_v23 = vrot.slane %v2175_v10, 4  ;;  %v2180_v24 = vrot.slane %v2178_v12, 5  ;;  %v2186_v25 = vrot.slane %v2184_v13, 5  ;;  %v2190_v26 = vrot.slane %v2188_v15, 4  ;;  %v5583_v34 = vld [vmem:[#allocation2 + $0x1c] sm:$0xf] }
  0x34   : > { %v2196_v27 = vrot.slane %v2194_v18, 5  ;;  %v5585_v35 = vld [vmem:[#allocation2 + $0x20] sm:$0x1]  ;;  %v2199_v39 = vshrl.u32 %v2153_v33, 16  ;;  %v2202_v40 = vshll.u32 %v2153_v33, 16  ;;  %v2208_v41 = vshll.u32 %v5583_v34, 16 }
  0x35   : > { %v2181_v31 = vor.u32 %v2180_v24, %v2177_v23  ;;  %v2191_v32 = vor.u32 %v2190_v26, %v2186_v25  ;;  %v2212_v42 = vshrl.u32 %v5583_v34, 16  ;;  %v2218_v45 = vshll.u32 %v5585_v35, 16  ;;  %v999_v59 = vld [vmem:[#allocation2 + $0x10] sm:$0xf]  ;;  %v1029_v56 = vld [vmem:[#allocation2 + $0x14] sm:$0x1] }
  0x36   : > { %v2201_v48 = vrot.slane %v2199_v39, 4  ;;  %v2204_v49 = vrot.slane %v2202_v40, 5  ;;  %v2210_v50 = vrot.slane %v2208_v41, 5  ;;  %v2616_v58 = vrot.slane %v5583_v34, 5  ;;  %942 = vst [vmem:[#allocation2] sm:$0xf] %v941_v4 }
  0x37   : > { %v2182_v43 = vrot.slane %v2181_v31, 4  ;;  %v2192_v44 = vrot.slane %v2191_v32, 4  ;;  %v2214_v51 = vrot.slane %v2212_v42, 4  ;;  %v2220_v1 = vrot.slane %v2218_v45, 5  ;;  %v5609_v24 = vld [vmem:[#allocation2 + $0x18] sm:$0xf] }
  0x38   : > { %v2205_v62 = vor.u32 %v2204_v49, %v2201_v48  ;;  %v935_v2 = vsel %vm5523_vm8, %v927_v28, %v934_v37  ;;  %v1064_v5 = vshrl.u32 %v998_v54, 16  ;;  %v1067_v12 = vshll.u32 %v998_v54, 16  ;;  %v5168_v32 = vld [vmem:[%s6558_s5 + $0x148] sm:$0xff]  }
  0x39   : > { %v2187_v55 = vsel %vm5589_vm12, %v2182_v43, %v2186_v25  ;;  %v2197_v57 = vsel %vm5589_vm12, %v2192_v44, %v2196_v27  ;;  %v2215_v0 = vor.u32 %v2214_v51, %v2210_v50  ;;  %943 = vst [vmem:[#allocation2 + $0x4] sm:$0xf] %v935_v2  ;;  %v1073_v13 = vshll.u32 %v999_v59, 16  ;;  %v5170_v44 = vld [vmem:[%s6558_s5 + $0x150] sm:$0xff]  }
  0x3a   : > { %v4289_v61 = vcombine.low %v2187_v55, %v2197_v57  ;;  %v2206_v9 = vrot.slane %v2205_v62, 4  ;;  %v945_v15 = vsel %vm5441_vm2, %v936_v3, %v944_v52  ;;  %v1066_v18 = vrot.slane %v1064_v5, 4 }
  0x3b   : > { %v2216_v10 = vrot.slane %v2215_v0, 4  ;;  %v1077_v20 = vshrl.u32 %v999_v59, 16  ;;  %v1083_v23 = vshll.u32 %v1029_v56, 16  ;;  %946 = vst [vmem:[#allocation2 + $0x8] sm:$0x1] %v945_v15  ;;  %v1069_v26 = vrot.slane %v1067_v12, 5 }
  0x3c   : > { %4823 = vmatprep.mubr.bf16.mxu0 %v4289_v61  ;;  %v2211_v21 = vsel %vm5589_vm12, %v2206_v9, %v2210_v50  ;;  %v1075_v27 = vrot.slane %v1073_v13, 5  ;;  %v5617_v29 = vrot.slane %v2616_v58, 4  ;;  %v2619_v31 = vrot.slane %v5585_v35, 5  ;;  %v861_v13 = vld [vmem:[#allocation2 + $0x2c] sm:$0x1] }
  0x3d   : > { %v2221_v25 = vsel %vm5589_vm12, %v2216_v10, %v2220_v1  ;;  %v1079_v33 = vrot.slane %v1077_v20, 4  ;;  %v1070_v36 = vor.u32 %v1069_v26, %v1066_v18  ;;  %v1085_v37 = vrot.slane %v1083_v23, 5  ;;  %v996_v51 = vld [vmem:[#allocation2] sm:$0xf]  ;;  %v1001_v15 = vld [vmem:[#allocation2 + $0x1c] sm:$0xf] }
  0x3e   : > { %v4290_v28 = vcombine.low %v2211_v21, %v2221_v25  ;;  %v715_v39 = vshrl.u32 %v5573_v8, 16  ;;  %v723_v40 = vshrl.u32 %v5579_v22, 16  ;;  %v718_v42 = vshll.u32 %v5573_v8, 16  ;;  %v857_v8 = vld [vmem:[#allocation2 + $0x24] sm:$0xf]  ;;  %v5172_v18 = vld [vmem:[%s6558_s5 + $0x158] sm:$0xff]  }
  0x3f   : > { %v1080_v41 = vor.u32 %v1079_v33, %v1075_v27  ;;  %v726_v43 = vshll.u32 %v5579_v22, 16  ;;  %v604_v45 = vadd.f32 %v5465_v19, %v582_v47  ;;  %v1071_v46 = vrot.slane %v1070_v36, 4 }
  0x40   : > { %4824 = vmatmul.mubr.bf16.vlgmr.msra.gmra.mrb[0].mxu0 %v4290_v28  ;;  %v717_v48 = vrot.slane %v715_v39, 7  ;;  %v725_v49 = vrot.slane %v723_v40, 7  ;;  %v1088_v50 = vshrl.u32 %v5609_v24, 16  ;;  %v997_v52 = vld [vmem:[#allocation2 + $0x4] sm:$0xf]  ;;  %v605_v22 = vadd.f32 %v5465_v19, %v583_v60 }
  0x41   : > { %4840 = vmatpush3.bf16.msra.mxu0 %v5510_v53  ;;  %v1081_v54 = vrot.slane %v1080_v41, 4  ;;  %v620_v55 = vmax.f32 %v604_v45, 0.0  ;;  %v4460_v57 = vunpack.c.h.bf16 %v5577_v17  ;;  %v1040_v59 = vshrl.u32 %v996_v51, 16  ;;  %v1030_v39 = vld [vmem:[#allocation2 + $0x20] sm:$0x1] }
  0x42   : > { %4841 = vmatprep.subr.bf16.mxu0 %v5168_v32  ;;  %v1043_v56 = vshll.u32 %v996_v51, 16  ;;  %v1049_v47 = vshll.u32 %v997_v52, 16  ;;  %v1053_v61 = vshrl.u32 %v997_v52, 16  ;;  %v1028_v53 = vld [vmem:[#allocation2 + $0x8] sm:$0x1]  ;;  %v1076_v62 = vsel %vm5589_vm12, %v1071_v46, %v1075_v27 }
  0x43   : > { %v1086_v0 = vsel %vm5589_vm12, %v1081_v54, %v1085_v37  ;;  %v720_v1 = vor.u32 %v718_v42, %v717_v48  ;;  %v721_v2 = vrot.slane %v717_v48, 4  ;;  %v1042_v3 = vrot.slane %v1040_v59, 4  ;;  %v491_v41 = vld [vmem:[#allocation2 + $0x3c] sm:$0x1]  ;;  %v523_v48 = vld [vmem:[#allocation2 + $0x44] sm:$0x1] }
  0x44   : > { %v1045_v4 = vrot.slane %v1043_v56, 5  ;;  %v1051_v5 = vrot.slane %v1049_v47, 5  ;;  %v1055_v60 = vrot.slane %v1053_v61, 4  ;;  %v1059_v9 = vshll.u32 %v1028_v53, 16  ;;  %v864_v59 = vld [vmem:[#allocation2 + $0x30] sm:$0xf] }
  0x45   : > { %4842 = vmatpush3.bf16.msra.mxu0 %v5168_v32  ;;  %v4218_v10 = vcombine.low %v1076_v62, %v1086_v0  ;;  %v728_v12 = vor.u32 %v726_v43, %v725_v49  ;;  %v5645_v20 = vmul.f32 %v4459_v30, %v5448_v14  ;;  %v730_v25 = vrot.slane %v725_v49, 4  ;;  %v5174_v49 = vld [vmem:[%s6558_s5 + $0x160] sm:$0xff]  }
  0x46   : > { %4843 = vmatprep.subr.bf16.mxu0 %v5170_v44  ;;  %v1046_v23 = vor.u32 %v1045_v4, %v1042_v3  ;;  %v1056_v21 = vor.u32 %v1055_v60, %v1051_v5  ;;  %v858_v26 = vsel %vm5531_vm9, %v720_v1, %v857_v8  ;;  %v1061_v27 = vrot.slane %v1059_v9, 5  ;;  %v5171_v8 = vld [vmem:[%s6558_s5 + $0x8] sm:$0xff]  }
  0x47   : > { %v729_v28 = vsel %vm5523_vm8, %v721_v2, %v728_v12  ;;  %859 = vst [vmem:[#allocation2 + $0x24] sm:$0xf] %v858_v26  ;;  %v621_v32 = vmax.f32 %v605_v22, 0.0  ;;  %v4411_v33 = vpack.c.bf16 %v620_v55, %v620_v55  ;;  %v862_v30 = vsel %vm5441_vm2, %v730_v25, %v861_v13  ;;  %v868_v2 = vld [vmem:[#allocation2 + $0x38] sm:$0x1]  ;;  %v5176_v4 = vld [vmem:[%s6558_s5 + $0x168] sm:$0xff]  }
  0x48   : > { %v1047_v36 = vrot.slane %v1046_v23, 4  ;;  %v1057_v37 = vrot.slane %v1056_v21, 4  ;;  %860 = vst [vmem:[#allocation2 + $0x28] sm:$0xf] %v729_v28  ;;  %v1090_v40 = vrot.slane %v1088_v50, 4  ;;  %v1091_v46 = vshll.u32 %v5609_v24, 16 }
  0x49   : > { %4844 = vmatpush3.bf16.msra.mxu0 %v5170_v44  ;;  %863 = vst [vmem:[#allocation2 + $0x2c] sm:$0x1] %v862_v30  ;;  %v4412_v42 = vpack.c.bf16 %v621_v32, %v621_v32  ;;  %v732_v43 = vshrl.u32 %v4411_v33, 16  ;;  %v735_v45 = vshll.u32 %v4411_v33, 16  ;;  %v1097_v50 = vshll.u32 %v1001_v15, 16 }
  0x4a   : > { %4845 = vmatprep.subr.bf16.mxu0 %v5172_v18  ;;  %v1052_v51 = vsel %vm5589_vm12, %v1047_v36, %v1051_v5  ;;  %v1062_v44 = vsel %vm5589_vm12, %v1057_v37, %v1061_v27  ;;  %v1101_v52 = vshrl.u32 %v1001_v15, 16  ;;  %v1093_v56 = vrot.slane %v1091_v46, 5 }
  0x4b   : > { %v4217_v54 = vcombine.low %v1052_v51, %v1062_v44  ;;  %v734_v24 = vrot.slane %v732_v43, 7  ;;  %v740_v22 = vshrl.u32 %v4412_v42, 16  ;;  %v743_v55 = vshll.u32 %v4412_v42, 16 }
  0x4c   : > { %v5664_v47 = vrot.slane %v1097_v50, 5  ;;  %v1103_v61 = vrot.slane %v1101_v52, 4  ;;  %v1107_v53 = vshll.u32 %v1030_v39, 16  ;;  %v492_v3 = vsel %vm5441_vm2, 0, %v491_v41  ;;  %v5178_v41 = vld [vmem:[%s6558_s5 + $0x170] sm:$0xff]  }
  0x4d   : > { %4846 = vmatpush3.bf16.msra.mxu0 %v5172_v18  ;;  %4695 = vmatprep.mubr.bf16.mxu1 %v4217_v54  ;;  %v737_v62 = vor.u32 %v735_v45, %v734_v24  ;;  %v738_v0 = vrot.slane %v734_v24, 4  ;;  %v742_v1 = vrot.slane %v740_v22, 7  ;;  %v1094_v60 = vor.u32 %v1093_v56, %v1090_v40  ;;  %493 = vst [vmem:[#allocation2 + $0x3c] sm:$0x1] %v492_v3 }
  0x4e   : > { %4847 = vmatprep.subr.bf16.mxu0 %v5174_v49  ;;  %4696 = vmatmul.mubr.bf16.vlgmr.msra.gmra.mrb[0].mxu1 %v4218_v10  ;;  %v2156_v5 = vld [vmem:[#allocation2 + $0x24] sm:$0xf]  ;;  %v1104_v9 = vor.u32 %v1103_v61, %v5664_v47  ;;  %v1109_v12 = vrot.slane %v1107_v53, 5  ;;  %v524_v15 = vsel %vm5454_vm4, 0, %v523_v48  ;;  %v494_v53 = vld [vmem:[#allocation2 + $0x48] sm:$0x1] }
  0x4f   : > { %v1002_v13 = vld [vmem:[#allocation2 + $0x24] sm:$0xf]  ;;  %4712 = vmatpush3.bf16.msra.mxu1 %v5538_v7  ;;  %v5675_v18 = vld [vmem:[#allocation2 + $0x28] sm:$0xf]  ;;  %v2223_v23 = vshrl.u32 %v2156_v5, 16  ;;  %v2226_v21 = vshll.u32 %v2156_v5, 16  ;;  %v745_v25 = vor.u32 %v743_v55, %v742_v1  ;;  %v865_v32 = vsel %vm5531_vm9, %v737_v62, %v864_v59 }
  0x50   : > { %v747_v26 = vrot.slane %v742_v1, 4  ;;  %525 = vst [vmem:[#allocation2 + $0x44] sm:$0x1] %v524_v15  ;;  %v5677_v10 = vld [vmem:[#allocation2 + $0x2c] sm:$0x1]  ;;  %v2232_v27 = vshll.u32 %v5675_v18, 16  ;;  %4713 = vmatprep.subr.bf16.mxu1 %v5171_v8  ;;  %v606_v15 = vadd.f32 %v5465_v19, %v5645_v20 }
  0x51   : > { %v2236_v28 = vshrl.u32 %v5675_v18, 16  ;;  %v1095_v33 = vrot.slane %v1094_v60, 4  ;;  %v5173_v7 = vld [vmem:[%s6558_s5 + $0x10] sm:$0xff]   ;;  %4848 = vmatpush3.bf16.msra.mxu0 %v5174_v49  ;;  %v2225_v36 = vrot.slane %v2223_v23, 4  ;;  %v2228_v37 = vrot.slane %v2226_v21, 5  ;;  %v5175_v55 = vld [vmem:[%s6558_s5 + $0x18] sm:$0xff]  }
  0x52   : > { %v2242_v30 = vshll.u32 %v5677_v10, 16  ;;  %v746_v39 = vsel %vm5523_vm8, %v738_v0, %v745_v25  ;;  %866 = vst [vmem:[#allocation2 + $0x30] sm:$0xf] %v865_v32  ;;  %v1003_v40 = vld [vmem:[#allocation2 + $0x28] sm:$0xf]  ;;  %4849 = vmatprep.subr.bf16.mxu0 %v5176_v4  ;;  %v2234_v42 = vrot.slane %v2232_v27, 5  ;;  %v869_v45 = vsel %vm5441_vm2, %v747_v26, %v868_v2 }
  0x53   : > { %v2238_v43 = vrot.slane %v2236_v28, 4  ;;  %867 = vst [vmem:[#allocation2 + $0x34] sm:$0xf] %v746_v39  ;;  %v1100_v46 = vsel %vm5589_vm12, %v1095_v33, %v5664_v47  ;;  %v1031_v48 = vld [vmem:[#allocation2 + $0x2c] sm:$0x1]  ;;  %v2229_v49 = vor.u32 %v2228_v37, %v2225_v36  ;;  %4714 = vmatpush3.bf16.msra.mxu1 %v5171_v8  ;;  %v1105_v44 = vrot.slane %v1104_v9, 4 }
  0x54   : > { %v2244_v51 = vrot.slane %v2242_v30, 5  ;;  %870 = vst [vmem:[#allocation2 + $0x38] sm:$0x1] %v869_v45  ;;  %v1112_v50 = vshrl.u32 %v1002_v13, 16  ;;  %v1115_v54 = vshll.u32 %v1002_v13, 16  ;;  %v1121_v24 = vshll.u32 %v1003_v40, 16  ;;  %4715 = vmatprep.subr.bf16.mxu1 %v5173_v7 }
  0x55   : > { %v2239_v52 = vor.u32 %v2238_v43, %v2234_v42  ;;  %v1125_v22 = vshrl.u32 %v1003_v40, 16  ;;  %4850 = vmatpush3.bf16.msra.mxu0 %v5176_v4  ;;  %v2230_v59 = vrot.slane %v2229_v49, 4  ;;  %v1110_v56 = vsel %vm5589_vm12, %v1105_v44, %v1109_v12  ;;  %v5180_v2 = vld [vmem:[%s6558_s5 + $0x178] sm:$0xff]   ;;  %v5177_v21 = vld [vmem:[%s6558_s5 + $0x20] sm:$0xff]   ;;  %v4525_v36 = vld [vmem:[%s5428_s22 + $0x28] sm:$0xff]  }
  0x56   : > { %v1114_v47 = vrot.slane %v1112_v50, 4  ;;  %v1131_v61 = vshll.u32 %v1031_v48, 16  ;;  %4851 = vmatprep.subr.bf16.mxu0 %v5178_v41  ;;  %v4219_v62 = vcombine.low %v1100_v46, %v1110_v56  ;;  %v1117_v0 = vrot.slane %v1115_v54, 5  ;;  %v5730_v37 = vld [vmem:[%s6558_s5 + $0x180] sm:$0xff]   ;;  %v5179_v49 = vld [vmem:[%s6558_s5 + $0x28] sm:$0xff]  }
  0x57   : > { %v2240_v8 = vrot.slane %v2239_v52, 4  ;;  %v1123_v1 = vrot.slane %v1121_v24, 5  ;;  %v2235_v3 = vsel %vm5589_vm12, %v2230_v59, %v2234_v42  ;;  %v1127_v4 = vrot.slane %v1125_v22, 4  ;;  %4716 = vmatpush3.bf16.msra.mxu1 %v5173_v7  ;;  %v526_v42 = vld [vmem:[#allocation2 + $0x50] sm:$0x1]  ;;  %v5209_v63 = vld [vmem:[#allocation2 + $0x24] sm:$0xff]  }
  0x58   : > { %v1133_v5 = vrot.slane %v1131_v61, 5  ;;  %v585_v60 = vmul.f32 %v4460_v57, %v5448_v14  ;;  %4699 = vmatprep.mubr.bf16.mxu1 %v4219_v62  ;;  %v1118_v13 = vor.u32 %v1117_v0, %v1114_v47  ;;  %4717 = vmatprep.subr.bf16.mxu1 %v5175_v55  ;;  %v495_v23 = vsel %vm5441_vm2, 0, %v494_v53  ;;  %v5181_v53 = vld [vmem:[%s6558_s5 + $0x30] sm:$0xff]  }
  0x59   : > { %v2245_v9 = vsel %vm5589_vm12, %v2240_v8, %v2244_v51  ;;  %v2159_v12 = vld [vmem:[#allocation2 + $0x30] sm:$0xf]  ;;  %v1128_v27 = vor.u32 %v1127_v4, %v1123_v1  ;;  %496 = vst [vmem:[#allocation2 + $0x48] sm:$0x1] %v495_v23  ;;  %4852 = vmatpush3.bf16.msra.mxu0 %v5178_v41  ;;  %v622_v46 = vmax.f32 %v606_v15, 0.0  ;;  %v4463_v47 = vunpack.c.l.bf16 %v4525_v36 }
  0x5a   : > { %v4291_v17 = vcombine.low %v2235_v3, %v2245_v9  ;;  %v5719_v57 = vld [vmem:[#allocation2 + $0x34] sm:$0xf]  ;;  %v2247_v25 = vshrl.u32 %v2159_v12, 16  ;;  %v2250_v26 = vshll.u32 %v2159_v12, 16  ;;  %v1119_v33 = vrot.slane %v1118_v13, 4  ;;  %4853 = vmatprep.subr.bf16.mxu0 %v5180_v2 }
  0x5b   : > { %v5721_v28 = vld [vmem:[#allocation2 + $0x38] sm:$0x1]  ;;  %v2256_v20 = vshll.u32 %v5719_v57, 16  ;;  %v2260_v32 = vshrl.u32 %v5719_v57, 16  ;;  %v607_v7 = vadd.f32 %v5465_v19, %v585_v60  ;;  %v1129_v41 = vrot.slane %v1128_v27, 4  ;;  %4718 = vmatpush3.bf16.msra.mxu1 %v5175_v55  ;;  %v5212_v6 = vld [vmem:[#allocation2 + $0x30] sm:$0xff]  }
  0x5c   : > { %4827 = vmatprep.mubr.bf16.mxu0 %v4291_v17  ;;  %v2249_v30 = vrot.slane %v2247_v25, 4  ;;  %v2252_v39 = vrot.slane %v2250_v26, 5  ;;  %v2266_v40 = vshll.u32 %v5721_v28, 16  ;;  %v1124_v19 = vsel %vm5589_vm12, %v1119_v33, %v1123_v1  ;;  %v5735_v48 = vld [vmem:[#allocation2 + $0x30] sm:$0xf]  ;;  %4719 = vmatprep.subr.bf16.mxu1 %v5177_v21  ;;  %v5183_v25 = vld [vmem:[%s6558_s5 + $0x38] sm:$0xff]  }
  0x5d   : > { %v2258_v43 = vrot.slane %v2256_v20, 5  ;;  %v2262_v45 = vrot.slane %v2260_v32, 4  ;;  %v1134_v50 = vsel %vm5589_vm12, %v1129_v41, %v1133_v5  ;;  %v623_v52 = vmax.f32 %v607_v7, 0.0  ;;  %4854 = vmatpush3.bf16.msra.mxu0 %v5180_v2  ;;  %v5748_v1 = vld [vmem:[#allocation2 + $0x34] sm:$0xf] }
  0x5e   : > { %v2253_v51 = vor.u32 %v2252_v39, %v2249_v30  ;;  %v2268_v44 = vrot.slane %v2266_v40, 5  ;;  %v4220_v24 = vcombine.low %v1124_v19, %v1134_v50  ;;  %v4413_v22 = vpack.c.bf16 %v622_v46, %v622_v46  ;;  %4871 = vmatprep.subr.bf16.mxu0 %v5730_v37  ;;  %v871_v60 = vld [vmem:[#allocation2 + $0x3c] sm:$0xf]  ;;  %v875_v15 = vld [vmem:[#allocation2 + $0x44] sm:$0x1]  ;;  %v4526_v50 = vld [vmem:[%s5428_s22 + $0x30] sm:$0xff]  }
  0x5f   : > { %v2263_v54 = vor.u32 %v2262_v45, %v2258_v43  ;;  %v527_v55 = vsel %vm5454_vm4, 0, %v526_v42  ;;  %v4414_v56 = vpack.c.bf16 %v623_v52, %v623_v52  ;;  %v4464_v61 = vunpack.c.h.bf16 %v4525_v36  ;;  %4720 = vmatpush3.bf16.msra.mxu1 %v5177_v21  ;;  %v5759_v23 = vld [vmem:[%s6556_s3] ss:$0 sm:$0xff]  ;;  %v1032_v32 = vld [vmem:[#allocation2 + $0x38] sm:$0x1] }
  0x60   : > { %v2254_v59 = vrot.slane %v2253_v51, 4  ;;  %528 = vst [vmem:[#allocation2 + $0x50] sm:$0x1] %v527_v55  ;;  %4700 = vmatmul.mubr.bf16.gmra.mrb[4].mxu1 %v4220_v24  ;;  %v749_v62 = vshrl.u32 %v4413_v22, 16  ;;  %v752_v0 = vshll.u32 %v4413_v22, 16  ;;  %v1136_v2 = vshrl.u32 %v5735_v48, 16  ;;  %4721 = vmatprep.subr.bf16.mxu1 %v5179_v49 }
  0x61   : > { %v2264_v8 = vrot.slane %v2263_v54, 4  ;;  %v757_v4 = vshrl.u32 %v4414_v56, 16  ;;  %v760_v5 = vshll.u32 %v4414_v56, 16  ;;  %v586_v9 = vmul.f32 %v4463_v47, %v5448_v14  ;;  %v5768_v14 = vld [vmem:[%s6557_s4] ss:$0 sm:$0xff] }
  0x62   : > { %v2259_v3 = vsel %vm5589_vm12, %v2254_v59, %v2258_v43  ;;  %v751_v13 = vrot.slane %v749_v62, 7  ;;  %v587_v21 = vmul.f32 %v5759_v23, %v4464_v61  ;;  %v1138_v17 = vrot.slane %v1136_v2, 4  ;;  %v497_v7 = vld [vmem:[#allocation2 + $0x54] sm:$0x1]  ;;  %v500_v55 = vld [vmem:[#allocation2 + $0x60] sm:$0x1] }
  0x63   : > { %v2269_v12 = vsel %vm5589_vm12, %v2264_v8, %v2268_v44  ;;  %v759_v27 = vrot.slane %v757_v4, 7  ;;  %v608_v20 = vadd.f32 %v5768_v14, %v586_v9  ;;  %v1139_v33 = vshll.u32 %v5735_v48, 16  ;;  %4722 = vmatpush3.bf16.msra.mxu1 %v5179_v49  ;;  %v529_v44 = vld [vmem:[#allocation2 + $0x5c] sm:$0x1]  ;;  %v532_v59 = vld [vmem:[#allocation2 + $0x68] sm:$0x1] }
  0x64   : > { %v4292_v26 = vcombine.low %v2259_v3, %v2269_v12  ;;  %v754_v36 = vor.u32 %v752_v0, %v751_v13  ;;  %v755_v30 = vrot.slane %v751_v13, 4  ;;  %v609_v39 = vadd.f32 %v5768_v14, %v587_v21  ;;  %4723 = vmatprep.subr.bf16.mxu1 %v5181_v53  ;;  %v5787_v62 = vld [vmem:[%s6558_s5 + $0x80] sm:$0xff]  }
  0x65   : > { %v1145_v40 = vshll.u32 %v5748_v1, 16  ;;  %v762_v41 = vor.u32 %v760_v5, %v759_v27  ;;  %v764_v42 = vrot.slane %v759_v27, 4  ;;  %v624_v43 = vmax.f32 %v608_v20, 0.0 }
  0x66   : > { %4828 = vmatmul.mubr.bf16.gmra.mrb[4].mxu0 %v4292_v26  ;;  %v1141_v45 = vrot.slane %v1139_v33, 5  ;;  %v872_v19 = vsel %vm5531_vm9, %v754_v36, %v871_v60  ;;  %v625_v46 = vmax.f32 %v609_v39, 0.0  ;;  %v1149_v49 = vshrl.u32 %v5748_v1, 16  ;;  %v878_v60 = vld [vmem:[#allocation2 + $0x48] sm:$0xf]  ;;  %v5794_v26 = vld [vmem:[%s5428_s22 + $0x38] sm:$0xff]  }
  0x67   : > { %v1147_v51 = vrot.slane %v1145_v40, 5  ;;  %v763_v52 = vsel %vm5523_vm8, %v755_v30, %v762_v41  ;;  %873 = vst [vmem:[#allocation2 + $0x3c] sm:$0xf] %v872_v19  ;;  %v876_v54 = vsel %vm5441_vm2, %v764_v42, %v875_v15  ;;  %v4415_v24 = vpack.c.bf16 %v624_v43, %v624_v43  ;;  %4724 = vmatpush3.bf16.msra.mxu1 %v5181_v53  ;;  %v882_v20 = vld [vmem:[#allocation2 + $0x50] sm:$0x1]  ;;  %s433_s22 = sadd.s32 8, %s5383_s10 }
  0x68   : > { %v1142_v22 = vor.u32 %v1141_v45, %v1138_v17  ;;  %874 = vst [vmem:[#allocation2 + $0x40] sm:$0xf] %v763_v52  ;;  %877 = vst [vmem:[#allocation2 + $0x44] sm:$0x1] %v876_v54  ;;  %v4416_v56 = vpack.c.bf16 %v625_v46, %v625_v46  ;;  %v1151_v47 = vrot.slane %v1149_v49, 4  ;;  %v1155_v61 = vshll.u32 %v1032_v32, 16  ;;  %4725 = vmatprep.subr.bf16.mxu1 %v5183_v25 }
  0x69   : > { %v498_v8 = vsel %vm5441_vm2, 0, %v497_v7  ;;  %v766_v0 = vshrl.u32 %v4415_v24, 16  ;;  %v769_v2 = vshll.u32 %v4415_v24, 16  ;;  %v530_v53 = vsel %vm5454_vm4, 0, %v529_v44  ;;  %p5937_p10 = scmp.lt.s32.totalorder %s433_s22, 15 }
  0x6a   : > { %v1143_v3 = vrot.slane %v1142_v22, 4  ;;  %499 = vst [vmem:[#allocation2 + $0x54] sm:$0x1] %v498_v8  ;;  %v774_v4 = vshrl.u32 %v4416_v56, 16  ;;  %v777_v5 = vshll.u32 %v4416_v56, 16  ;;  %v1152_v9 = vor.u32 %v1151_v47, %v1147_v51 }
  0x6b   : > { %v1157_v12 = vrot.slane %v1155_v61, 5  ;;  %531 = vst [vmem:[#allocation2 + $0x5c] sm:$0x1] %v530_v53  ;;  %v768_v13 = vrot.slane %v766_v0, 7  ;;  %v4467_v21 = vunpack.c.l.bf16 %v4526_v50  ;;  %v4468_v17 = vunpack.c.h.bf16 %v4526_v50  ;;  %4726 = vmatpush3.bf16.msra.mxu1 %v5183_v25  ;;  %s6591_s22 = smov (!%p5937_p10, %s433_s22), 15 }
  0x6c   : > { %v1148_v15 = vsel %vm5589_vm12, %v1143_v3, %v1147_v51  ;;  %v776_v27 = vrot.slane %v774_v4, 7  ;;  %v1153_v32 = vrot.slane %v1152_v9, 4  ;;  %v501_v33 = vsel %vm5441_vm2, 0, %v500_v55  ;;  %4743 = vmatprep.subr.bf16.mxu1 %v5787_v62  ;;  %s6593_s22 = smov (!%p5937_p10, %s6591_s22), 15 }
  0x6d   : > { %v533_v7 = vsel %vm5454_vm4, 0, %v532_v59  ;;  %v771_v36 = vor.u32 %v769_v2, %v768_v13  ;;  %v772_v30 = vrot.slane %v768_v13, 4  ;;  %v588_v39 = vmul.f32 %v5759_v23, %v4467_v21  ;;  %502 = vst [vmem:[#allocation2 + $0x60] sm:$0x1] %v501_v33  ;;  %s5991_s10 = sshll.u32 %s6593_s22, 1 }
  0x6e   : > { %v589_v40 = vmul.f32 %v5759_v23, %v4468_v17  ;;  %534 = vst [vmem:[#allocation2 + $0x68] sm:$0x1] %v533_v7  ;;  %v2162_v25 = vld [vmem:[#allocation2 + $0x3c] sm:$0xf]  ;;  %v779_v41 = vor.u32 %v777_v5, %v776_v27  ;;  %v781_v42 = vrot.slane %v776_v27, 4  ;;  %v1158_v43 = vsel %vm5589_vm12, %v1153_v32, %v1157_v12  ;;  %s442_s14 = sadd.s32 %s5991_s10, %s5401_s21 }
  0x6f   : > { %v5805_v45 = vld [vmem:[#allocation2 + $0x3c] sm:$0xf]  ;;  %v4471_v19 = vunpack.c.l.bf16 %v5794_v26  ;;  %v5808_v46 = vld [vmem:[#allocation2 + $0x40] sm:$0xf]  ;;  %v5810_v51 = vld [vmem:[#allocation2 + $0x44] sm:$0x1]  ;;  %v879_v50 = vsel %vm5531_vm9, %v771_v36, %v878_v60  ;;  %v4221_v52 = vcombine.low %v1148_v15, %v1158_v43  ;;  %v610_v17 = vadd.f32 %v5768_v14, %v588_v39 }
  0x70   : > { %v2271_v49 = vshrl.u32 %v2162_v25, 16  ;;  %v2274_v44 = vshll.u32 %v2162_v25, 16  ;;  %v2280_v54 = vshll.u32 %v5808_v46, 16  ;;  %v2284_v24 = vshrl.u32 %v5808_v46, 16  ;;  %880 = vst [vmem:[#allocation2 + $0x48] sm:$0xf] %v879_v50 }
  0x71   : > { %v2290_v22 = vshll.u32 %v5810_v51, 16  ;;  %v780_v55 = vsel %vm5523_vm8, %v772_v30, %v779_v41  ;;  %v5819_v59 = vld [vmem:[#allocation2 + $0x40] sm:$0xf]  ;;  %v883_v61 = vsel %vm5441_vm2, %v781_v42, %v882_v20  ;;  %4703 = vmatprep.mubr.bf16.mxu1 %v4221_v52  ;;  %v5823_v8 = vld [vmem:[#allocation2 + $0x44] sm:$0x1]  ;;  %v1160_v0 = vshrl.u32 %v5805_v45, 16 }
  0x72   : > { %v2273_v56 = vrot.slane %v2271_v49, 4  ;;  %v2276_v47 = vrot.slane %v2274_v44, 5  ;;  %881 = vst [vmem:[#allocation2 + $0x4c] sm:$0xf] %v780_v55  ;;  %v2282_v2 = vrot.slane %v2280_v54, 5  ;;  %v2286_v3 = vrot.slane %v2284_v24, 4 }
  0x73   : > { %v2292_v53 = vrot.slane %v2290_v22, 5  ;;  %884 = vst [vmem:[#allocation2 + $0x50] sm:$0x1] %v883_v61  ;;  %v1163_v4 = vshll.u32 %v5805_v45, 16  ;;  %v1162_v60 = vrot.slane %v1160_v0, 4  ;;  %v1169_v9 = vshll.u32 %v5819_v59, 16 }
  0x74   : > { %v2277_v5 = vor.u32 %v2276_v47, %v2273_v56  ;;  %v1173_v12 = vshrl.u32 %v5819_v59, 16  ;;  %v2287_v13 = vor.u32 %v2286_v3, %v2282_v2  ;;  %v1179_v21 = vshll.u32 %v5823_v8, 16  ;;  %s6018_s21 = sshll.u32 %s442_s14, 2 }
  0x75   : > { %v1165_v15 = vrot.slane %v1163_v4, 5  ;;  %v1171_v20 = vrot.slane %v1169_v9, 5  ;;  %v611_v33 = vadd.f32 %v5768_v14, %v589_v40  ;;  %v626_v25 = vmax.f32 %v610_v17, 0.0  ;;  %s444_s23 = scalar_lea.vmem %s6555_s2, %s6018_s21 }
  0x76   : > { %v2278_v27 = vrot.slane %v2277_v5, 4  ;;  %v1175_v32 = vrot.slane %v1173_v12, 4  ;;  %v2288_v7 = vrot.slane %v2287_v13, 4  ;;  %v1181_v30 = vrot.slane %v1179_v21, 5 }
  0x77   : > { %v1166_v36 = vor.u32 %v1165_v15, %v1162_v60  ;;  %v2165_v42 = vld [vmem:[#allocation2 + $0x48] sm:$0xf]  ;;  %v627_v49 = vmax.f32 %v611_v33, 0.0  ;;  %v4472_v44 = vunpack.c.h.bf16 %v5794_v26  ;;  %v4417_v60 = vpack.c.bf16 %v626_v25, %v626_v25 }
  0x78   : > { %v2283_v41 = vsel %vm5589_vm12, %v2278_v27, %v2282_v2  ;;  %v1176_v43 = vor.u32 %v1175_v32, %v1171_v20  ;;  %v2293_v39 = vsel %vm5589_vm12, %v2288_v7, %v2292_v53  ;;  %v2295_v52 = vshrl.u32 %v2165_v42, 16  ;;  %v5848_v9 = vld [vmem:[#allocation2 + $0x48] sm:$0xf] }
  0x79   : > { %v5837_v50 = vld [vmem:[#allocation2 + $0x4c] sm:$0xf]  ;;  %v2298_v54 = vshll.u32 %v2165_v42, 16  ;;  %v1167_v40 = vrot.slane %v1166_v36, 4  ;;  %v4293_v24 = vcombine.low %v2283_v41, %v2293_v39  ;;  %v4418_v21 = vpack.c.bf16 %v627_v49, %v627_v49  ;;  %v885_v41 = vld [vmem:[#allocation2 + $0x54] sm:$0xf] }
  0x7a   : > { %v5839_v22 = vld [vmem:[#allocation2 + $0x50] sm:$0x1]  ;;  %v2304_v55 = vshll.u32 %v5837_v50, 16  ;;  %v2308_v56 = vshrl.u32 %v5837_v50, 16  ;;  %v1177_v47 = vrot.slane %v1176_v43, 4  ;;  %v2297_v61 = vrot.slane %v2295_v52, 4 }
  0x7b   : > { %v2300_v0 = vrot.slane %v2298_v54, 5  ;;  %v2314_v2 = vshll.u32 %v5839_v22, 16  ;;  %v1172_v3 = vsel %vm5589_vm12, %v1167_v40, %v1171_v20  ;;  %4831 = vmatprep.mubr.bf16.mxu0 %v4293_v24  ;;  %v783_v27 = vshrl.u32 %v4417_v60, 16  ;;  %v889_v43 = vld [vmem:[#allocation2 + $0x5c] sm:$0x1] }
  0x7c   : > { %v2306_v53 = vrot.slane %v2304_v55, 5  ;;  %v2310_v4 = vrot.slane %v2308_v56, 4  ;;  %v1182_v5 = vsel %vm5589_vm12, %v1177_v47, %v1181_v30  ;;  %v786_v32 = vshll.u32 %v4417_v60, 16  ;;  %v5855_v49 = vld [vmem:[#allocation2 + $0x4c] sm:$0xf] }
  0x7d   : > { %v2301_v12 = vor.u32 %v2300_v0, %v2297_v61  ;;  %v2316_v13 = vrot.slane %v2314_v2, 5  ;;  %v4222_v15 = vcombine.low %v1172_v3, %v1182_v5  ;;  %v590_v20 = vmul.f32 %v5759_v23, %v4471_v19 }
  0x7e   : > { %v2311_v17 = vor.u32 %v2310_v4, %v2306_v53  ;;  %v791_v7 = vshrl.u32 %v4418_v21, 16  ;;  %v794_v36 = vshll.u32 %v4418_v21, 16  ;;  %v591_v30 = vmul.f32 %v5759_v23, %v4472_v44 }
  0x7f   : > { %v2302_v33 = vrot.slane %v2301_v12, 4  ;;  %4704 = vmatmul.mubr.bf16.gmra.mrb[8].mxu1 %v4222_v15  ;;  %v785_v42 = vrot.slane %v783_v27, 7  ;;  %v612_v39 = vadd.f32 %v5768_v14, %v590_v20  ;;  %v1184_v52 = vshrl.u32 %v5848_v9, 16 }
  0x80   : > { %v2312_v25 = vrot.slane %v2311_v17, 4  ;;  %v793_v19 = vrot.slane %v791_v7, 7  ;;  %v613_v54 = vadd.f32 %v5768_v14, %v591_v30  ;;  %v1187_v40 = vshll.u32 %v5848_v9, 16 }
  0x81   : > { %v2307_v26 = vsel %vm5589_vm12, %v2302_v33, %v2306_v53  ;;  %v788_v24 = vor.u32 %v786_v32, %v785_v42  ;;  %v789_v55 = vrot.slane %v785_v42, 4  ;;  %v628_v56 = vmax.f32 %v612_v39, 0.0  ;;  %v5866_v53 = vld [vmem:[#allocation2 + $0x50] sm:$0x1]  ;;  %v5874_v33 = vld [vmem:[#allocation2 + $0xc] sm:$0xe] }
  0x82   : > { %v2317_v44 = vsel %vm5589_vm12, %v2312_v25, %v2316_v13  ;;  %v796_v61 = vor.u32 %v794_v36, %v793_v19  ;;  %v798_v0 = vrot.slane %v793_v19, 4  ;;  %v629_v2 = vmax.f32 %v613_v54, 0.0  ;;  %v5877_v42 = vld [vmem:[#allocation2 + $0x18] sm:$0xe]  ;;  %v896_v39 = vld [vmem:[#allocation2 + $0x68] sm:$0x1] }
  0x83   : > { %v4294_v47 = vcombine.low %v2307_v26, %v2317_v44  ;;  %v886_v3 = vsel %vm5531_vm9, %v788_v24, %v885_v41  ;;  %v4419_v4 = vpack.c.bf16 %v628_v56, %v628_v56  ;;  %v1186_v5 = vrot.slane %v1184_v52, 4  ;;  %v892_v41 = vld [vmem:[#allocation2 + $0x60] sm:$0xf]  ;;  %v5879_v19 = vld [vmem:[#allocation2 + $0x14] sm:$0x1] }
  0x84   : > { %v1189_v60 = vrot.slane %v1187_v40, 5  ;;  %v797_v12 = vsel %vm5523_vm8, %v789_v55, %v796_v61  ;;  %887 = vst [vmem:[#allocation2 + $0x54] sm:$0xf] %v886_v3  ;;  %v890_v13 = vsel %vm5441_vm2, %v798_v0, %v889_v43  ;;  %v4420_v15 = vpack.c.bf16 %v629_v2, %v629_v2 }
  0x85   : > { %4832 = vmatmul.mubr.bf16.gmra.mrb[8].mxu0 %v4294_v47  ;;  %v1193_v21 = vshll.u32 %v5855_v49, 16  ;;  %888 = vst [vmem:[#allocation2 + $0x58] sm:$0xf] %v797_v12  ;;  %891 = vst [vmem:[#allocation2 + $0x5c] sm:$0x1] %v890_v13  ;;  %v800_v17 = vshrl.u32 %v4419_v4, 16 }
  0x86   : > { %v803_v27 = vshll.u32 %v4419_v4, 16  ;;  %v1190_v32 = vor.u32 %v1189_v60, %v1186_v5  ;;  %v1197_v20 = vshrl.u32 %v5855_v49, 16  ;;  %v808_v7 = vshrl.u32 %v4420_v15, 16  ;;  %v5889_v4 = vld [vmem:[#allocation2 + $0x10] sm:$0xf] }
  0x87   : > { %v811_v36 = vshll.u32 %v4420_v15, 16  ;;  %v1195_v30 = vrot.slane %v1193_v21, 5  ;;  %v1203_v25 = vshll.u32 %v5866_v53, 16  ;;  %v802_v43 = vrot.slane %v800_v17, 7 }
  0x88   : > { %v1191_v52 = vrot.slane %v1190_v32, 4  ;;  %v1199_v26 = vrot.slane %v1197_v20, 4  ;;  %v2612_v54 = vrot.slane %v5879_v19, 5  ;;  %v810_v40 = vrot.slane %v808_v7, 7 }
  0x89   : > { %v1205_v44 = vrot.slane %v1203_v25, 5  ;;  %v805_v24 = vor.u32 %v803_v27, %v802_v43  ;;  %v806_v55 = vrot.slane %v802_v43, 4  ;;  %v4305_v61 = vrot.slane %v5874_v33, 9 }
  0x8a   : > { %v1200_v56 = vor.u32 %v1199_v26, %v1195_v30  ;;  %v813_v0 = vor.u32 %v811_v36, %v810_v40  ;;  %v815_v2 = vrot.slane %v810_v40, 4  ;;  %v1196_v3 = vsel %vm5589_vm12, %v1191_v52, %v1195_v30 }
  0x8b   : > { %v2609_v5 = vrot.slane %v5889_v4, 5  ;;  %v2168_v60 = vld [vmem:[#allocation2 + $0x54] sm:$0xf]  ;;  %v893_v12 = vsel %vm5531_vm9, %v805_v24, %v892_v41  ;;  %v4306_v21 = vrot.slane %v5877_v42, 9  ;;  %v5902_v17 = vsel %vm5882_vm15, %v5617_v29, %v2619_v31 }
  0x8c   : > { %v1201_v13 = vrot.slane %v1200_v56, 4  ;;  %v5894_v15 = vld [vmem:[#allocation2 + $0x54] sm:$0xf]  ;;  %v5904_v27 = vld [vmem:[#allocation2 + $0x58] sm:$0xf]  ;;  %v2319_v20 = vshrl.u32 %v2168_v60, 16  ;;  %v814_v36 = vsel %vm5523_vm8, %v806_v55, %v813_v0  ;;  %v897_v41 = vsel %vm5441_vm2, %v815_v2, %v896_v39 }
  0x8d   : > { %v5906_v32 = vld [vmem:[#allocation2 + $0x5c] sm:$0x1]  ;;  %v2322_v7 = vshll.u32 %v2168_v60, 16  ;;  %894 = vst [vmem:[#allocation2 + $0x60] sm:$0xf] %v893_v12  ;;  %v2328_v35 = vshll.u32 %v5904_v27, 16 }
  0x8e   : > { %v2332_v30 = vshrl.u32 %v5904_v27, 16  ;;  %v2338_v29 = vshll.u32 %v5906_v32, 16  ;;  %895 = vst [vmem:[#allocation2 + $0x64] sm:$0xf] %v814_v36  ;;  %898 = vst [vmem:[#allocation2 + $0x68] sm:$0x1] %v897_v41  ;;  %v1206_v31 = vsel %vm5589_vm12, %v1201_v13, %v1205_v44 }
  0x8f   : > { %v5917_v25 = vld [vmem:[#allocation2 + $0x58] sm:$0xf]  ;;  %v2321_v42 = vrot.slane %v2319_v20, 4  ;;  %v2324_v43 = vrot.slane %v2322_v7, 5  ;;  %v4223_v52 = vcombine.low %v1196_v3, %v1206_v31  ;;  %v5919_v26 = vld [vmem:[#allocation2 + $0x5c] sm:$0x1] }
  0x90   : > { %v1208_v39 = vshrl.u32 %v5894_v15, 16  ;;  %v2330_v40 = vrot.slane %v2328_v35, 5  ;;  %v2334_v24 = vrot.slane %v2332_v30, 4  ;;  %v2340_v55 = vrot.slane %v2338_v29, 5 }
  0x91   : > { %v1211_v56 = vshll.u32 %v5894_v15, 16  ;;  %v2325_v0 = vor.u32 %v2324_v43, %v2321_v42  ;;  %4707 = vmatprep.mubr.bf16.mxu1 %v4223_v52  ;;  %v1217_v44 = vshll.u32 %v5917_v25, 16  ;;  %v1221_v60 = vshrl.u32 %v5917_v25, 16 }
  0x92   : > { %v1210_v2 = vrot.slane %v1208_v39, 4  ;;  %v2335_v12 = vor.u32 %v2334_v24, %v2330_v40  ;;  %v1227_v13 = vshll.u32 %v5919_v26, 16  ;;  %v2611_v41 = vrot.slane %v2609_v5, 4 }
  0x93   : > { %v1213_v3 = vrot.slane %v1211_v56, 5  ;;  %v2326_v20 = vrot.slane %v2325_v0, 4  ;;  %v1219_v7 = vrot.slane %v1217_v44, 5  ;;  %v1223_v36 = vrot.slane %v1221_v60, 4 }
  0x94   : > { %v2336_v35 = vrot.slane %v2335_v12, 4  ;;  %v2171_v30 = vld [vmem:[#allocation2 + $0x60] sm:$0xf]  ;;  %v1229_v31 = vrot.slane %v1227_v13, 5  ;;  %v5933_v42 = vsel %vm5882_vm15, %v4306_v21, %v2616_v58  ;;  %v2623_v4 = vrot.slane %v5675_v18, 5 }
  0x95   : > { %v1214_v29 = vor.u32 %v1213_v3, %v1210_v2  ;;  %v2331_v43 = vsel %vm5589_vm12, %v2326_v20, %v2330_v40  ;;  %v5943_v52 = vld [vmem:[#allocation2 + $0x64] sm:$0xf]  ;;  %v5945_v39 = vld [vmem:[#allocation2 + $0x68] sm:$0x1]  ;;  %v2343_v24 = vshrl.u32 %v2171_v30, 16  ;;  %v2346_v56 = vshll.u32 %v2171_v30, 16 }
  0x96   : > { %v1224_v0 = vor.u32 %v1223_v36, %v1219_v7  ;;  %v2341_v34 = vsel %vm5589_vm12, %v2336_v35, %v2340_v55  ;;  %v2352_v58 = vshll.u32 %v5943_v52, 16  ;;  %v2356_v21 = vshrl.u32 %v5943_v52, 16 }
  0x97   : > { %v2362_v2 = vshll.u32 %v5945_v39, 16  ;;  %v4295_v44 = vcombine.low %v2331_v43, %v2341_v34  ;;  %v2345_v40 = vrot.slane %v2343_v24, 4  ;;  %v2348_v60 = vrot.slane %v2346_v56, 5  ;;  %v5251_v24 = vld [vmem:[#allocation2] sm:$0xf] }
  0x98   : > { %v1215_v12 = vrot.slane %v1214_v29, 4  ;;  %v2354_v3 = vrot.slane %v2352_v58, 5  ;;  %v2358_v13 = vrot.slane %v2356_v21, 4  ;;  %v1225_v20 = vrot.slane %v1224_v0, 4  ;;  %v5970_v56 = vld [vmem:[#allocation2 + $0x4] sm:$0xf] }
  0x99   : > { %4835 = vmatprep.mubr.bf16.mxu0 %v4295_v44  ;;  %v2349_v36 = vor.u32 %v2348_v60, %v2345_v40  ;;  %v2364_v30 = vrot.slane %v2362_v2, 5  ;;  %v4314_v35 = vcombine.low %v5933_v42, %v5902_v17  ;;  %v4233_v0 = vcombine.low %v5251_v24, %v5970_v56  ;;  %v5253_v60 = vld [vmem:[#allocation2 + $0xc] sm:$0xf] }
  0x9a   : > { %v1220_v55 = vsel %vm5589_vm12, %v1215_v12, %v1219_v7  ;;  %v2359_v43 = vor.u32 %v2358_v13, %v2354_v3  ;;  %v1230_v29 = vsel %vm5589_vm12, %v1225_v20, %v1229_v31  ;;  %v2610_v7 = vsel %vm5882_vm15, %v4305_v61, %v2609_v5  ;;  %v2577_v31 = vld [vmem:[#allocation2 + $0x24] sm:$0xe]  ;;  %v5987_v12 = vld [vmem:[#allocation2 + $0x10] sm:$0xf]  ;;  %v2579_v13 = vld [vmem:[#allocation2 + $0x3c] sm:$0xe] }
  0x9b   : > { %v2350_v34 = vrot.slane %v2349_v36, 4  ;;  %v4224_v58 = vcombine.low %v1220_v55, %v1230_v29  ;;  %v2613_v21 = vsel %vm5882_vm15, %v2611_v41, %v2612_v54  ;;  %v4307_v44 = vrot.slane %v2577_v31, 9  ;;  %v2578_v41 = vld [vmem:[#allocation2 + $0x30] sm:$0xe]  ;;  %v5255_v36 = vld [vmem:[#allocation2 + $0x18] sm:$0xf] }
  0x9c   : > { %v2360_v2 = vrot.slane %v2359_v43, 4  ;;  %v4313_v5 = vcombine.low %v2610_v7, %v2613_v21  ;;  %v2625_v40 = vrot.slane %v2623_v4, 4  ;;  %v2626_v54 = vrot.slane %v5677_v10, 5  ;;  %v2581_v21 = vld [vmem:[#allocation2 + $0x54] sm:$0xe] }
  0x9d   : > { %v2355_v33 = vsel %vm5589_vm12, %v2350_v34, %v2354_v3  ;;  %4708 = vmatmul.mubr.bf16.gmra.mrb[12].mxu1 %v4224_v58  ;;  %v2630_v18 = vrot.slane %v5719_v57, 5  ;;  %v4234_v3 = vcombine.low %v5253_v60, %v5987_v12  ;;  %v2637_v20 = vrot.slane %v5808_v46, 5  ;;  %v2580_v57 = vld [vmem:[#allocation2 + $0x48] sm:$0xe] }
  0x9e   : > { %v2365_v61 = vsel %vm5589_vm12, %v2360_v2, %v2364_v30  ;;  %4727 = vmatprep.mubr.bf16.mxu1 %v4233_v0  ;;  %v5993_v30 = vld [vmem:[#allocation2 + $0x1c] sm:$0xf]  ;;  %v2644_v55 = vrot.slane %v5837_v50, 5  ;;  %v2624_v43 = vsel %vm5882_vm15, %v4307_v44, %v2623_v4  ;;  %v2627_v29 = vsel %vm5882_vm15, %v2625_v40, %v2626_v54  ;;  %v5189_v46 = vld [vmem:[%s6558_s5 + $0x88] sm:$0xff]   ;;  %v5257_v44 = vld [vmem:[#allocation2 + $0x24] sm:$0xf] }
  0x9f   : > { %v4296_v19 = vcombine.low %v2355_v33, %v2365_v61  ;;  %v4235_v10 = vcombine.low %v5255_v36, %v5993_v30  ;;  %v4308_v7 = vrot.slane %v2578_v41, 9  ;;  %v2632_v24 = vrot.slane %v2630_v18, 4 }
  0xa0   : > { %v2633_v0 = vrot.slane %v5721_v28, 5  ;;  %v4309_v34 = vrot.slane %v2579_v13, 9  ;;  %v2640_v58 = vrot.slane %v5810_v51, 5  ;;  %v2639_v50 = vrot.slane %v2637_v20, 4  ;;  %v5185_v28 = vld [vmem:[%s6558_s5 + $0x188] sm:$0xff]  }
  0xa1   : > { %4836 = vmatmul.mubr.bf16.gmra.mrb[12].mxu0 %v4296_v19  ;;  %v4310_v31 = vrot.slane %v2580_v57, 9  ;;  %v4315_v4 = vcombine.low %v2624_v43, %v2627_v29  ;;  %v2646_v2 = vrot.slane %v2644_v55, 4  ;;  %v2647_v33 = vrot.slane %v5839_v22, 5  ;;  %v6022_v22 = vld [vmem:[#allocation2 + $0x28] sm:$0xf]  ;;  %v5193_v19 = vld [vmem:[%s6558_s5 + $0x90] sm:$0xff]  }
  0xa2   : > { %4855 = vmatprep.mubr.bf16.mxu0 %v4313_v5  ;;  %v2651_v61 = vrot.slane %v5904_v27, 5  ;;  %v6016_v51 = vsel %vm5882_vm15, %v4308_v7, %v2630_v18  ;;  %v2582_v5 = vld [vmem:[#allocation2 + $0x60] sm:$0xe]  ;;  %v4236_v27 = vcombine.low %v5257_v44, %v6022_v22  ;;  %v2638_v40 = vsel %vm5882_vm15, %v4309_v34, %v2637_v20  ;;  %v503_v29 = vld [vmem:[#allocation2 + $0x6c] sm:$0x1]  ;;  %v5191_v34 = vld [vmem:[%s6558_s5 + $0x198] sm:$0xff]  }
  0xa3   : > { %v4237_v54 = vcombine.low %v5735_v48, %v5748_v1  ;;  %v2641_v41 = vsel %vm5882_vm15, %v2639_v50, %v2640_v58  ;;  %v6039_v18 = vsel %vm5882_vm15, %v4310_v31, %v2644_v55  ;;  %v4311_v60 = vrot.slane %v2581_v21, 9  ;;  %v1617_v13 = vld [vmem:[#allocation2] sm:$0xe] }
  0xa4   : > { %v6046_v48 = vsel %vm5882_vm15, %v2646_v2, %v2647_v33  ;;  %v2653_v1 = vrot.slane %v2651_v61, 4  ;;  %v4312_v17 = vrot.slane %v2582_v5, 9  ;;  %v1646_v42 = vrot.slane %v5970_v56, 5  ;;  %v5195_v56 = vld [vmem:[%s6558_s5 + $0x98] sm:$0xff]   ;;  %v5199_v2 = vld [vmem:[%s6558_s5 + $0xa0] sm:$0xff]  }
  0xa5   : > { %4728 = vmatmul.mubr.bf16.vlgmr.msra.gmra.mrb[0].mxu1 %v4234_v3  ;;  %v2654_v3 = vrot.slane %v5906_v32, 5  ;;  %v5188_v32 = vld [vmem:[%s6558_s5 + $0x190] sm:$0xff]   ;;  %v4317_v57 = vcombine.low %v2638_v40, %v2641_v41  ;;  %v4318_v55 = vcombine.low %v6039_v18, %v6046_v48  ;;  %v4238_v43 = vcombine.low %v5805_v45, %v5819_v59  ;;  %v5194_v40 = vld [vmem:[%s6558_s5 + $0x1a0] sm:$0xff]  }
  0xa6   : > { %4744 = vmatpush3.bf16.msra.mxu1 %v5787_v62  ;;  %4731 = vmatprep.mubr.bf16.mxu1 %v4235_v10  ;;  %v2634_v62 = vsel %vm5882_vm15, %v2632_v24, %v2633_v0  ;;  %v1622_v10 = vld [vmem:[#allocation2 + $0x3c] sm:$0xe]  ;;  %v4249_v45 = vrot.slane %v1617_v13, 9  ;;  %v1648_v0 = vrot.slane %v1646_v42, 4  ;;  %v2661_v21 = vrot.slane %v5945_v39, 5  ;;  %v5201_v13 = vld [vmem:[%s6558_s5 + $0xa8] sm:$0xff]  }
  0xa7   : > { %4745 = vmatprep.subr.bf16.mxu1 %v5189_v46  ;;  %v4316_v36 = vcombine.low %v6016_v51, %v2634_v62  ;;  %v6075_v7 = vsel %vm5882_vm15, %v2653_v1, %v2654_v3  ;;  %v4239_v50 = vcombine.low %v5848_v9, %v5855_v49  ;;  %v4254_v31 = vrot.slane %v1622_v10, 9  ;;  %v1624_v51 = vld [vmem:[#allocation2 + $0x54] sm:$0xe] }
  0xa8   : > { %v4240_v33 = vcombine.low %v5894_v15, %v5917_v25  ;;  %v504_v39 = vsel %vm5441_vm2, 0, %v503_v29  ;;  %v1653_v5 = vrot.slane %v5987_v12, 5 }
  0xa9   : > { %4856 = vmatmul.mubr.bf16.vlgmr.msra.gmra.mrb[0].mxu0 %v4314_v35  ;;  %v5259_v35 = vld [vmem:[#allocation2 + $0x8] sm:$0x1]  ;;  %505 = vst [vmem:[#allocation2 + $0x6c] sm:$0x1] %v504_v39 }
  0xaa   : > { %4872 = vmatpush3.bf16.msra.mxu0 %v5730_v37  ;;  %4859 = vmatprep.mubr.bf16.mxu0 %v4315_v4  ;;  %v2658_v37 = vrot.slane %v5943_v52, 5  ;;  %v1649_v20 = vrot.slane %v5259_v35, 5  ;;  %v6067_v52 = vsel %vm5882_vm15, %v4311_v60, %v2651_v61  ;;  %v1623_v4 = vld [vmem:[#allocation2 + $0x48] sm:$0xe]  ;;  %v1681_v61 = vrot.slane %v5819_v59, 5 }
  0xab   : > { %4873 = vmatprep.subr.bf16.mxu0 %v5185_v28  ;;  %4746 = vmatpush3.bf16.msra.mxu1 %v5189_v46  ;;  %v4478_v46 = vld [vmem:[%s444_s23] sm:$0xff]   ;;  %v4319_v9 = vcombine.low %v6067_v52, %v6075_v7  ;;  %v6101_v59 = vsel %vm5882_vm15, %v4249_v45, %v1646_v42  ;;  %v958_v60 = vstv %s6071_s13  ;;  %v4255_v3 = vrot.slane %v1623_v4, 9  ;;  %v1618_v7 = vld [vmem:[#allocation2 + $0xc] sm:$0xe]  ;;  %v1619_v4 = vld [vmem:[#allocation2 + $0x18] sm:$0xe] }
  0xac   : > { %4747 = vmatprep.subr.bf16.mxu1 %v5193_v19  ;;  %v6079_v24 = vsel %vm5882_vm15, %v4312_v17, %v2658_v37  ;;  %v2660_v58 = vrot.slane %v2658_v37, 4  ;;  %v4479_v62 = vunpack.c.l.bf16 %v4478_v46  ;;  %v4480_v44 = vunpack.c.h.bf16 %v4478_v46 }
  0xad   : > { %4732 = vmatmul.mubr.bf16.gmra.mrb[4].mxu1 %v4236_v27  ;;  %v6109_v27 = vsel %vm5882_vm15, %v4254_v31, %v1681_v61  ;;  %v1688_v17 = vrot.slane %v5855_v49, 5  ;;  %v1691_v42 = vrot.slane %v5866_v53, 5  ;;  %vm6131_vm1 = vcmp.eq.s32.totalorder %v958_v60, 1  ;;  %v5206_v60 = vld [vmem:[#allocation2 + $0x18] sm:$0xff]  }
  0xae   : > { %4874 = vmatpush3.bf16.msra.mxu0 %v5185_v28  ;;  %4735 = vmatprep.mubr.bf16.mxu1 %v4237_v54  ;;  %v1684_v28 = vrot.slane %v5823_v8, 5  ;;  %v6105_v8 = vsel %vm5882_vm15, %v1648_v0, %v1649_v20  ;;  %v951_v54 = vmul.f32 %v5759_v23, %v4479_v62  ;;  %v952_v41 = vmul.f32 %v5759_v23, %v4480_v44 }
  0xaf   : > { %4875 = vmatprep.subr.bf16.mxu0 %v5188_v32  ;;  %4748 = vmatpush3.bf16.msra.mxu1 %v5193_v19  ;;  %v1683_v19 = vrot.slane %v1681_v61, 4  ;;  %v1695_v20 = vrot.slane %v5917_v25, 5  ;;  %v6137_v49 = vsel %vm5882_vm15, %v4255_v3, %v1688_v17  ;;  %v1690_v53 = vrot.slane %v1688_v17, 4  ;;  %v5208_v61 = vld [vmem:[%s6558_s5 + $0xb8] sm:$0xff]  }
  0xb0   : > { %4749 = vmatprep.subr.bf16.mxu1 %v5195_v56  ;;  %v953_v37 = vadd.f32 %v5768_v14, %v951_v54  ;;  %v954_v35 = vadd.f32 %v5768_v14, %v952_v41  ;;  %v5197_v14 = vld [vmem:[%s6558_s5 + $0x1a8] sm:$0xff]   ;;  %v2662_v29 = vsel %vm5882_vm15, %v2660_v58, %v2661_v21  ;;  %v4257_v46 = vcombine.low %v6101_v59, %v6105_v8  ;;  %v5203_v41 = vld [vmem:[%s6558_s5 + $0x1b8] sm:$0xff]  }
  0xb1   : > { %4860 = vmatmul.mubr.bf16.gmra.mrb[4].mxu0 %v4316_v36  ;;  %v6122_v1 = vsel %vm5882_vm15, %v1683_v19, %v1684_v28  ;;  %v1697_v52 = vrot.slane %v1695_v20, 4  ;;  %v1660_v45 = vrot.slane %v5993_v30, 5  ;;  %v6157_v0 = vsel %vm5882_vm15, %v1690_v53, %v1691_v42  ;;  %v989_v17 = vld [vmem:[#allocation2 + $0x6c] sm:$0xf]  ;;  %v1620_v42 = vld [vmem:[#allocation2 + $0x24] sm:$0xe] }
  0xb2   : > { %4876 = vmatpush3.bf16.msra.mxu0 %v5188_v32  ;;  %4863 = vmatprep.mubr.bf16.mxu0 %v4317_v57  ;;  %v4256_v32 = vrot.slane %v1624_v51, 9  ;;  %v4262_v23 = vcombine.low %v6109_v27, %v6122_v1  ;;  %v955_v10 = vmax.f32 %v953_v37, 0.0  ;;  %v956_v57 = vmax.f32 %v954_v35, 0.0  ;;  %v5262_v37 = vld [vmem:[#allocation2 + $0x34] sm:$0xf] }
  0xb3   : > { %4877 = vmatprep.subr.bf16.mxu0 %v5191_v34  ;;  %4750 = vmatpush3.bf16.msra.mxu1 %v5195_v56  ;;  %v1698_v56 = vrot.slane %v5919_v26, 5  ;;  %v5205_v26 = vld [vmem:[%s6558_s5 + $0xb0] sm:$0xff]   ;;  %v4263_v21 = vcombine.low %v6137_v49, %v6157_v0  ;;  %v4250_v28 = vrot.slane %v1618_v7, 9  ;;  %v1655_v39 = vrot.slane %v1653_v5, 4 }
  0xb4   : > { %4751 = vmatprep.subr.bf16.mxu1 %v5199_v2  ;;  %v961_v58 = vsel %vm6131_vm1, 0.0, %v956_v57  ;;  %v4320_v59 = vcombine.low %v6079_v24, %v2662_v29  ;;  %v4251_v8 = vrot.slane %v1619_v4, 9  ;;  %v1662_v19 = vrot.slane %v1660_v45, 4  ;;  %v5211_v24 = vld [vmem:[%s6558_s5 + $0xc0] sm:$0xff]   ;;  %v5229_v27 = vld [vmem:[%s6558_s5 + $0xf0] sm:$0xff]  }
  0xb5   : > { %4736 = vmatmul.mubr.bf16.gmra.mrb[8].mxu1 %v4238_v43  ;;  %v6145_v43 = vsel %vm5882_vm15, %v4256_v32, %v1695_v20  ;;  %v6170_v30 = vsel %vm5882_vm15, %v1697_v52, %v1698_v56  ;;  %v4424_v48 = vpack.c.bf16 %v961_v58, %v961_v58  ;;  %v1654_v15 = vsel %vm5882_vm15, %v4250_v28, %v1653_v5  ;;  %v1621_v32 = vld [vmem:[#allocation2 + $0x30] sm:$0xe]  ;;  %v5207_v5 = vld [vmem:[%s6558_s5 + $0x1c0] sm:$0xff]   ;;  %v3114_v52 = vld [vmem:[#allocation2 + $0x18] sm:$0xf] }
  0xb6   : > { %4878 = vmatpush3.bf16.msra.mxu0 %v5191_v34  ;;  %4739 = vmatprep.mubr.bf16.mxu1 %v4239_v50  ;;  %v960_v34 = vsel %vm6131_vm1, 0.0, %v955_v10  ;;  %v5260_v50 = vld [vmem:[#allocation2 + $0x14] sm:$0x1]  ;;  %v1674_v35 = vrot.slane %v5262_v37, 5  ;;  %v1661_v53 = vsel %vm5882_vm15, %v4251_v8, %v1660_v45  ;;  %v4252_v29 = vrot.slane %v1620_v42, 9  ;;  %v5215_v42 = vld [vmem:[#allocation2 + $0x3c] sm:$0xff]  }
  0xb7   : > { %4879 = vmatprep.subr.bf16.mxu0 %v5194_v40  ;;  %4752 = vmatpush3.bf16.msra.mxu1 %v5199_v2  ;;  %v1656_v31 = vrot.slane %v5260_v50, 5  ;;  %v4423_v18 = vpack.c.bf16 %v960_v34, %v960_v34  ;;  %v5200_v2 = vld [vmem:[%s6558_s5 + $0x1b0] sm:$0xff]   ;;  %v977_v62 = vshrl.u32 %v4424_v48, 16  ;;  %v980_v44 = vshll.u32 %v4424_v48, 16  ;;  %v5264_v50 = vld [vmem:[#allocation2 + $0x38] sm:$0x1] }
  0xb8   : > { %4753 = vmatprep.subr.bf16.mxu1 %v5201_v13  ;;  %v4253_v45 = vrot.slane %v1621_v32, 9  ;;  %v1676_v58 = vrot.slane %v1674_v35, 4  ;;  %v3139_v4 = vshrl.u32 %v3114_v52, 16  ;;  %v6216_v48 = vld [vmem:[#allocation2 + $0x1c] sm:$0xf]  ;;  %v5218_v37 = vld [vmem:[#allocation2 + $0x48] sm:$0xff]  }
  0xb9   : > { %4864 = vmatmul.mubr.bf16.gmra.mrb[8].mxu0 %v4318_v55  ;;  %v4264_v55 = vcombine.low %v6145_v43, %v6170_v30  ;;  %v969_v51 = vshrl.u32 %v4423_v18, 16  ;;  %v1657_v25 = vsel %vm5882_vm15, %v1655_v39, %v1656_v31  ;;  %v1677_v31 = vrot.slane %v5264_v50, 5  ;;  %v3117_v39 = vld [vmem:[#allocation2 + $0x24] sm:$0xf]  ;;  %v5216_v32 = vld [vmem:[%s6558_s5 + $0x1d8] sm:$0xff]   ;;  %v5225_v0 = vld [vmem:[%s6558_s5 + $0x1f0] sm:$0xff]  }
  0xba   : > { %4880 = vmatpush3.bf16.msra.mxu0 %v5194_v40  ;;  %4867 = vmatprep.mubr.bf16.mxu0 %v4319_v9  ;;  %v972_v9 = vshll.u32 %v4423_v18, 16  ;;  %v5261_v40 = vld [vmem:[#allocation2 + $0x20] sm:$0x1]  ;;  %v4258_v56 = vcombine.low %v1654_v15, %v1657_v25  ;;  %v3142_v18 = vshll.u32 %v3114_v52, 16 }
  0xbb   : > { %4881 = vmatprep.subr.bf16.mxu0 %v5197_v14  ;;  %4754 = vmatpush3.bf16.msra.mxu1 %v5201_v13  ;;  %v1663_v54 = vrot.slane %v5261_v40, 5  ;;  %v971_v3 = vrot.slane %v969_v51, 7  ;;  %v6189_v13 = vrot.slane %v977_v62, 7  ;;  %v5217_v51 = vld [vmem:[%s6558_s5 + $0xd0] sm:$0xff]   ;;  %v1678_v62 = vsel %vm5882_vm15, %v1676_v58, %v1677_v31  ;;  %v5219_v50 = vld [vmem:[%s6558_s5 + $0x1e0] sm:$0xff]   ;;  %v5226_v31 = vld [vmem:[%s6558_s5 + $0xe8] sm:$0xff]  }
  0xbc   : > { %4755 = vmatprep.subr.bf16.mxu1 %v5205_v26  ;;  %v3144_v8 = vrot.slane %v3142_v18, 5  ;;  %v3152_v40 = vshrl.u32 %v6216_v48, 16 }
  0xbd   : > { %4740 = vmatmul.mubr.bf16.gmra.mrb[12].mxu1 %v4240_v33  ;;  %v1667_v33 = vrot.slane %v6022_v22, 5  ;;  %v974_v20 = vor.u32 %v972_v9, %v971_v3  ;;  %v975_v12 = vrot.slane %v971_v3, 4  ;;  %v982_v36 = vor.u32 %v980_v44, %v6189_v13  ;;  %v6232_v44 = vld [vmem:[#allocation2 + $0x28] sm:$0xf]  ;;  %v5213_v3 = vld [vmem:[%s6558_s5 + $0x1d0] sm:$0xff]  }
  0xbe   : > { %4882 = vmatpush3.bf16.msra.mxu0 %v5197_v14  ;;  %4759 = vmatprep.mubr.bf16.mxu1 %v4257_v46  ;;  %v1664_v22 = vsel %vm5882_vm15, %v1662_v19, %v1663_v54  ;;  %v5214_v14 = vld [vmem:[%s6558_s5 + $0xc8] sm:$0xff]   ;;  %v1675_v9 = vsel %vm5882_vm15, %v4253_v45, %v1674_v35  ;;  %v3148_v19 = vshll.u32 %v6216_v48, 16  ;;  %v3172_v15 = vshll.u32 %v6232_v44, 16 }
  0xbf   : > { %4883 = vmatprep.subr.bf16.mxu0 %v5200_v2  ;;  %4756 = vmatpush3.bf16.msra.mxu1 %v5205_v26  ;;  %v983_v10 = vsel %vm5523_vm8, %v975_v12, %v982_v36  ;;  %v990_v57 = vsel %vm5531_vm9, %v974_v20, %v989_v17  ;;  %v1669_v26 = vrot.slane %v1667_v33, 4  ;;  %v5263_v46 = vld [vmem:[#allocation2 + $0x2c] sm:$0x1]  ;;  %v4259_v34 = vcombine.low %v1661_v53, %v1664_v22  ;;  %v3120_v17 = vld [vmem:[#allocation2 + $0x30] sm:$0xf] }
  0xc0   : > { %4757 = vmatprep.subr.bf16.mxu1 %v5208_v61  ;;  %v1670_v7 = vrot.slane %v5263_v46, 5  ;;  %991 = vst [vmem:[#allocation2 + $0x6c] sm:$0xf] %v990_v57  ;;  %992 = vst [vmem:[#allocation2 + $0x70] sm:$0xf] %v983_v10  ;;  %v3176_v25 = vshrl.u32 %v6232_v44, 16 }
  0xc1   : > { %4868 = vmatmul.mubr.bf16.gmra.mrb[12].mxu0 %v4320_v59  ;;  %v3141_v59 = vrot.slane %v3139_v4, 4  ;;  %v6247_v20 = vrot.slane %v3148_v19, 5  ;;  %v3154_v12 = vrot.slane %v3152_v40, 4  ;;  %v6249_v36 = vld [vmem:[#allocation2 + $0x20] sm:$0x1]  ;;  %v3187_v57 = vshrl.u32 %v3120_v17, 16 }
  0xc2   : > { %4884 = vmatpush3.bf16.msra.mxu0 %v5200_v2  ;;  %4887 = vmatprep.mubr.bf16.mxu0 %v5206_v60  ;;  %v5210_v2 = vld [vmem:[%s6558_s5 + $0x1c8] sm:$0xff]   ;;  %v1671_v28 = vsel %vm5882_vm15, %v1669_v26, %v1670_v7  ;;  %v3166_v60 = vshll.u32 %v3117_v39, 16  ;;  %v6255_v10 = vld [vmem:[#allocation2 + $0x34] sm:$0xf]  ;;  %v3190_v52 = vshll.u32 %v3120_v17, 16  ;;  %v3158_v7 = vshll.u32 %v6249_v36, 16 }
  0xc3   : > { %4885 = vmatprep.subr.bf16.mxu0 %v5203_v41  ;;  %4758 = vmatpush3.bf16.msra.mxu1 %v5208_v61  ;;  %v1668_v61 = vsel %vm5882_vm15, %v4252_v29, %v1667_v33  ;;  %v4261_v33 = vcombine.low %v1675_v9, %v1678_v62  ;;  %v3145_v35 = vor.u32 %v3144_v8, %v3141_v59  ;;  %v5223_v29 = vld [vmem:[%s6558_s5 + $0xe0] sm:$0xff]   ;;  %v3200_v58 = vshrl.u32 %v6255_v10, 16  ;;  %v3126_v59 = vld [vmem:[#allocation2 + $0x48] sm:$0xf]  ;;  %v6280_v8 = vld [vmem:[#allocation2 + $0x4c] sm:$0xf] }
  0xc4   : > { %4775 = vmatprep.subr.bf16.mxu1 %v5211_v24  ;;  %v4260_v54 = vcombine.low %v1668_v61, %v1671_v28  ;;  %v3168_v22 = vrot.slane %v3166_v60, 5  ;;  %v3155_v46 = vor.u32 %v3154_v12, %v6247_v20  ;;  %v3189_v18 = vrot.slane %v3187_v57, 4  ;;  %v5221_v61 = vld [vmem:[#allocation2 + $0x54] sm:$0xff]   ;;  %v5224_v28 = vld [vmem:[#allocation2 + $0x60] sm:$0xff]  }
  0xc5   : > { %v6260_v26 = vrot.slane %v3145_v35, 4  ;;  %v3160_v62 = vrot.slane %v3158_v7, 5  ;;  %v3202_v40 = vrot.slane %v3200_v58, 4  ;;  %v535_v60 = vld [vmem:[#allocation2 + $0x74] sm:$0x1]  ;;  %v3244_v35 = vshll.u32 %v6280_v8, 16 }
  0xc6   : > { %4886 = vmatpush3.bf16.msra.mxu0 %v5203_v41  ;;  %4760 = vmatmul.mubr.bf16.vlgmr.msra.gmra.mrb[0].mxu1 %v4258_v56  ;;  %v3163_v41 = vshrl.u32 %v3117_v39, 16  ;;  %v6253_v56 = vrot.slane %v3172_v15, 5  ;;  %v6274_v39 = vld [vmem:[#allocation2 + $0x40] sm:$0xf]  ;;  %v3156_v9 = vrot.slane %v3155_v46, 4  ;;  %v536_v49 = vsel %vm5454_vm4, 0, %v535_v60 }
  0xc7   : > { %4903 = vmatprep.subr.bf16.mxu0 %v5207_v5  ;;  %4776 = vmatpush3.bf16.msra.mxu1 %v5211_v24  ;;  %v5220_v24 = vld [vmem:[%s6558_s5 + $0xd8] sm:$0xff]   ;;  %v3220_v1 = vshll.u32 %v6274_v39, 16  ;;  %537 = vst [vmem:[#allocation2 + $0x74] sm:$0x1] %v536_v49  ;;  %v5236_v49 = vld [vmem:[#allocation2 + $0x24] sm:$0xff]  }
  0xc8   : > { %4777 = vmatprep.subr.bf16.mxu1 %v5214_v14  ;;  %4763 = vmatprep.mubr.bf16.mxu1 %v4259_v34  ;;  %v3165_v53 = vrot.slane %v3163_v41, 4  ;;  %v3196_v34 = vshll.u32 %v6255_v10, 16 }
  0xc9   : > { %4888 = vmatmul.mubr.bf16.vlgmr.msra.gmra.mrb[0].mxu0 %v5209_v63  ;;  %v6323_v46 = vrot.slane %v3220_v1, 5 }
  0xca   : > { %4904 = vmatpush3.bf16.msra.mxu0 %v5207_v5  ;;  %4891 = vmatprep.mubr.bf16.mxu0 %v5212_v6  ;;  %v6251_v5 = vld [vmem:[#allocation2 + $0x2c] sm:$0x1]  ;;  %v3169_v63 = vor.u32 %v3168_v22, %v3165_v53  ;;  %v3192_v6 = vrot.slane %v3190_v52, 5  ;;  %v6285_v19 = vrot.slane %v3196_v34, 5 }
  0xcb   : > { %4905 = vmatprep.subr.bf16.mxu0 %v5210_v2  ;;  %4778 = vmatpush3.bf16.msra.mxu1 %v5214_v14  ;;  %v3178_v14 = vrot.slane %v3176_v25, 4  ;;  %v3182_v45 = vshll.u32 %v6251_v5, 16  ;;  %v5232_v52 = vld [vmem:[#allocation2 + $0xc] sm:$0xff]  }
  0xcc   : > { %4779 = vmatprep.subr.bf16.mxu1 %v5217_v51  ;;  %v3170_v15 = vrot.slane %v3169_v63, 4  ;;  %v3193_v17 = vor.u32 %v3192_v6, %v3189_v18  ;;  %v6328_v63 = vrot.slane %v3244_v35, 5  ;;  %v3129_v18 = vld [vmem:[#allocation2 + $0x54] sm:$0xf] }
  0xcd   : > { %v3179_v4 = vor.u32 %v3178_v14, %v6253_v56  ;;  %v3262_v60 = vshll.u32 %v3129_v18, 16 }
  0xce   : > { %4906 = vmatpush3.bf16.msra.mxu0 %v5210_v2  ;;  %4764 = vmatmul.mubr.bf16.gmra.mrb[4].mxu1 %v4260_v54  ;;  %v3123_v2 = vld [vmem:[#allocation2 + $0x3c] sm:$0xf]  ;;  %v3175_v14 = vsel %vm5589_vm12, %v3170_v15, %v6253_v56 }
  0xcf   : > { %4907 = vmatprep.subr.bf16.mxu0 %v5213_v3  ;;  %4780 = vmatpush3.bf16.msra.mxu1 %v5217_v51  ;;  %v3151_v51 = vsel %vm5589_vm12, %v6260_v26, %v6247_v20  ;;  %v3211_v54 = vshrl.u32 %v3123_v2, 16  ;;  %v3214_v41 = vshll.u32 %v3123_v2, 16  ;;  %v3180_v25 = vrot.slane %v3179_v4, 4  ;;  %v6321_v26 = vld [vmem:[#allocation2 + $0x44] sm:$0x1] }
  0xd0   : > { %4781 = vmatprep.subr.bf16.mxu1 %v5220_v24  ;;  %4767 = vmatprep.mubr.bf16.mxu1 %v4261_v33  ;;  %v6290_v33 = vld [vmem:[#allocation2 + $0x38] sm:$0x1]  ;;  %v3248_v20 = vshrl.u32 %v6280_v8, 16  ;;  %v3264_v11 = vrot.slane %v3262_v60, 5  ;;  %v5240_v60 = vld [vmem:[#allocation2 + $0x3c] sm:$0xff]  }
  0xd1   : > { %4892 = vmatmul.mubr.bf16.gmra.mrb[4].mxu0 %v5215_v42  ;;  %v3235_v42 = vshrl.u32 %v3126_v59, 16  ;;  %v3206_v12 = vshll.u32 %v6290_v33, 16  ;;  %v3213_v53 = vrot.slane %v3211_v54, 4  ;;  %v3216_v22 = vrot.slane %v3214_v41, 5  ;;  %v6345_v54 = vld [vmem:[#allocation2 + $0x64] sm:$0xf] }
  0xd2   : > { %4908 = vmatpush3.bf16.msra.mxu0 %v5213_v3  ;;  %4895 = vmatprep.mubr.bf16.mxu0 %v5218_v37  ;;  %v5222_v3 = vld [vmem:[%s6558_s5 + $0x1e8] sm:$0xff]   ;;  %v3161_v37 = vsel %vm5589_vm12, %v3156_v9, %v3160_v62  ;;  %v3250_v4 = vrot.slane %v3248_v20, 4  ;;  %v6334_v9 = vld [vmem:[#allocation2 + $0x58] sm:$0xf]  ;;  %v3296_v35 = vshrl.u32 %v6345_v54, 16 }
  0xd3   : > { %4909 = vmatprep.subr.bf16.mxu0 %v5216_v32  ;;  %4782 = vmatpush3.bf16.msra.mxu1 %v5220_v24  ;;  %v3184_v24 = vrot.slane %v3182_v45, 5  ;;  %v6325_v45 = vld [vmem:[#allocation2 + $0x50] sm:$0x1]  ;;  %v3237_v34 = vrot.slane %v3235_v42, 4  ;;  %v4345_v56 = vcombine.low %v3151_v51, %v3161_v37  ;;  %v3208_v2 = vrot.slane %v3206_v12, 5 }
  0xd4   : > { %4783 = vmatprep.subr.bf16.mxu1 %v5223_v29  ;;  %v3254_v62 = vshll.u32 %v6325_v45, 16  ;;  %v3251_v41 = vor.u32 %v3250_v4, %v6328_v63  ;;  %v3272_v15 = vshrl.u32 %v6334_v9, 16  ;;  %v3292_v37 = vshll.u32 %v6345_v54, 16 }
  0xd5   : > { %v3185_v57 = vsel %vm5589_vm12, %v3180_v25, %v3184_v24  ;;  %v5230_v25 = vld [vmem:[%s6558_s5 + $0x200] sm:$0xff]   ;;  %v5234_v24 = vld [vmem:[#allocation2 + $0x18] sm:$0xff]  }
  0xd6   : > { %4910 = vmatpush3.bf16.msra.mxu0 %v5216_v32  ;;  %4768 = vmatmul.mubr.bf16.gmra.mrb[8].mxu1 %v4262_v23  ;;  %v3224_v23 = vshrl.u32 %v6274_v39, 16  ;;  %v3238_v32 = vshll.u32 %v3126_v59, 16  ;;  %v4346_v51 = vcombine.low %v3175_v14, %v3185_v57  ;;  %v3259_v59 = vshrl.u32 %v3129_v18, 16  ;;  %v5233_v57 = vld [vmem:[%s6558_s5 + $0x208] sm:$0xff]  }
  0xd7   : > { %4911 = vmatprep.subr.bf16.mxu0 %v5219_v50  ;;  %4784 = vmatpush3.bf16.msra.mxu1 %v5223_v29  ;;  %v6319_v29 = vrot.slane %v3193_v17, 4 }
  0xd8   : > { %4785 = vmatprep.subr.bf16.mxu1 %v5226_v31  ;;  %4771 = vmatprep.mubr.bf16.mxu1 %v4263_v21  ;;  %v3203_v21 = vor.u32 %v3202_v40, %v6285_v19  ;;  %v3226_v7 = vrot.slane %v3224_v23, 4  ;;  %v3240_v58 = vrot.slane %v3238_v32, 5  ;;  %v3132_v40 = vld [vmem:[#allocation2 + $0x60] sm:$0xf]  ;;  %v3261_v12 = vrot.slane %v3259_v59, 4 }
  0xd9   : > { %4896 = vmatmul.mubr.bf16.gmra.mrb[8].mxu0 %v5221_v61  ;;  %v3217_v61 = vor.u32 %v3216_v22, %v3213_v53  ;;  %v3199_v43 = vsel %vm5589_vm12, %v6319_v29, %v6285_v19  ;;  %v993_v19 = vld [vmem:[#allocation2 + $0x74] sm:$0x1]  ;;  %v3283_v42 = vshrl.u32 %v3132_v40, 16  ;;  %v3286_v32 = vshll.u32 %v3132_v40, 16  ;;  %v6359_v22 = vld [vmem:[#allocation2 + $0x5c] sm:$0x1] }
  0xda   : > { %4912 = vmatpush3.bf16.msra.mxu0 %v5219_v50  ;;  %4899 = vmatprep.mubr.bf16.mxu0 %v5224_v28  ;;  %v984_v50 = vrot.slane %v6189_v13, 4  ;;  %v3204_v6 = vrot.slane %v3203_v21, 4  ;;  %v3230_v28 = vshll.u32 %v6321_v26, 16  ;;  %v5228_v13 = vld [vmem:[%s6558_s5 + $0x1f8] sm:$0xff]   ;;  %v3227_v30 = vor.u32 %v3226_v7, %v6323_v46  ;;  %v3135_v29 = vld [vmem:[#allocation2 + $0x6c] sm:$0xf] }
  0xdb   : > { %4913 = vmatprep.subr.bf16.mxu0 %v5222_v3  ;;  %4786 = vmatpush3.bf16.msra.mxu1 %v5226_v31  ;;  %v5227_v31 = vld [vmem:[#allocation2 + $0x6c] sm:$0xff]   ;;  %v3256_v21 = vrot.slane %v3254_v62, 5  ;;  %v3252_v53 = vrot.slane %v3251_v41, 4  ;;  %v3285_v7 = vrot.slane %v3283_v42, 4  ;;  %v3278_v18 = vshll.u32 %v6359_v22, 16 }
  0xdc   : > { %4787 = vmatprep.subr.bf16.mxu1 %v5229_v27  ;;  %v3209_v17 = vsel %vm5589_vm12, %v3204_v6, %v3208_v2  ;;  %v3232_v1 = vrot.slane %v3230_v28, 5  ;;  %v994_v23 = vsel %vm5441_vm2, %v984_v50, %v993_v19  ;;  %v3228_v20 = vrot.slane %v3227_v30, 4  ;;  %v6376_v6 = vld [vmem:[#allocation2 + $0x68] sm:$0x1] }
  0xdd   : > { %995 = vst [vmem:[#allocation2 + $0x74] sm:$0x1] %v994_v23  ;;  %v3298_v50 = vrot.slane %v3296_v35, 4  ;;  %v3265_v28 = vor.u32 %v3264_v11, %v3261_v12  ;;  %v3307_v30 = vshrl.u32 %v3135_v29, 16  ;;  %v3302_v40 = vshll.u32 %v6376_v6, 16  ;;  %v5242_v12 = vld [vmem:[#allocation2 + $0x48] sm:$0xff]  }
  0xde   : > { %4914 = vmatpush3.bf16.msra.mxu0 %v5222_v3  ;;  %4772 = vmatmul.mubr.bf16.gmra.mrb[12].mxu1 %v4264_v55  ;;  %v3241_v55 = vor.u32 %v3240_v58, %v3237_v34  ;;  %v3268_v3 = vshll.u32 %v6334_v9, 16  ;;  %v3288_v34 = vrot.slane %v3286_v32, 5  ;;  %v6366_v58 = vrot.slane %v3292_v37, 5 }
  0xdf   : > { %4915 = vmatprep.subr.bf16.mxu0 %v5225_v0  ;;  %4788 = vmatpush3.bf16.msra.mxu1 %v5229_v27  ;;  %v3218_v27 = vrot.slane %v3217_v61, 4  ;;  %v3233_v4 = vsel %vm5589_vm12, %v3228_v20, %v3232_v1  ;;  %v3257_v61 = vsel %vm5589_vm12, %v3252_v53, %v3256_v21  ;;  %v3304_v37 = vrot.slane %v3302_v40, 5  ;;  %v3540_v40 = vld [vmem:[#allocation2 + $0x24] sm:$0xe] }
  0xe0   : > { %4789 = vmatprep.subr.bf16.mxu1 %v5231_v16  ;;  %4791 = vmatprep.mubr.bf16.mxu1 %v5232_v52  ;;  %v6361_v14 = vrot.slane %v3268_v3, 5  ;;  %v4347_v52 = vcombine.low %v3199_v43, %v3209_v17  ;;  %v5238_v43 = vld [vmem:[#allocation2 + $0x30] sm:$0xff]   ;;  %v3299_v59 = vor.u32 %v3298_v50, %v6366_v58  ;;  %v3309_v17 = vrot.slane %v3307_v30, 4 }
  0xe1   : > { %4900 = vmatmul.mubr.bf16.gmra.mrb[12].mxu0 %v5227_v31  ;;  %v6368_v31 = vld [vmem:[#allocation2 + $0x70] sm:$0xf]  ;;  %v3615_v30 = vrot.slane %v6345_v54, 5 }
  0xe2   : > { %4916 = vmatpush3.bf16.msra.mxu0 %v5225_v0  ;;  %4919 = vmatprep.mubr.bf16.mxu0 %v4345_v56  ;;  %v3242_v0 = vrot.slane %v3241_v55, 4  ;;  %v3223_v56 = vsel %vm5589_vm12, %v3218_v27, %v6323_v46  ;;  %v3310_v55 = vshll.u32 %v3135_v29, 16  ;;  %v3320_v62 = vshrl.u32 %v6368_v31, 16  ;;  %v5244_v29 = vld [vmem:[#allocation2 + $0x54] sm:$0xff]  }
  0xe3   : > { %4917 = vmatprep.subr.bf16.mxu0 %v5228_v13  ;;  %4790 = vmatpush3.bf16.msra.mxu1 %v5231_v16  ;;  %v3274_v16 = vrot.slane %v3272_v15, 4  ;;  %v4348_v41 = vcombine.low %v3223_v56, %v3233_v4  ;;  %v3266_v15 = vrot.slane %v3265_v28, 4  ;;  %v3300_v32 = vrot.slane %v3299_v59, 4  ;;  %v5246_v59 = vld [vmem:[#allocation2 + $0x60] sm:$0xff]  }
  0xe4   : > { %4967 = vmatprep.subr.bf16.mxu1 %v5230_v25  ;;  %v3247_v2 = vsel %vm5589_vm12, %v3242_v0, %v6328_v63  ;;  %v3289_v63 = vor.u32 %v3288_v34, %v3285_v7  ;;  %v3312_v27 = vrot.slane %v3310_v55, 5  ;;  %v3322_v23 = vrot.slane %v3320_v62, 4  ;;  %v6396_v35 = vld [vmem:[#allocation2 + $0x74] sm:$0x1]  ;;  %v5239_v0 = vld [vmem:[%s6558_s5 + $0x220] sm:$0xff]  }
  0xe5   : > { %v3275_v46 = vor.u32 %v3274_v16, %v6361_v14  ;;  %v4349_v3 = vcombine.low %v3247_v2, %v3257_v61  ;;  %v3271_v20 = vsel %vm5589_vm12, %v3266_v15, %v6361_v14  ;;  %v3326_v16 = vshll.u32 %v6396_v35, 16  ;;  %v3539_v7 = vld [vmem:[#allocation2 + $0x18] sm:$0xe] }
  0xe6   : > { %4918 = vmatpush3.bf16.msra.mxu0 %v5228_v13  ;;  %4792 = vmatmul.mubr.bf16.vlgmr.msra.gmra.mrb[0].mxu1 %v5234_v24  ;;  %v5235_v13 = vld [vmem:[%s6558_s5 + $0x210] sm:$0xff]   ;;  %v5237_v24 = vld [vmem:[%s6558_s5 + $0x218] sm:$0xff]   ;;  %v3290_v42 = vrot.slane %v3289_v63, 4  ;;  %v3313_v53 = vor.u32 %v3312_v27, %v3309_v17  ;;  %v3305_v14 = vsel %vm5589_vm12, %v3300_v32, %v3304_v37  ;;  %v3604_v4 = vrot.slane %v6325_v45, 5 }
  0xe7   : > { %4935 = vmatprep.subr.bf16.mxu0 %v5230_v25  ;;  %4975 = vmatpush3.bf16.msra.mxu1 %v5230_v25  ;;  %v3276_v19 = vrot.slane %v3275_v46, 4  ;;  %v3328_v28 = vrot.slane %v3326_v16, 5  ;;  %v4361_v46 = vrot.slane %v3539_v7, 9  ;;  %v3544_v45 = vld [vmem:[#allocation2 + $0x54] sm:$0xe]  ;;  %v3580_v55 = vrot.slane %v6232_v44, 5 }
  0xe8   : > { %4968 = vmatprep.subr.bf16.mxu1 %v5233_v57  ;;  %4795 = vmatprep.mubr.bf16.mxu1 %v5236_v49  ;;  %v3601_v49 = vrot.slane %v6280_v8, 5  ;;  %v3295_v8 = vsel %vm5589_vm12, %v3290_v42, %v6366_v58  ;;  %v3314_v2 = vrot.slane %v3313_v53, 4  ;;  %v3611_v63 = vrot.slane %v6359_v22, 5  ;;  %v5245_v42 = vld [vmem:[%s6558_s5 + $0x238] sm:$0xff]   ;;  %v3546_v53 = vld [vmem:[#allocation2 + $0x6c] sm:$0xe] }
  0xe9   : > { %4920 = vmatmul.mubr.bf16.vlgmr.msra.gmra.mrb[0].mxu0 %v4346_v51  ;;  %v3316_v51 = vshll.u32 %v6368_v31, 16  ;;  %v4351_v58 = vcombine.low %v3295_v8, %v3305_v14  ;;  %v4366_v15 = vrot.slane %v3544_v45, 9  ;;  %v3617_v38 = vrot.slane %v3615_v30, 4  ;;  %v3542_v14 = vld [vmem:[#allocation2 + $0x3c] sm:$0xe] }
  0xea   : > { %4936 = vmatpush3.bf16.msra.mxu0 %v5230_v25  ;;  %4923 = vmatprep.mubr.bf16.mxu0 %v4347_v52  ;;  %v3280_v25 = vrot.slane %v3278_v18, 5  ;;  %v3573_v52 = vrot.slane %v6216_v48, 5  ;;  %v3603_v56 = vrot.slane %v3601_v49, 4  ;;  %v5241_v18 = vld [vmem:[%s6558_s5 + $0x228] sm:$0xff]   ;;  %v3608_v48 = vrot.slane %v6334_v9, 5 }
  0xeb   : > { %4937 = vmatprep.subr.bf16.mxu0 %v5233_v57  ;;  %4976 = vmatpush3.bf16.msra.mxu1 %v5233_v57  ;;  %v6394_v1 = vrot.slane %v3316_v51, 5  ;;  %v3545_v9 = vld [vmem:[#allocation2 + $0x60] sm:$0xe]  ;;  %v3618_v17 = vrot.slane %v6376_v6, 5  ;;  %v3594_v8 = vrot.slane %v6274_v39, 5 }
  0xec   : > { %4969 = vmatprep.subr.bf16.mxu1 %v5235_v13  ;;  %v3281_v21 = vsel %vm5589_vm12, %v3276_v19, %v3280_v25  ;;  %v3605_v62 = vsel %vm5882_vm15, %v3603_v56, %v3604_v4  ;;  %v3574_v22 = vsel %vm5882_vm15, %v4361_v46, %v3573_v52  ;;  %v3541_v19 = vld [vmem:[#allocation2 + $0x30] sm:$0xe]  ;;  %v3609_v6 = vsel %vm5882_vm15, %v4366_v15, %v3608_v48 }
  0xed   : > { %v3323_v11 = vor.u32 %v3322_v23, %v6394_v1  ;;  %v4350_v34 = vcombine.low %v3271_v20, %v3281_v21  ;;  %v3319_v54 = vsel %vm5589_vm12, %v3314_v2, %v6394_v1  ;;  %v4362_v1 = vrot.slane %v3540_v40, 9 }
  0xee   : > { %4938 = vmatpush3.bf16.msra.mxu0 %v5233_v57  ;;  %4796 = vmatmul.mubr.bf16.gmra.mrb[4].mxu1 %v5238_v43  ;;  %v3543_v57 = vld [vmem:[#allocation2 + $0x48] sm:$0xe]  ;;  %v3576_v43 = vrot.slane %v6249_v36, 5  ;;  %v5243_v36 = vld [vmem:[%s6558_s5 + $0x230] sm:$0xff]   ;;  %v3583_v23 = vrot.slane %v6251_v5, 5  ;;  %v4363_v37 = vrot.slane %v3541_v19, 9 }
  0xef   : > { %4939 = vmatprep.subr.bf16.mxu0 %v5235_v13  ;;  %4977 = vmatpush3.bf16.msra.mxu1 %v5235_v13  ;;  %v4365_v50 = vrot.slane %v3543_v57, 9  ;;  %v3324_v61 = vrot.slane %v3323_v11, 4  ;;  %v3622_v5 = vrot.slane %v6368_v31, 5  ;;  %v4364_v4 = vrot.slane %v3542_v14, 9 }
  0xf0   : > { %4970 = vmatprep.subr.bf16.mxu1 %v5237_v24  ;;  %4799 = vmatprep.mubr.bf16.mxu1 %v5240_v60  ;;  %v3610_v60 = vrot.slane %v3608_v48, 4 }
  0xf1   : > { %4924 = vmatmul.mubr.bf16.gmra.mrb[4].mxu0 %v4348_v41  ;;  %v3602_v51 = vsel %vm5882_vm15, %v4365_v50, %v3601_v49  ;;  %v3329_v44 = vsel %vm5589_vm12, %v3324_v61, %v3328_v28  ;;  %v3587_v41 = vrot.slane %v6255_v10, 5  ;;  %v3582_v10 = vrot.slane %v3580_v55, 4 }
  0xf2   : > { %4940 = vmatpush3.bf16.msra.mxu0 %v5235_v13  ;;  %4927 = vmatprep.mubr.bf16.mxu0 %v4349_v3  ;;  %v3575_v13 = vrot.slane %v3573_v52, 4  ;;  %v4373_v25 = vcombine.low %v3602_v51, %v3605_v62  ;;  %v4352_v27 = vcombine.low %v3319_v54, %v3329_v44  ;;  %v3590_v49 = vrot.slane %v6290_v33, 5 }
  0xf3   : > { %4941 = vmatprep.subr.bf16.mxu0 %v5237_v24  ;;  %4978 = vmatpush3.bf16.msra.mxu1 %v5237_v24  ;;  %v3589_v20 = vrot.slane %v3587_v41, 4  ;;  %v3581_v33 = vsel %vm5882_vm15, %v4362_v1, %v3580_v55  ;;  %v3584_v11 = vsel %vm5882_vm15, %v3582_v10, %v3583_v23  ;;  %v3588_v31 = vsel %vm5882_vm15, %v4363_v37, %v3587_v41 }
  0xf4   : > { %4971 = vmatprep.subr.bf16.mxu1 %v5239_v0  ;;  %v3577_v3 = vsel %vm5882_vm15, %v3575_v13, %v3576_v43  ;;  %v3624_v7 = vrot.slane %v3622_v5, 4  ;;  %v4370_v50 = vcombine.low %v3581_v33, %v3584_v11 }
  0xf5   : > { %v4369_v32 = vcombine.low %v3574_v22, %v3577_v3  ;;  %v3591_v57 = vsel %vm5882_vm15, %v3589_v20, %v3590_v49 }
  0xf6   : > { %4942 = vmatpush3.bf16.msra.mxu0 %v5237_v24  ;;  %4800 = vmatmul.mubr.bf16.gmra.mrb[8].mxu1 %v5242_v12  ;;  %v4367_v24 = vrot.slane %v3545_v9, 9  ;;  %v3619_v12 = vsel %vm5882_vm15, %v3617_v38, %v3618_v17  ;;  %v4371_v56 = vcombine.low %v3588_v31, %v3591_v57 }
  0xf7   : > { %4943 = vmatprep.subr.bf16.mxu0 %v5239_v0  ;;  %4979 = vmatpush3.bf16.msra.mxu1 %v5239_v0 }
  0xf8   : > { %4972 = vmatprep.subr.bf16.mxu1 %v5241_v18  ;;  %4803 = vmatprep.mubr.bf16.mxu1 %v5244_v29  ;;  %v3616_v21 = vsel %vm5882_vm15, %v4367_v24, %v3615_v30  ;;  %v4368_v29 = vrot.slane %v3546_v53, 9 }
  0xf9   : > { %4928 = vmatmul.mubr.bf16.gmra.mrb[8].mxu0 %v4350_v34  ;;  %v4375_v52 = vcombine.low %v3616_v21, %v3619_v12  ;;  %v3625_v34 = vrot.slane %v6396_v35, 5  ;;  %v3595_v35 = vsel %vm5882_vm15, %v4364_v4, %v3594_v8 }
  0xfa   : > { %4944 = vmatpush3.bf16.msra.mxu0 %v5239_v0  ;;  %4931 = vmatprep.mubr.bf16.mxu0 %v4351_v58  ;;  %v3612_v0 = vsel %vm5882_vm15, %v3610_v60, %v3611_v63  ;;  %v3597_v58 = vrot.slane %v6321_v26, 5  ;;  %v3623_v39 = vsel %vm5882_vm15, %v4368_v29, %v3622_v5 }
  0xfb   : > { %4945 = vmatprep.subr.bf16.mxu0 %v5241_v18  ;;  %4980 = vmatpush3.bf16.msra.mxu1 %v5241_v18  ;;  %v4374_v16 = vcombine.low %v3609_v6, %v3612_v0  ;;  %v3626_v2 = vsel %vm5882_vm15, %v3624_v7, %v3625_v34 }
  0xfc   : > { %4973 = vmatprep.subr.bf16.mxu1 %v5243_v36  ;;  %v4376_v28 = vcombine.low %v3623_v39, %v3626_v2 }
  0xfe   : > { %4946 = vmatpush3.bf16.msra.mxu0 %v5241_v18  ;;  %4804 = vmatmul.mubr.bf16.gmra.mrb[12].mxu1 %v5246_v59  ;;  %v3596_v18 = vrot.slane %v3594_v8, 4 }
  0xff   : > { %4947 = vmatprep.subr.bf16.mxu0 %v5243_v36  ;;  %4981 = vmatpush3.bf16.msra.mxu1 %v5243_v36 }
 0x100   : > { %4974 = vmatprep.subr.bf16.mxu1 %v5245_v42  ;;  %4959 = vmatprep.mubr.bf16.mxu1 %v4373_v25  ;;  %v3598_v61 = vsel %vm5882_vm15, %v3596_v18, %v3597_v58 }
 0x101   : > { %4932 = vmatmul.mubr.bf16.gmra.mrb[12].mxu0 %v4352_v27  ;;  %v4372_v48 = vcombine.low %v3595_v35, %v3598_v61 }
 0x102   : > { %4948 = vmatpush3.bf16.msra.mxu0 %v5243_v36  ;;  %4951 = vmatprep.mubr.bf16.mxu0 %v4369_v32 }
 0x103   : > { %4949 = vmatprep.subr.bf16.mxu0 %v5245_v42  ;;  %4982 = vmatpush3.bf16.msra.mxu1 %v5245_v42 }
 0x106   : > { %4950 = vmatpush3.bf16.msra.mxu0 %v5245_v42  ;;  %4960 = vmatmul.mubr.bf16.vlgmr.msra.gmra.mrb[16].mxu1 %v4374_v16 }
 0x107   : > { %4963 = vmatprep.mubr.bf16.mxu1 %v4375_v52 }
 0x109   : > { %4952 = vmatmul.mubr.bf16.vlgmr.msra.gmra.mrb[0].mxu0 %v4370_v50 }
 0x10a   : > { %4955 = vmatprep.mubr.bf16.mxu0 %v4371_v56 }
 0x10e   : > { %4964 = vmatmul.mubr.bf16.gmra.mrb[20].mxu1 %v4376_v28 }
 0x111   : > { %4956 = vmatmul.mubr.bf16.gmra.mrb[4].mxu0 %v4372_v48 }
 0x1b9   : > { %v4793_v26 = vpop.f32.mrb[0].mxu1 }
 0x1ba   : > { %v2071_v46 = vpop.f32.mrb[1].mxu1 }
 0x1bb   : > { %v4794_v13 = vpop.f32.mrb[2].mxu1 }
 0x1bc   : > { %v2074_v43 = vpop.f32.mrb[3].mxu1 }
 0x1c1   : > { %v6475_v45 = vpop.f32.mrb[4].mxu1 }
 0x1c2   : > { %v6477_v30 = vpop.f32.mrb[5].mxu1 }
 0x1c3   : > { %v6479_v55 = vpop.f32.mrb[6].mxu1 }
 0x1c4   : > { %v6481_v51 = vpop.f32.mrb[7].mxu1 }
 0x1c9   : > { %v4801_v62 = vpop.f32.mrb[8].mxu1 }
 0x1ca   : > { %v2103_v9 = vpop.f32.mrb[9].mxu1 }
 0x1cb   : > { %v4802_v47 = vpop.f32.mrb[10].mxu1 }
 0x1cc   : > { %v4929_v63 = vpop.f32.mrb[8].mxu0  ;;  %v2106_v36 = vpop.f32.mrb[11].mxu1 }
 0x1cd   : > { %v3492_v54 = vpop.f32.mrb[9].mxu0  ;;  %v4991_v44 = vadd.f32 %v4929_v63, %v4801_v62 }
 0x1ce   : > { %v4930_v59 = vpop.f32.mrb[10].mxu0  ;;  %v4993_v40 = vadd.f32 %v3492_v54, %v2103_v9 }
 0x1cf   : > { %v3495_v41 = vpop.f32.mrb[11].mxu0  ;;  %v4995_v60 = vadd.f32 %v4930_v59, %v4802_v47 }
 0x1d0   : > { %v4997_v22 = vadd.f32 %v3495_v41, %v2106_v36 }
 0x1d1   : > { %v4805_v3 = vpop.f32.mrb[12].mxu1 }
 0x1d2   : > { %v2119_v15 = vpop.f32.mrb[13].mxu1 }
 0x1d3   : > { %v4806_v19 = vpop.f32.mrb[14].mxu1 }
 0x1d4   : > { %v4933_v25 = vpop.f32.mrb[12].mxu0  ;;  %v2122_v24 = vpop.f32.mrb[15].mxu1 }
 0x1d5   : > { %v3508_v38 = vpop.f32.mrb[13].mxu0  ;;  %v4999_v17 = vadd.f32 %v4933_v25, %v4805_v3 }
 0x1d6   : > { %v4934_v27 = vpop.f32.mrb[14].mxu0  ;;  %v5001_v1 = vadd.f32 %v3508_v38, %v2119_v15 }
 0x1d7   : > { %v3511_v10 = vpop.f32.mrb[15].mxu0  ;;  %v5003_v23 = vadd.f32 %v4934_v27, %v4806_v19 }
 0x1d8   : > { %v5005_v42 = vadd.f32 %v3511_v10, %v2122_v24 }
 0x1d9   : > { %v4961_v32 = vpop.f32.mrb[16].mxu1 }
 0x1da   : > { %v6483_v37 = vadd.f32 %v4991_v44, %v4961_v32  ;;  %v3789_v20 = vpop.f32.mrb[17].mxu1 }
 0x1db   : > { %v6485_v49 = vadd.f32 %v4993_v40, %v3789_v20  ;;  %v4962_v6 = vpop.f32.mrb[18].mxu1 }
 0x1dc   : > { %v4953_v0 = vpop.f32.mrb[0].mxu0  ;;  %v6487_v5 = vadd.f32 %v4995_v60, %v4962_v6  ;;  %v3792_v21 = vpop.f32.mrb[19].mxu1 }
 0x1dd   : > { %v4983_v12 = vadd.f32 %v4953_v0, %v4793_v26  ;;  %v3757_v53 = vpop.f32.mrb[1].mxu0  ;;  %v6489_v33 = vadd.f32 %v4997_v22, %v3792_v21  ;;  %v3947_v0 = vmul.f32 %v6483_v37, %v6483_v37 }
 0x1de   : > { %v4984_v11 = vadd.f32 %v3757_v53, %v2071_v46  ;;  %v4954_v16 = vpop.f32.mrb[2].mxu0  ;;  %v4509_v31 = vpack.c.bf16 %v6487_v5, %v6483_v37  ;;  %v3948_v53 = vmul.f32 %v6487_v5, %v6487_v5 }
 0x1df   : > { %v4985_v57 = vadd.f32 %v4954_v16, %v4794_v13  ;;  %v3760_v8 = vpop.f32.mrb[3].mxu0  ;;  %v4504_v14 = vpack.c.bf16 %v6489_v33, %v6485_v49  ;;  %v3939_v35 = vmul.f32 %v4983_v12, %v4983_v12  ;;  %v3946_v32 = vmul.f32 %v6489_v33, %v6489_v33 }
 0x1e0   : > { %v4986_v52 = vadd.f32 %v3760_v8, %v2074_v43  ;;  %4532 = vst [vmem:[%s6498_s12 + $0x28] sm:$0xff] %v4509_v31   ;;  %v3937_v29 = vmul.f32 %v4984_v11, %v4984_v11 }
 0x1e1   : > { %v4489_v7 = vpack.c.bf16 %v4985_v57, %v4983_v12  ;;  %4531 = vst [vmem:[%s6498_s12 + $0x20] sm:$0xff] %v4504_v14   ;;  %v4965_v34 = vpop.f32.mrb[20].mxu1  ;;  %v3940_v13 = vmul.f32 %v4985_v57, %v4985_v57 }
 0x1e2   : > { %v4484_v50 = vpack.c.bf16 %v4986_v52, %v4984_v11  ;;  %v3916_v56 = vadd.f32 %v4986_v52, %v4984_v11  ;;  %v3938_v4 = vmul.f32 %v4986_v52, %v4986_v52  ;;  %v6504_v18 = vadd.f32 %v4999_v17, %v4965_v34  ;;  %v3805_v58 = vpop.f32.mrb[21].mxu1 }
 0x1e3   : > { %4528 = vst [vmem:[%s6498_s12 + $0x8] sm:$0xff] %v4489_v7   ;;  %v5002_v39 = vadd.f32 %v5001_v1, %v3805_v58  ;;  %v4966_v2 = vpop.f32.mrb[22].mxu1 }
 0x1e4   : > { %4485 = vst [vmem:[%s6498_s12] sm:$0xff] %v4484_v50   ;;  %v3917_v61 = vadd.f32 %v4983_v12, %v3916_v56  ;;  %v3953_v28 = vadd.f32 %v3938_v4, %v3937_v29  ;;  %v4957_v48 = vpop.f32.mrb[4].mxu0  ;;  %v5004_v26 = vadd.f32 %v5003_v23, %v4966_v2  ;;  %v3808_v46 = vpop.f32.mrb[23].mxu1  ;;  %v3945_v23 = vmul.f32 %v6485_v49, %v6485_v49 }
 0x1e5   : > { %v4987_v43 = vadd.f32 %v4957_v48, %v6475_v45  ;;  %v3773_v62 = vpop.f32.mrb[5].mxu0  ;;  %v5006_v9 = vadd.f32 %v5005_v42, %v3808_v46  ;;  %v3949_v31 = vmul.f32 %v5002_v39, %v5002_v39 }
 0x1e6   : > { %v3954_v47 = vadd.f32 %v3953_v28, %v3939_v35  ;;  %v4988_v63 = vadd.f32 %v3773_v62, %v6477_v30  ;;  %v3918_v36 = vadd.f32 %v4985_v57, %v3917_v61  ;;  %v4958_v54 = vpop.f32.mrb[6].mxu0  ;;  %v4519_v44 = vpack.c.bf16 %v5004_v26, %v6504_v18 }
 0x1e7   : > { %v4989_v59 = vadd.f32 %v4958_v54, %v6479_v55  ;;  %v3776_v40 = vpop.f32.mrb[7].mxu0  ;;  %v4514_v41 = vpack.c.bf16 %v5006_v9, %v5002_v39  ;;  %v3943_v38 = vmul.f32 %v4987_v43, %v4987_v43  ;;  %v3950_v52 = vmul.f32 %v5006_v9, %v5006_v9 }
 0x1e8   : > { %v3919_v60 = vadd.f32 %v4988_v63, %v3918_v36  ;;  %v3941_v22 = vmul.f32 %v4988_v63, %v4988_v63  ;;  %v3955_v3 = vadd.f32 %v3954_v47, %v3940_v13  ;;  %v4990_v45 = vadd.f32 %v3776_v40, %v6481_v51  ;;  %4534 = vst [vmem:[%s6498_s12 + $0x38] sm:$0xff] %v4519_v44  }
 0x1e9   : > { %v4499_v15 = vpack.c.bf16 %v4989_v59, %v4987_v43  ;;  %4533 = vst [vmem:[%s6498_s12 + $0x30] sm:$0xff] %v4514_v41   ;;  %v3944_v27 = vmul.f32 %v4989_v59, %v4989_v59  ;;  %v3952_v7 = vmul.f32 %v5004_v26, %v5004_v26 }
 0x1ea   : > { %v3956_v19 = vadd.f32 %v3955_v3, %v3941_v22  ;;  %v4494_v30 = vpack.c.bf16 %v4990_v45, %v4988_v63  ;;  %v3920_v25 = vadd.f32 %v4990_v45, %v3919_v60  ;;  %v3942_v24 = vmul.f32 %v4990_v45, %v4990_v45 }
 0x1eb   : > { %4530 = vst [vmem:[%s6498_s12 + $0x18] sm:$0xff] %v4499_v15  }
 0x1ec   : > { %4529 = vst [vmem:[%s6498_s12 + $0x10] sm:$0xff] %v4494_v30   ;;  %v3921_v17 = vadd.f32 %v4987_v43, %v3920_v25  ;;  %v3957_v55 = vadd.f32 %v3956_v19, %v3942_v24 }
 0x1ee   : > { %v3922_v1 = vadd.f32 %v4989_v59, %v3921_v17  ;;  %v3958_v10 = vadd.f32 %v3957_v55, %v3943_v38 }
 0x1f0   : > { %v3923_v51 = vadd.f32 %v6485_v49, %v3922_v1  ;;  %v3959_v42 = vadd.f32 %v3958_v10, %v3944_v27 }
 0x1f2   : > { %v3960_v20 = vadd.f32 %v3959_v42, %v3945_v23  ;;  %v3924_v6 = vadd.f32 %v6489_v33, %v3923_v51  ;;  %v3951_v33 = vmul.f32 %v6504_v18, %v6504_v18 }
 0x1f4   : > { %v3925_v21 = vadd.f32 %v6483_v37, %v3924_v6  ;;  %v3961_v12 = vadd.f32 %v3960_v20, %v3946_v32 }
 0x1f6   : > { %v3926_v49 = vadd.f32 %v6487_v5, %v3925_v21  ;;  %v3962_v11 = vadd.f32 %v3961_v12, %v3947_v0 }
 0x1f8   : > { %v3927_v16 = vadd.f32 %v5002_v39, %v3926_v49  ;;  %v3963_v57 = vadd.f32 %v3962_v11, %v3948_v53 }
 0x1fa   : > { %v3964_v8 = vadd.f32 %v3963_v57, %v3949_v31  ;;  %v3928_v14 = vadd.f32 %v5006_v9, %v3927_v16 }
 0x1fc   : > { %v3929_v37 = vadd.f32 %v6504_v18, %v3928_v14  ;;  %v3965_v29 = vadd.f32 %v3964_v8, %v3950_v52 }
 0x1fe   : > { %v3930_v34 = vadd.f32 %v5004_v26, %v3929_v37  ;;  %v3966_v50 = vadd.f32 %v3965_v29, %v3951_v33 }
 0x200   : > { %v3931_v56 = vrot.slane %v3930_v34, 4  ;;  %v3967_v5 = vadd.f32 %v3966_v50, %v3952_v7 }
 0x202   : > { %v3932_v4 = vadd.f32 %v3931_v56, %v3930_v34  ;;  %v3968_v58 = vrot.slane %v3967_v5, 4 }
 0x204   : > { %v3933_v39 = vrot.slane %v3932_v4, 2  ;;  %v3969_v2 = vadd.f32 %v3968_v58, %v3967_v5 }
 0x206   : > { %v3934_v35 = vadd.f32 %v3933_v39, %v3932_v4  ;;  %v3970_v61 = vrot.slane %v3969_v2, 2 }
 0x208   : > { %v3935_v28 = vrot.slane %v3934_v35, 1  ;;  %v3971_v48 = vadd.f32 %v3970_v61, %v3969_v2 }
 0x20a   : > { %v3972_v46 = vrot.slane %v3971_v48, 1  ;;  %v3936_v18 = vadd.f32 %v3935_v28, %v3934_v35 }
 0x20c   : > { %v3973_v26 = vadd.f32 %v3972_v46, %v3971_v48 }
 0x20e   : > { %v3975_v13 = vsel %vm473_vm0, %v3936_v18, %v3973_v26 }
 0x20f   : > { %3976 = vst [vmem:[%s465_s24] sm:$0x3] %v3975_v13 }
 0x210 PF: > { %s18_s28 = sadd.s32 1, %s5303_s28   ;;  %s6578_s24 = smov %s5295_s26 }
 0x211   : > { %p15_p13 = scmp.ge.s32.totalorder %s18_s28, 6   ;;  %s6579_s25 = smov %s5299_s27 }
 0x212   : > { %s6580_s26 = smov %s6583_s29  ;;  %s6581_s27 = smov %s6587_s30 }
 0x213   :  { %17 = sbr.rel (!%p15_p13) target bundleno = 3 (0x3), region = 95 }

</bundles_post_ra>
